<compile_context>
chip_gen: v7x
topology: tpu7x:2x2x1
jax: 0.10.0
libtpu: 0.0.40
codegen_flags: <defaults>
</compile_context>

<pallas_src>
from functools import partial

import jax
import jax.numpy as jnp
from jax.experimental import pallas as pl
from jax.experimental.pallas import tpu as pltpu


# ----------------------------------------------------------------------------
# Kernel
# ----------------------------------------------------------------------------
def _convlstm_cell_kernel(comb_ref, c_ref, w_ref, b_ref, h_out_ref, c_out_ref,
                          *, chid, W, TH, kh, kw):
    """One (batch, row-tile) grid step of the ConvLSTM cell.

    comb_ref : (Hpad+2ph, W+2pw, C)  pre-padded concat([x, h]) image, bf16
    c_ref    : (TH, W, chid)         cell-state row tile, f32
    w_ref    : (kh, kw, C, 4*chid)   conv weight in HWIO order, bf16
    b_ref    : (1, 4*chid)           conv bias, f32
    h_out_ref: (TH, W, chid)         f32
    c_out_ref: (TH, W, chid)         f32
    """
    TOK = TH * W
    r0 = pl.multiple_of(pl.program_id(1) * TH, TH)

    # ---- conv as kh*kw accumulated MXU matmuls, K = Cin+Chid (no zero K) ----
    acc = None
    for dy in range(kh):
        rows = comb_ref[pl.ds(r0 + dy, TH)]            # (TH, W+2pw, C) bf16
        for dx in range(kw):
            lhs = rows[:, dx:dx + W, :].reshape(TOK, -1)       # (TOK, C)
            p = jnp.dot(lhs, w_ref[dy, dx],                    # (C, 4*chid)
                        preferred_element_type=jnp.float32)
            acc = p if acc is None else acc + p
    cc = acc + b_ref[...]                              # bias once, in epilogue

    # ---- gates: one transcendental per lane, no materialized lane mask ----
    # gate order matches torch.split(combined_conv, hidden_dim, dim=1): i,f,o,g
    i_g = jax.nn.sigmoid(cc[:, 0 * chid:1 * chid])
    f_g = jax.nn.sigmoid(cc[:, 1 * chid:2 * chid])
    o_g = jax.nn.sigmoid(cc[:, 2 * chid:3 * chid])
    g_g = jnp.tanh(cc[:, 3 * chid:4 * chid])

    c_cur = c_ref[...].reshape(TOK, chid).astype(jnp.float32)
    c_next = f_g * c_cur + i_g * g_g
    h_next = o_g * jnp.tanh(c_next)

    c_out_ref[...] = c_next.reshape(TH, W, chid).astype(c_out_ref.dtype)
    h_out_ref[...] = h_next.reshape(TH, W, chid).astype(h_out_ref.dtype)


# ----------------------------------------------------------------------------
# Wrappers
# ----------------------------------------------------------------------------
def prepare_convlstm_weights(weight, bias):
    """Do once per cell (outside the recurrent loop).

    weight: (4*Chid, Cin+Chid, kh, kw)  PyTorch OIHW
    bias  : (4*Chid,)
    returns: w4 (kh, kw, Cin+Chid, 4*Chid) bf16, b2 (1, 4*Chid) f32
    """
    w4 = jnp.transpose(weight, (2, 3, 1, 0)).astype(jnp.bfloat16)   # OIHW->HWIO
    b2 = bias.reshape(1, -1).astype(jnp.float32)
    return w4, b2


def _pick_row_tile(H, W, target_tok):
    """Smallest TH with TH*W >= target_tok (sublane-friendly), capped at H."""
    th = max(1, -(-target_tok // W))
    if th >= H:
        return H
    if th > 8 and th % 8:
        th = (th // 8) * 8
    return max(1, min(th, H))


def convlstm_cell_forward_nhwc(x, h_cur, c_cur, w4, b2, *, target_tok=256):
    """NHWC-native ConvLSTM cell step (preferred inside a recurrent loop).

    x: (B,H,W,Cin)  h_cur/c_cur: (B,H,W,Chid)  w4/b2: from prepare_convlstm_weights
    returns h_next, c_next in NHWC, f32.
    """
    B, H, W, cin = x.shape
    kh, kw, C, C4 = w4.shape
    chid = C4 // 4
    if kh % 2 == 0 or kw % 2 == 0:
        raise ValueError("SAME-padding match requires odd kernel sizes")
    if cin + h_cur.shape[-1] != C or h_cur.shape[-1] != chid:
        raise ValueError("channel mismatch between activations and weights")
    ph, pw = kh // 2, kw // 2

    TH = _pick_row_tile(H, W, target_tok)
    nH = pl.cdiv(H, TH)
    Hpad = nH * TH
    TOK = TH * W

    # One-time concat / SAME-pad / row-pad / bf16 cast in the wrapper: the
    # kernel gets a ready-to-slice slab (no masked narrow-lane slab build).
    comb = jnp.concatenate([x, h_cur], axis=-1).astype(jnp.bfloat16)
    comb = jnp.pad(comb, ((0, 0), (ph, ph + (Hpad - H)), (pw, pw), (0, 0)))
    c_in = c_cur.astype(jnp.float32)
    if Hpad != H:
        c_in = jnp.pad(c_in, ((0, 0), (0, Hpad - H), (0, 0), (0, 0)))

    kernel = partial(_convlstm_cell_kernel, chid=chid, W=W, TH=TH, kh=kh, kw=kw)

    # Rough per-step VMEM working set (double-buffered blocks + temporaries),
    # capped conservatively for v7x's 64 MiB VMEM.
    bf16, f32 = 2, 4
    comb_bytes = (Hpad + 2 * ph) * (W + 2 * pw) * C * bf16
    c_bytes = TH * W * chid * f32
    w_bytes = kh * kw * C * C4 * bf16
    out_bytes = 2 * TH * W * chid * f32
    tmp_bytes = 8 * TOK * C4 * f32
    est = 2 * (comb_bytes + c_bytes + w_bytes + out_bytes + C4 * f32) + tmp_bytes
    vmem_limit = int(min(40 * 1024 * 1024, max(16 * 1024 * 1024, 2 * est)))

    h_next, c_next = pl.pallas_call(
        kernel,
        grid=(B, nH),
        in_specs=[
            # combined x|h image per batch element (re-used across row tiles);
            # c / outputs are disjoint row tiles.
            pl.BlockSpec((None, Hpad + 2 * ph, W + 2 * pw, C),
                         lambda b, i: (b, 0, 0, 0)),
            pl.BlockSpec((None, TH, W, chid), lambda b, i: (b, i, 0, 0)),
            pl.BlockSpec((kh, kw, C, C4), lambda b, i: (0, 0, 0, 0)),
            pl.BlockSpec((1, C4), lambda b, i: (0, 0)),
        ],
        out_specs=(
            pl.BlockSpec((None, TH, W, chid), lambda b, i: (b, i, 0, 0)),
            pl.BlockSpec((None, TH, W, chid), lambda b, i: (b, i, 0, 0)),
        ),
        out_shape=(jax.ShapeDtypeStruct((B, Hpad, W, chid), jnp.float32),
                   jax.ShapeDtypeStruct((B, Hpad, W, chid), jnp.float32)),
        compiler_params=pltpu.CompilerParams(
            dimension_semantics=("parallel", "parallel"),
            vmem_limit_bytes=vmem_limit),
    )(comb, c_in, w4, b2)

    if Hpad != H:
        h_next = h_next[:, :H]
        c_next = c_next[:, :H]
    return h_next, c_next


def convlstm_cell_forward(x, h_cur, c_cur, weight, bias, target_tok=256):
    """PyTorch ConvLSTMCell.forward semantics (NCHW activations, OIHW weight).

    For a recurrent loop prefer prepare_convlstm_weights +
    convlstm_cell_forward_nhwc directly — it avoids these per-step
    NCHW<->NHWC transposes (pure HBM traffic the kernel cannot hide).
    """
    w4, b2 = prepare_convlstm_weights(weight, bias)
    x_ = jnp.transpose(x, (0, 2, 3, 1))
    h_ = jnp.transpose(h_cur, (0, 2, 3, 1))
    c_ = jnp.transpose(c_cur, (0, 2, 3, 1))
    h_n, c_n = convlstm_cell_forward_nhwc(x_, h_, c_, w4, b2,
                                          target_tok=target_tok)
    return jnp.transpose(h_n, (0, 3, 1, 2)), jnp.transpose(c_n, (0, 3, 1, 2))


def convlstm_cell_reference(x, h_cur, c_cur, weight, bias):
    """Pure-JAX reference mirroring the PyTorch forward (NCHW, f32)."""
    comb = jnp.concatenate([x, h_cur], axis=1)
    cc = jax.lax.conv_general_dilated(
        comb, weight, window_strides=(1, 1), padding='SAME',
        dimension_numbers=('NCHW', 'OIHW', 'NCHW'))
    cc = cc + bias.reshape(1, -1, 1, 1)
    cc_i, cc_f, cc_o, cc_g = jnp.split(cc, 4, axis=1)
    i = jax.nn.sigmoid(cc_i)
    f = jax.nn.sigmoid(cc_f)
    o = jax.nn.sigmoid(cc_o)
    g = jnp.tanh(cc_g)
    c_next = f * c_cur + i * g
    h_next = o * jnp.tanh(c_next)
    return h_next, c_next


# TODO(synk): the ConvLSTM multi-layer / time-step stacking and nn.Dropout are
# host-side orchestration (dropout defaults to p=0 == identity); only the cell
# compute is a kernel.  A 4-step recurrence through the NHWC path is shown below.

if __name__ == "__main__":
    B, Cin, Chid, H, W = 2, 4, 32, 16, 16
    kernel_size = (3, 3)
    kh, kw = kernel_size

    key = jax.random.PRNGKey(0)
    kx, khid, kcell, kwgt, kbias, kseq = jax.random.split(key, 6)

    x = jax.random.normal(kx, (B, Cin, H, W), jnp.float32)
    h0 = jax.random.normal(khid, (B, Chid, H, W), jnp.float32)
    c0 = jax.random.normal(kcell, (B, Chid, H, W), jnp.float32)

    fan_in = (Cin + Chid) * kh * kw
    bound = 1.0 / jnp.sqrt(fan_in)
    weight = jax.random.uniform(kwgt, (4 * Chid, Cin + Chid, kh, kw),
                                jnp.float32, -bound, bound)
    bias = jax.random.uniform(kbias, (4 * Chid,), jnp.float32, -bound, bound)

    # --- single cell step through the NCHW (PyTorch-interface) adapter ---
    h1, c1 = convlstm_cell_forward(x, h0, c0, weight, bias)
    jax.block_until_ready((h1, c1))
    h_ref, c_ref = convlstm_cell_reference(x, h0, c0, weight, bias)
    assert h1.shape == (B, Chid, H, W) and c1.shape == (B, Chid, H, W)
    # bf16 MXU operands with f32 accumulation -> slightly looser tolerance.
    assert jnp.allclose(h1, h_ref, atol=2e-2, rtol=2e-2)
    assert jnp.allclose(c1, c_ref, atol=2e-2, rtol=2e-2)

    # --- short recurrence through the NHWC-native path (no per-step transposes,
    #     weights prepared once) ---
    T = 4
    xs = jax.random.normal(kseq, (T, B, Cin, H, W), jnp.float32)
    w4, b2 = prepare_convlstm_weights(weight, bias)
    h = jnp.transpose(h0, (0, 2, 3, 1))
    c = jnp.transpose(c0, (0, 2, 3, 1))
    hr, cr = h0, c0
    for t in range(T):
        xt = jnp.transpose(xs[t], (0, 2, 3, 1))
        h, c = convlstm_cell_forward_nhwc(xt, h, c, w4, b2)
        hr, cr = convlstm_cell_reference(xs[t], hr, cr, weight, bias)
    jax.block_until_ready((h, c))
    assert jnp.allclose(jnp.transpose(h, (0, 3, 1, 2)), hr, atol=3e-2, rtol=3e-2)
    assert jnp.allclose(jnp.transpose(c, (0, 3, 1, 2)), cr, atol=3e-2, rtol=3e-2)

    print("KERNEL_OK")
</pallas_src>

<mosaic_0001>
module attributes {stable_mosaic.version = 11 : i64} {
  func.func @_convlstm_cell_kernel(%arg0: i32, %arg1: i32, %arg2: memref<1x18x18x36xbf16, #tpu.memory_space<vmem>>, %arg3: memref<1x16x16x32xf32, #tpu.memory_space<vmem>>, %arg4: memref<3x3x36x128xbf16, #tpu.memory_space<vmem>>, %arg5: memref<1x128xf32, #tpu.memory_space<vmem>>, %arg6: memref<1x16x16x32xf32, #tpu.memory_space<vmem>>, %arg7: memref<1x16x16x32xf32, #tpu.memory_space<vmem>>) attributes {dimension_semantics = [#tpu.dimension_semantics<parallel>, #tpu.dimension_semantics<parallel>], iteration_bounds = array<i64: 2, 1>, scalar_prefetch = 0 : i64, scratch_operands = 0 : i64, tpu.core_type = #tpu.core_type<tc>, window_params = [{transform_indices = @transform_0, window_bounds = array<i64: 1, 18, 18, 36>}, {transform_indices = @transform_1, window_bounds = array<i64: 1, 16, 16, 32>}, {pipeline_mode = #tpu.pipeline_mode<synchronous>, transform_indices = @transform_2, window_bounds = array<i64: 3, 3, 36, 128>}, {pipeline_mode = #tpu.pipeline_mode<synchronous>, transform_indices = @transform_3, window_bounds = array<i64: 1, 128>}, {transform_indices = @transform_4, window_bounds = array<i64: 1, 16, 16, 32>}, {transform_indices = @transform_5, window_bounds = array<i64: 1, 16, 16, 32>}]} {
    %c16_i32 = arith.constant 16 : i32
    %0 = arith.muli %arg1, %c16_i32 : i32
    %1 = tpu.assume_multiple %0, 16 : i32
    %c0_i32 = arith.constant 0 : i32
    %2 = arith.addi %1, %c0_i32 : i32
    %c0 = arith.constant 0 : index
    %3 = arith.index_cast %2 : i32 to index
    %c0_0 = arith.constant 0 : index
    %c0_1 = arith.constant 0 : index
    %4 = vector.load %arg2[%c0, %3, %c0_0, %c0_1] : memref<1x18x18x36xbf16, #tpu.memory_space<vmem>>, vector<1x16x18x36xbf16>
    %5 = vector.shape_cast %4 : vector<1x16x18x36xbf16> to vector<16x18x36xbf16>
    %6 = vector.extract_strided_slice %5 {offsets = [0, 0, 0], sizes = [16, 16, 36], strides = [1, 1, 1]} : vector<16x18x36xbf16> to vector<16x16x36xbf16>
    %7 = vector.shape_cast %6 : vector<16x16x36xbf16> to vector<256x36xbf16>
    %c0_2 = arith.constant 0 : index
    %c0_3 = arith.constant 0 : index
    %c0_4 = arith.constant 0 : index
    %c0_5 = arith.constant 0 : index
    %8 = vector.load %arg4[%c0_2, %c0_3, %c0_4, %c0_5] : memref<3x3x36x128xbf16, #tpu.memory_space<vmem>>, vector<1x1x36x128xbf16>
    %9 = vector.shape_cast %8 : vector<1x1x36x128xbf16> to vector<36x128xbf16>
    %cst = arith.constant dense<0.000000e+00> : vector<256x128xf32>
    %10 = tpu.matmul %7, %9, %cst {dimension_numbers = #tpu.dot_dimension_numbers<[1], [0], [0], [1], [0, 0, 1, 1], [], []>} : vector<256x36xbf16>, vector<36x128xbf16>, vector<256x128xf32> -> vector<256x128xf32>
    %11 = vector.extract_strided_slice %5 {offsets = [0, 1, 0], sizes = [16, 16, 36], strides = [1, 1, 1]} : vector<16x18x36xbf16> to vector<16x16x36xbf16>
    %12 = vector.shape_cast %11 : vector<16x16x36xbf16> to vector<256x36xbf16>
    %c0_6 = arith.constant 0 : index
    %c1 = arith.constant 1 : index
    %c0_7 = arith.constant 0 : index
    %c0_8 = arith.constant 0 : index
    %13 = vector.load %arg4[%c0_6, %c1, %c0_7, %c0_8] : memref<3x3x36x128xbf16, #tpu.memory_space<vmem>>, vector<1x1x36x128xbf16>
    %14 = vector.shape_cast %13 : vector<1x1x36x128xbf16> to vector<36x128xbf16>
    %cst_9 = arith.constant dense<0.000000e+00> : vector<256x128xf32>
    %15 = tpu.matmul %12, %14, %cst_9 {dimension_numbers = #tpu.dot_dimension_numbers<[1], [0], [0], [1], [0, 0, 1, 1], [], []>} : vector<256x36xbf16>, vector<36x128xbf16>, vector<256x128xf32> -> vector<256x128xf32>
    %16 = arith.addf %10, %15 : vector<256x128xf32>
    %17 = vector.extract_strided_slice %5 {offsets = [0, 2, 0], sizes = [16, 16, 36], strides = [1, 1, 1]} : vector<16x18x36xbf16> to vector<16x16x36xbf16>
    %18 = vector.shape_cast %17 : vector<16x16x36xbf16> to vector<256x36xbf16>
    %c0_10 = arith.constant 0 : index
    %c2 = arith.constant 2 : index
    %c0_11 = arith.constant 0 : index
    %c0_12 = arith.constant 0 : index
    %19 = vector.load %arg4[%c0_10, %c2, %c0_11, %c0_12] : memref<3x3x36x128xbf16, #tpu.memory_space<vmem>>, vector<1x1x36x128xbf16>
    %20 = vector.shape_cast %19 : vector<1x1x36x128xbf16> to vector<36x128xbf16>
    %cst_13 = arith.constant dense<0.000000e+00> : vector<256x128xf32>
    %21 = tpu.matmul %18, %20, %cst_13 {dimension_numbers = #tpu.dot_dimension_numbers<[1], [0], [0], [1], [0, 0, 1, 1], [], []>} : vector<256x36xbf16>, vector<36x128xbf16>, vector<256x128xf32> -> vector<256x128xf32>
    %22 = arith.addf %16, %21 : vector<256x128xf32>
    %c1_i32 = arith.constant 1 : i32
    %23 = arith.addi %1, %c1_i32 : i32
    %c0_14 = arith.constant 0 : index
    %24 = arith.index_cast %23 : i32 to index
    %c0_15 = arith.constant 0 : index
    %c0_16 = arith.constant 0 : index
    %25 = vector.load %arg2[%c0_14, %24, %c0_15, %c0_16] : memref<1x18x18x36xbf16, #tpu.memory_space<vmem>>, vector<1x16x18x36xbf16>
    %26 = vector.shape_cast %25 : vector<1x16x18x36xbf16> to vector<16x18x36xbf16>
    %27 = vector.extract_strided_slice %26 {offsets = [0, 0, 0], sizes = [16, 16, 36], strides = [1, 1, 1]} : vector<16x18x36xbf16> to vector<16x16x36xbf16>
    %28 = vector.shape_cast %27 : vector<16x16x36xbf16> to vector<256x36xbf16>
    %c1_17 = arith.constant 1 : index
    %c0_18 = arith.constant 0 : index
    %c0_19 = arith.constant 0 : index
    %c0_20 = arith.constant 0 : index
    %29 = vector.load %arg4[%c1_17, %c0_18, %c0_19, %c0_20] : memref<3x3x36x128xbf16, #tpu.memory_space<vmem>>, vector<1x1x36x128xbf16>
    %30 = vector.shape_cast %29 : vector<1x1x36x128xbf16> to vector<36x128xbf16>
    %cst_21 = arith.constant dense<0.000000e+00> : vector<256x128xf32>
    %31 = tpu.matmul %28, %30, %cst_21 {dimension_numbers = #tpu.dot_dimension_numbers<[1], [0], [0], [1], [0, 0, 1, 1], [], []>} : vector<256x36xbf16>, vector<36x128xbf16>, vector<256x128xf32> -> vector<256x128xf32>
    %32 = arith.addf %22, %31 : vector<256x128xf32>
    %33 = vector.extract_strided_slice %26 {offsets = [0, 1, 0], sizes = [16, 16, 36], strides = [1, 1, 1]} : vector<16x18x36xbf16> to vector<16x16x36xbf16>
    %34 = vector.shape_cast %33 : vector<16x16x36xbf16> to vector<256x36xbf16>
    %c1_22 = arith.constant 1 : index
    %c1_23 = arith.constant 1 : index
    %c0_24 = arith.constant 0 : index
    %c0_25 = arith.constant 0 : index
    %35 = vector.load %arg4[%c1_22, %c1_23, %c0_24, %c0_25] : memref<3x3x36x128xbf16, #tpu.memory_space<vmem>>, vector<1x1x36x128xbf16>
    %36 = vector.shape_cast %35 : vector<1x1x36x128xbf16> to vector<36x128xbf16>
    %cst_26 = arith.constant dense<0.000000e+00> : vector<256x128xf32>
    %37 = tpu.matmul %34, %36, %cst_26 {dimension_numbers = #tpu.dot_dimension_numbers<[1], [0], [0], [1], [0, 0, 1, 1], [], []>} : vector<256x36xbf16>, vector<36x128xbf16>, vector<256x128xf32> -> vector<256x128xf32>
    %38 = arith.addf %32, %37 : vector<256x128xf32>
    %39 = vector.extract_strided_slice %26 {offsets = [0, 2, 0], sizes = [16, 16, 36], strides = [1, 1, 1]} : vector<16x18x36xbf16> to vector<16x16x36xbf16>
    %40 = vector.shape_cast %39 : vector<16x16x36xbf16> to vector<256x36xbf16>
    %c1_27 = arith.constant 1 : index
    %c2_28 = arith.constant 2 : index
    %c0_29 = arith.constant 0 : index
    %c0_30 = arith.constant 0 : index
    %41 = vector.load %arg4[%c1_27, %c2_28, %c0_29, %c0_30] : memref<3x3x36x128xbf16, #tpu.memory_space<vmem>>, vector<1x1x36x128xbf16>
    %42 = vector.shape_cast %41 : vector<1x1x36x128xbf16> to vector<36x128xbf16>
    %cst_31 = arith.constant dense<0.000000e+00> : vector<256x128xf32>
    %43 = tpu.matmul %40, %42, %cst_31 {dimension_numbers = #tpu.dot_dimension_numbers<[1], [0], [0], [1], [0, 0, 1, 1], [], []>} : vector<256x36xbf16>, vector<36x128xbf16>, vector<256x128xf32> -> vector<256x128xf32>
    %44 = arith.addf %38, %43 : vector<256x128xf32>
    %c2_i32 = arith.constant 2 : i32
    %45 = arith.addi %1, %c2_i32 : i32
    %c0_32 = arith.constant 0 : index
    %46 = arith.index_cast %45 : i32 to index
    %c0_33 = arith.constant 0 : index
    %c0_34 = arith.constant 0 : index
    %47 = vector.load %arg2[%c0_32, %46, %c0_33, %c0_34] : memref<1x18x18x36xbf16, #tpu.memory_space<vmem>>, vector<1x16x18x36xbf16>
    %48 = vector.shape_cast %47 : vector<1x16x18x36xbf16> to vector<16x18x36xbf16>
    %49 = vector.extract_strided_slice %48 {offsets = [0, 0, 0], sizes = [16, 16, 36], strides = [1, 1, 1]} : vector<16x18x36xbf16> to vector<16x16x36xbf16>
    %50 = vector.shape_cast %49 : vector<16x16x36xbf16> to vector<256x36xbf16>
    %c2_35 = arith.constant 2 : index
    %c0_36 = arith.constant 0 : index
    %c0_37 = arith.constant 0 : index
    %c0_38 = arith.constant 0 : index
    %51 = vector.load %arg4[%c2_35, %c0_36, %c0_37, %c0_38] : memref<3x3x36x128xbf16, #tpu.memory_space<vmem>>, vector<1x1x36x128xbf16>
    %52 = vector.shape_cast %51 : vector<1x1x36x128xbf16> to vector<36x128xbf16>
    %cst_39 = arith.constant dense<0.000000e+00> : vector<256x128xf32>
    %53 = tpu.matmul %50, %52, %cst_39 {dimension_numbers = #tpu.dot_dimension_numbers<[1], [0], [0], [1], [0, 0, 1, 1], [], []>} : vector<256x36xbf16>, vector<36x128xbf16>, vector<256x128xf32> -> vector<256x128xf32>
    %54 = arith.addf %44, %53 : vector<256x128xf32>
    %55 = vector.extract_strided_slice %48 {offsets = [0, 1, 0], sizes = [16, 16, 36], strides = [1, 1, 1]} : vector<16x18x36xbf16> to vector<16x16x36xbf16>
    %56 = vector.shape_cast %55 : vector<16x16x36xbf16> to vector<256x36xbf16>
    %c2_40 = arith.constant 2 : index
    %c1_41 = arith.constant 1 : index
    %c0_42 = arith.constant 0 : index
    %c0_43 = arith.constant 0 : index
    %57 = vector.load %arg4[%c2_40, %c1_41, %c0_42, %c0_43] : memref<3x3x36x128xbf16, #tpu.memory_space<vmem>>, vector<1x1x36x128xbf16>
    %58 = vector.shape_cast %57 : vector<1x1x36x128xbf16> to vector<36x128xbf16>
    %cst_44 = arith.constant dense<0.000000e+00> : vector<256x128xf32>
    %59 = tpu.matmul %56, %58, %cst_44 {dimension_numbers = #tpu.dot_dimension_numbers<[1], [0], [0], [1], [0, 0, 1, 1], [], []>} : vector<256x36xbf16>, vector<36x128xbf16>, vector<256x128xf32> -> vector<256x128xf32>
    %60 = arith.addf %54, %59 : vector<256x128xf32>
    %61 = vector.extract_strided_slice %48 {offsets = [0, 2, 0], sizes = [16, 16, 36], strides = [1, 1, 1]} : vector<16x18x36xbf16> to vector<16x16x36xbf16>
    %62 = vector.shape_cast %61 : vector<16x16x36xbf16> to vector<256x36xbf16>
    %c2_45 = arith.constant 2 : index
    %c2_46 = arith.constant 2 : index
    %c0_47 = arith.constant 0 : index
    %c0_48 = arith.constant 0 : index
    %63 = vector.load %arg4[%c2_45, %c2_46, %c0_47, %c0_48] : memref<3x3x36x128xbf16, #tpu.memory_space<vmem>>, vector<1x1x36x128xbf16>
    %64 = vector.shape_cast %63 : vector<1x1x36x128xbf16> to vector<36x128xbf16>
    %cst_49 = arith.constant dense<0.000000e+00> : vector<256x128xf32>
    %65 = tpu.matmul %62, %64, %cst_49 {dimension_numbers = #tpu.dot_dimension_numbers<[1], [0], [0], [1], [0, 0, 1, 1], [], []>} : vector<256x36xbf16>, vector<36x128xbf16>, vector<256x128xf32> -> vector<256x128xf32>
    %66 = arith.addf %60, %65 : vector<256x128xf32>
    %c0_50 = arith.constant 0 : index
    %c0_51 = arith.constant 0 : index
    %67 = vector.load %arg5[%c0_50, %c0_51] : memref<1x128xf32, #tpu.memory_space<vmem>>, vector<1x128xf32>
    %68 = vector.broadcast %67 : vector<1x128xf32> to vector<256x128xf32>
    %69 = arith.addf %66, %68 : vector<256x128xf32>
    %70 = vector.extract_strided_slice %69 {offsets = [0, 0], sizes = [256, 32], strides = [1, 1]} : vector<256x128xf32> to vector<256x32xf32>
    %71 = arith.negf %70 : vector<256x32xf32>
    %72 = math.exp %71 : vector<256x32xf32>
    %cst_52 = arith.constant 1.000000e+00 : f32
    %73 = vector.broadcast %cst_52 : f32 to vector<256x32xf32>
    %74 = arith.addf %73, %72 : vector<256x32xf32>
    %75 = arith.divf %73, %74 : vector<256x32xf32>
    %76 = vector.extract_strided_slice %69 {offsets = [0, 32], sizes = [256, 32], strides = [1, 1]} : vector<256x128xf32> to vector<256x32xf32>
    %77 = arith.negf %76 : vector<256x32xf32>
    %78 = math.exp %77 : vector<256x32xf32>
    %cst_53 = arith.constant 1.000000e+00 : f32
    %79 = vector.broadcast %cst_53 : f32 to vector<256x32xf32>
    %80 = arith.addf %79, %78 : vector<256x32xf32>
    %81 = arith.divf %79, %80 : vector<256x32xf32>
    %82 = vector.extract_strided_slice %69 {offsets = [0, 64], sizes = [256, 32], strides = [1, 1]} : vector<256x128xf32> to vector<256x32xf32>
    %83 = arith.negf %82 : vector<256x32xf32>
    %84 = math.exp %83 : vector<256x32xf32>
    %cst_54 = arith.constant 1.000000e+00 : f32
    %85 = vector.broadcast %cst_54 : f32 to vector<256x32xf32>
    %86 = arith.addf %85, %84 : vector<256x32xf32>
    %87 = arith.divf %85, %86 : vector<256x32xf32>
    %88 = vector.extract_strided_slice %69 {offsets = [0, 96], sizes = [256, 32], strides = [1, 1]} : vector<256x128xf32> to vector<256x32xf32>
    %89 = math.tanh %88 : vector<256x32xf32>
    %c0_55 = arith.constant 0 : index
    %c0_56 = arith.constant 0 : index
    %c0_57 = arith.constant 0 : index
    %c0_58 = arith.constant 0 : index
    %90 = vector.load %arg3[%c0_55, %c0_56, %c0_57, %c0_58] : memref<1x16x16x32xf32, #tpu.memory_space<vmem>>, vector<1x16x16x32xf32>
    %91 = vector.shape_cast %90 : vector<1x16x16x32xf32> to vector<16x16x32xf32>
    %92 = vector.shape_cast %91 : vector<16x16x32xf32> to vector<256x32xf32>
    %93 = arith.mulf %81, %92 : vector<256x32xf32>
    %94 = arith.mulf %75, %89 : vector<256x32xf32>
    %95 = arith.addf %93, %94 : vector<256x32xf32>
    %96 = math.tanh %95 : vector<256x32xf32>
    %97 = arith.mulf %87, %96 : vector<256x32xf32>
    %98 = vector.shape_cast %95 : vector<256x32xf32> to vector<16x16x32xf32>
    %c0_59 = arith.constant 0 : index
    %c0_60 = arith.constant 0 : index
    %c0_61 = arith.constant 0 : index
    %c0_62 = arith.constant 0 : index
    %99 = vector.load %arg7[%c0_59, %c0_60, %c0_61, %c0_62] : memref<1x16x16x32xf32, #tpu.memory_space<vmem>>, vector<1x16x16x32xf32>
    %100 = vector.shape_cast %99 : vector<1x16x16x32xf32> to vector<16x16x32xf32>
    %101 = vector.shape_cast %98 : vector<16x16x32xf32> to vector<1x16x16x32xf32>
    tpu.vector_store %arg7[%c0_59, %c0_60, %c0_61, %c0_62], %101 {strides = array<i32>} : memref<1x16x16x32xf32, #tpu.memory_space<vmem>>, vector<1x16x16x32xf32>,
    %102 = vector.shape_cast %97 : vector<256x32xf32> to vector<16x16x32xf32>
    %c0_63 = arith.constant 0 : index
    %c0_64 = arith.constant 0 : index
    %c0_65 = arith.constant 0 : index
    %c0_66 = arith.constant 0 : index
    %103 = vector.load %arg6[%c0_63, %c0_64, %c0_65, %c0_66] : memref<1x16x16x32xf32, #tpu.memory_space<vmem>>, vector<1x16x16x32xf32>
    %104 = vector.shape_cast %103 : vector<1x16x16x32xf32> to vector<16x16x32xf32>
    %105 = vector.shape_cast %102 : vector<16x16x32xf32> to vector<1x16x16x32xf32>
    tpu.vector_store %arg6[%c0_63, %c0_64, %c0_65, %c0_66], %105 {strides = array<i32>} : memref<1x16x16x32xf32, #tpu.memory_space<vmem>>, vector<1x16x16x32xf32>,
    return
  }
  func.func @transform_0(%arg0: i32, %arg1: i32) -> (i32, i32, i32, i32) {
    %c0_i32 = arith.constant 0 : i32
    %c0_i32_0 = arith.constant 0 : i32
    %c0_i32_1 = arith.constant 0 : i32
    %c0_i32_2 = arith.constant 0 : i32
    return %arg0, %c0_i32, %c0_i32_0, %c0_i32_1 : i32, i32, i32, i32
  }
  func.func @transform_1(%arg0: i32, %arg1: i32) -> (i32, i32, i32, i32) {
    %c0_i32 = arith.constant 0 : i32
    %c0_i32_0 = arith.constant 0 : i32
    %c0_i32_1 = arith.constant 0 : i32
    return %arg0, %arg1, %c0_i32, %c0_i32_0 : i32, i32, i32, i32
  }
  func.func @transform_2(%arg0: i32, %arg1: i32) -> (i32, i32, i32, i32) {
    %c0_i32 = arith.constant 0 : i32
    %c0_i32_0 = arith.constant 0 : i32
    %c0_i32_1 = arith.constant 0 : i32
    %c0_i32_2 = arith.constant 0 : i32
    %c0_i32_3 = arith.constant 0 : i32
    return %c0_i32, %c0_i32_0, %c0_i32_1, %c0_i32_2 : i32, i32, i32, i32
  }
  func.func @transform_3(%arg0: i32, %arg1: i32) -> (i32, i32) {
    %c0_i32 = arith.constant 0 : i32
    %c0_i32_0 = arith.constant 0 : i32
    %c0_i32_1 = arith.constant 0 : i32
    return %c0_i32, %c0_i32_0 : i32, i32
  }
  func.func @transform_4(%arg0: i32, %arg1: i32) -> (i32, i32, i32, i32) {
    %c0_i32 = arith.constant 0 : i32
    %c0_i32_0 = arith.constant 0 : i32
    %c0_i32_1 = arith.constant 0 : i32
    return %arg0, %arg1, %c0_i32, %c0_i32_0 : i32, i32, i32, i32
  }
  func.func @transform_5(%arg0: i32, %arg1: i32) -> (i32, i32, i32, i32) {
    %c0_i32 = arith.constant 0 : i32
    %c0_i32_0 = arith.constant 0 : i32
    %c0_i32_1 = arith.constant 0 : i32
    return %arg0, %arg1, %c0_i32, %c0_i32_0 : i32, i32, i32, i32
  }
}

</mosaic_0001>

<bundles_post_ra>
// kernel: tpu_custom_call.1
= control target key start
LH: loop header
LB: loop body
LE: loop exit
PB: predicated region body
PF: predicated region fallthrough
CT: control target
= control target key end

     0   :  { %11 = vsyncpa [#allocation3], 0  ;;  %s11292_s0 = inlined_call_operand.vmem [shape: bf16[2,18,18,36], index: 0, kind: input, shape index: {}]   ;;  %s11293_s1 = inlined_call_operand.vmem [shape: f32[2,16,16,32], index: 1, kind: input, shape index: {}]   ;;  %s11294_s2 = inlined_call_operand.vmem [shape: bf16[3,3,36,128], index: 2, kind: input, shape index: {}]   ;;  %s11295_s3 = inlined_call_operand.vmem [shape: f32[1,128], index: 3, kind: input, shape index: {}]   ;;  %s11296_s4 = inlined_call_operand.hbm [shape: f32[2,16,16,32], index: 4, kind: output, shape index: {0}]   ;;  %s11297_s5 = inlined_call_operand.hbm [shape: f32[2,16,16,32], index: 5, kind: output, shape index: {1}]  }
   0x1   :  { %13 = vsyncpa [#allocation3 + $0x1], 0 }
   0x2   :  { %14 = vsyncpa [#allocation5], 0 }
   0x3   :  { %16 = vsyncpa [#allocation5 + $0x1], 0  ;;  %s8315_s18 = smov 0   ;;  %s8317_s19 = smov 0  }
   0x4   :  { %s8319_s20 = smov 0   ;;  %s8321_s21 = smov 0  }
   0x5   :  { %s8323_s22 = smov 0   ;;  %s8325_s23 = smov 0  }
   0x6 LB: > { %s6308_s24 = sadd.s32 4294967295, %s8276_s23   ;;  %s6309_s25 = sadd.s32 4294967294, %s8276_s23   ;;  %s8276_s23 = sphi %s8325_s23, %s22_s23   ;;  %s8272_s22 = sphi %s8323_s22, %s11433_s22   ;;  %s8268_s21 = sphi %s8321_s21, %s11432_s21   ;;  %s8264_s20 = sphi %s8319_s20, %s11431_s20   ;;  %s8260_s19 = sphi %s8317_s19, %s11430_s19   ;;  %s8256_s18 = sphi %s8315_s18, %s11429_s18  }
   0x7   : > { %s34_s26 = sadd.s32 1, %s8272_s22  ;;  %s139_s27 = sadd.s32 1, %s8264_s20 }
   0x8   : > { %p36_p0 = scmp.ge.s32.totalorder %s34_s26, 2  ;;  %p149_p1 = scmp.ne.s32.totalorder %s8264_s20, %s8260_s19 }
   0x9   : > { %p150_p2 = scmp.eq.s32.totalorder %s6308_s24, 1  ;;  %p155_p3 = scmp.ne.s32.totalorder %s8260_s19, %s8256_s18 }
   0xa   : > { %s11435_s26 = smov (%p36_p0, %s34_s26), 0  ;;  %p156_p5 = scmp.eq.s32.totalorder %s6309_s25, 1 }
   0xb   : > { %p8355_p4 = por %p150_p2, %p149_p1  ;;  %s134_s29 = ssub.s32 %s8272_s22, %s11435_s26 }
   0xc   : > { %p6312_p6 = scmp.ge.s32.totalorder %s8276_s23, 1  ;;  %p137_p7 = scmp.eq.s32.totalorder %s134_s29, 0 }
   0xd   : > { %p8362_p8 = por %p156_p5, %p155_p3  ;;  %p230_p9 = scmp.lt.s32.totalorder %s8276_s23, 3 }
   0xe   : > { %s8368_s6 = scalar_select %p137_p7, %s8264_s20, %s139_s27  }
   0xf   : > { %p231_p10 = pnand %p6312_p6, %p230_p9 }
  0x11   : > { %234 = sbr.rel (%p231_p10) target bundleno = 1176 (0x498), region = 36 }
  0x18   : > { %v7712_v0 = vld [vmem:[%s11294_s2 + $0x50] sm:$0xff]   ;;  %p273_p11 = scmp.lt.s32.totalorder %s8268_s21, 1  ;;  %v7714_v2 = vld [vmem:[%s11294_s2 + $0x58] sm:$0xff]   ;;  %vm854_vm0 = vcmask 1041408   ;;  %vm349_vm1 = vsmask.f32 3328 }
  0x19   : > { %v7713_v1 = vld [vmem:[%s11294_s2 + $0x14] sm:$0xff]   ;;  %7184 = vmatprep.subr.bf16.mxu0 %v7712_v0  ;;  %v7715_v3 = vld [vmem:[%s11294_s2 + $0x1c] sm:$0xff]   ;;  %v7717_v5 = vld [vmem:[%s11294_s2 + $0x24] ss:$0 sps:$4 sm:$0x33]   ;;  %vm805_vm4 = vcmask 293888  }
  0x1a   : > { %7032 = vmatprep.subr.bf16.mxu1 %v7713_v1  ;;  %7185 = vmatpush3.bf16.msra.mxu0 %v7712_v0  ;;  %s8384_s15 = scalar_select %p273_p11, %s8268_s21, 1  ;;  %v7716_v4 = vld [vmem:[%s11294_s2 + $0x60] ss:$0 sps:$4 sm:$0x33]   ;;  %vm350_vm2 = vsmask.f32 7440 }
  0x1b   : > { %7033 = vmatpush3.bf16.msra.mxu1 %v7713_v1  ;;  %7186 = vmatprep.subr.bf16.mxu0 %v7714_v2  ;;  %v8396_v6 = vld [vmem:[%s11294_s2 + $0x64] sm:$0xff]   ;;  %v8399_v7 = vsel %vm854_vm0, %v7716_v4, 0  ;;  %v856_v8 = vsel %vm854_vm0, %v7717_v5, 0  ;;  %vm8432_vm3 = vmor %vm349_vm1, %vm350_vm2  ;;  %vm1342_vm5 = vcmask 1042432   ;;  %vm1343_vm6 = vcmask 1046532   ;;  %s10979_s11 = sand.u32 1, %s8260_s19  }
  0x1c   : > { %7034 = vmatprep.subr.bf16.mxu1 %v7715_v3  ;;  %s7646_s27 = smul.u32 216, %s8384_s15  ;;  %11324 = vst [vmem:[#allocation8_spill] sm:$0xff] %v8399_v7  ;;  %v8440_v47 = vld [vmem:[%s11294_s2] sm:$0xff]   ;;  %vm8700_vm7 = vmor %vm1342_vm5, %vm1343_vm6  ;;  %s6858_s9 = sshll.u32 %s8384_s15, 8  ;;  %vm5935_vm8 = vcmask 261120  }
  0x1d   : > { %s9670_s13 = scalar_lea.vmem %s11293_s1, %s6858_s9  ;;  %s8278_s15 = smov 32  }
  0x1e   : > { %7187 = vmatpush3.bf16.msra.mxu0 %v7714_v2  ;;  %s8405_s10 = scalar_lea.vmem %s11292_s0, %s7646_s27  ;;  %s8279_s9 = smov 96  }
  0x1f   : > { %7035 = vmatpush3.bf16.msra.mxu1 %v7715_v3  ;;  %7640 = vmatprep.subr.msk.bf16.mxu0 %vm854_vm0, %v7716_v4  ;;  %v296_v9 = vld [vmem:[%s8405_s10] sm:$0xf]  ;;  %v297_v10 = vld [vmem:[%s8405_s10 + $0x4] sm:$0xf]  ;;  %v298_v11 = vld [vmem:[%s8405_s10 + $0x8] sm:$0x1] }
  0x20   : > { %7636 = vmatprep.subr.msk.bf16.mxu1 %vm854_vm0, %v7717_v5  ;;  %v353_v12 = vshrl.u32 %v296_v9, 16  ;;  %v356_v13 = vshll.u32 %v296_v9, 16  ;;  %v362_v14 = vshll.u32 %v297_v10, 16  ;;  %v366_v15 = vshrl.u32 %v297_v10, 16  ;;  %v8413_v16 = vld [vmem:[%s8405_s10 + $0xc] sm:$0xf] }
  0x21   : > { %v372_v17 = vshll.u32 %v298_v11, 16  ;;  %v8416_v18 = vld [vmem:[%s8405_s10 + $0x10] sm:$0xf]  ;;  %v8419_v19 = vld [vmem:[%s8405_s10 + $0x14] sm:$0x1]  ;;  %v2168_v25 = vshrl.u32 %v8413_v16, 16 }
  0x22   : > { %7189 = vmatpush3.bf16.msra.mxu0 %v8399_v7  ;;  %v355_v20 = vrot.slane %v353_v12, 4  ;;  %v358_v21 = vrot.slane %v356_v13, 5  ;;  %v364_v22 = vrot.slane %v362_v14, 5  ;;  %v368_v23 = vrot.slane %v366_v15, 4  ;;  %v299_v32 = vld [vmem:[%s8405_s10 + $0xc] sm:$0xf] }
  0x23   : > { %7037 = vmatpush3.bf16.msra.mxu1 %v856_v8  ;;  %v374_v24 = vrot.slane %v372_v17, 5  ;;  %v2171_v26 = vshll.u32 %v8413_v16, 16  ;;  %v2177_v27 = vshll.u32 %v8416_v18, 16  ;;  %7222 = vmatprep.subr.bf16.mxu0 %v8396_v6  ;;  %v2181_v30 = vshrl.u32 %v8416_v18, 16  ;;  %v300_v33 = vld [vmem:[%s8405_s10 + $0x10] sm:$0xf] }
  0x24   : > { %v359_v28 = vor.u32 %v358_v21, %v355_v20  ;;  %v369_v29 = vor.u32 %v368_v23, %v364_v22  ;;  %v2187_v31 = vshll.u32 %v8419_v19, 16  ;;  %v2170_v35 = vrot.slane %v2168_v25, 4  ;;  %v301_v43 = vld [vmem:[%s8405_s10 + $0x14] sm:$0x1]  ;;  %v8447_v56 = vld [vmem:[%s8405_s10 + $0x18] sm:$0xf]  ;;  %7070 = vmatprep.subr.bf16.mxu1 %v8440_v47 }
  0x25   : > { %v2173_v36 = vrot.slane %v2171_v26, 5  ;;  %v2179_v37 = vrot.slane %v2177_v27, 5  ;;  %v2183_v40 = vrot.slane %v2181_v30, 4  ;;  %v377_v44 = vshrl.u32 %v299_v32, 16  ;;  %v8451_v61 = vld [vmem:[%s8405_s10 + $0x1c] sm:$0xf] }
  0x26   : > { %v360_v38 = vrot.slane %v359_v28, 4  ;;  %v370_v39 = vrot.slane %v369_v29, 4  ;;  %v2189_v41 = vrot.slane %v2187_v31, 5  ;;  %v380_v45 = vshll.u32 %v299_v32, 16  ;;  %v8458_v1 = vld [vmem:[%s8405_s10 + $0x20] sm:$0x1] }
  0x27   : > { %v2174_v42 = vor.u32 %v2173_v36, %v2170_v35  ;;  %v386_v46 = vshll.u32 %v300_v33, 16  ;;  %v2184_v50 = vor.u32 %v2183_v40, %v2179_v37  ;;  %v390_v51 = vshrl.u32 %v300_v33, 16  ;;  %v302_v8 = vld [vmem:[%s8405_s10 + $0x18] sm:$0xf]  ;;  %v303_v13 = vld [vmem:[%s8405_s10 + $0x1c] sm:$0xf] }
  0x28   : > { %v365_v48 = vsel %vm8432_vm3, %v360_v38, %v364_v22  ;;  %v375_v49 = vsel %vm8432_vm3, %v370_v39, %v374_v24  ;;  %v379_v54 = vrot.slane %v377_v44, 4  ;;  %v382_v55 = vrot.slane %v380_v45, 5  ;;  %v304_v21 = vld [vmem:[%s8405_s10 + $0x20] sm:$0x1]  ;;  %v8475_v26 = vld [vmem:[%s8405_s10 + $0x24] sm:$0xf] }
  0x29   : > { %v6323_v52 = vcombine.low %v365_v48, %v375_v49  ;;  %v2175_v53 = vrot.slane %v2174_v42, 4  ;;  %v2185_v57 = vrot.slane %v2184_v50, 4  ;;  %v388_v58 = vrot.slane %v386_v46, 5  ;;  %v7723_v36 = vld [vmem:[%s11294_s2 + $0x8] sm:$0xff]   ;;  %v9366_v7 = vld [vmem:[%s8405_s10 + $0x20] sm:$0x1] }
  0x2a   : > { %v392_v59 = vrot.slane %v390_v51, 4  ;;  %v396_v60 = vshll.u32 %v301_v43, 16  ;;  %v2885_v63 = vrot.slane %v8419_v19, 5  ;;  %v383_v0 = vor.u32 %v382_v55, %v379_v54  ;;  %v8485_v44 = vld [vmem:[%s8405_s10 + $0x28] sm:$0xf]  ;;  %11336 = vst [vmem:[#allocation16_spill] sm:$0xff] %v9366_v7 }
  0x2b   : > { %7038 = vmatprep.mubr.msk.bf16.mxu1 %vm805_vm4, %v6323_v52  ;;  %v2180_v62 = vsel %vm8432_vm3, %v2175_v53, %v2179_v37  ;;  %v2190_v2 = vsel %vm8432_vm3, %v2185_v57, %v2189_v41  ;;  %v2192_v5 = vshrl.u32 %v8447_v56, 16  ;;  %v2195_v11 = vshll.u32 %v8447_v56, 16  ;;  %v8489_v51 = vld [vmem:[%s8405_s10 + $0x2c] sm:$0x1]  ;;  %v305_v57 = vld [vmem:[%s8405_s10 + $0x24] sm:$0xf] }
  0x2c   : > { %v393_v3 = vor.u32 %v392_v59, %v388_v58  ;;  %v398_v4 = vrot.slane %v396_v60, 5  ;;  %v6542_v9 = vcombine.low %v2180_v62, %v2190_v2  ;;  %v384_v10 = vrot.slane %v383_v0, 4  ;;  %s6313_s12 = sshll.u32 %s10979_s11, 8  ;;  %s8280_s14 = smov 64  }
  0x2d   : > { %v2201_v12 = vshll.u32 %v8451_v61, 16  ;;  %v2194_v15 = vrot.slane %v2192_v5, 4  ;;  %v2205_v17 = vshrl.u32 %v8451_v61, 16  ;;  %v2211_v20 = vshll.u32 %v8458_v1, 16  ;;  %v7719_v5 = vld [vmem:[%s11294_s2 + $0x6c] sm:$0xff]   ;;  %s6134_s27 = scalar_lea.sflag [#allocation5], %s10979_s11 }
  0x2e   : > { %v394_v14 = vrot.slane %v393_v3, 4  ;;  %7190 = vmatprep.mubr.msk.bf16.mxu0 %vm805_vm4, %v6542_v9  ;;  %v389_v22 = vsel %vm8432_vm3, %v384_v10, %v388_v58  ;;  %v2197_v23 = vrot.slane %v2195_v11, 5  ;;  %v2889_v25 = vrot.slane %v8451_v61, 5  ;;  %s8281_s7 = smov [#allocation4]  }
  0x2f   : > { %v2203_v24 = vrot.slane %v2201_v12, 5  ;;  %v2207_v28 = vrot.slane %v2205_v17, 4  ;;  %v2213_v29 = vrot.slane %v2211_v20, 5  ;;  %v2892_v30 = vrot.slane %v8458_v1, 5  ;;  %v8510_v20 = vld [vmem:[%s8405_s10 + $0x30] sm:$0xf] }
  0x30   : > { %v399_v27 = vsel %vm8432_vm3, %v394_v14, %v398_v4  ;;  %v2198_v32 = vor.u32 %v2197_v23, %v2194_v15  ;;  %v401_v33 = vshrl.u32 %v302_v8, 16  ;;  %v404_v35 = vshll.u32 %v302_v8, 16  ;;  %v306_v4 = vld [vmem:[%s8405_s10 + $0x28] sm:$0xf]  ;;  %v307_v15 = vld [vmem:[%s8405_s10 + $0x2c] sm:$0x1] }
  0x31   : > { %v6324_v31 = vcombine.low %v389_v22, %v399_v27  ;;  %v2208_v37 = vor.u32 %v2207_v28, %v2203_v24  ;;  %v410_v38 = vshll.u32 %v303_v13, 16  ;;  %v414_v39 = vshrl.u32 %v303_v13, 16  ;;  %v8516_v27 = vld [vmem:[%s8405_s10 + $0x34] sm:$0xf]  ;;  %v7724_v1 = vld [vmem:[%s11294_s2 + $0x80] sm:$0xff]  }
  0x32   : > { %v420_v40 = vshll.u32 %v304_v21, 16  ;;  %v2199_v41 = vrot.slane %v2198_v32, 4  ;;  %v403_v42 = vrot.slane %v401_v33, 4  ;;  %v406_v43 = vrot.slane %v404_v35, 5 }
  0x33   : > { %7039 = vmatmul.mubr.msk.bf16.vlgmr.msra.gmra.mrb[0].mxu1 %vm805_vm4, %v6324_v31  ;;  %v2216_v45 = vshrl.u32 %v8475_v26, 16  ;;  %v2209_v46 = vrot.slane %v2208_v37, 4  ;;  %v412_v48 = vrot.slane %v410_v38, 5  ;;  %v416_v49 = vrot.slane %v414_v39, 4  ;;  %v8524_v37 = vld [vmem:[%s8405_s10 + $0x38] sm:$0x1] }
  0x34   : > { %v422_v50 = vrot.slane %v420_v40, 5  ;;  %7071 = vmatpush3.bf16.msra.mxu1 %v8440_v47  ;;  %v2204_v52 = vsel %vm8432_vm3, %v2199_v41, %v2203_v24  ;;  %v407_v53 = vor.u32 %v406_v43, %v403_v42  ;;  %v2219_v55 = vshll.u32 %v8475_v26, 16  ;;  %v8521_v33 = vld [vmem:[%s11294_s2 + $0x74] ss:$0 sps:$4 sm:$0x33]  }
  0x35   : > { %v2218_v54 = vrot.slane %v2216_v45, 4  ;;  %7072 = vmatprep.subr.bf16.mxu1 %v7723_v36  ;;  %v2214_v58 = vsel %vm8432_vm3, %v2209_v46, %v2213_v29  ;;  %v417_v59 = vor.u32 %v416_v49, %v412_v48  ;;  %v2225_v60 = vshll.u32 %v8485_v44, 16  ;;  %v308_v43 = vld [vmem:[%s8405_s10 + $0x30] sm:$0xf] }
  0x36   : > { %v2229_v62 = vshrl.u32 %v8485_v44, 16  ;;  %v6543_v0 = vcombine.low %v2204_v52, %v2214_v58  ;;  %v408_v47 = vrot.slane %v407_v53, 4  ;;  %v2221_v2 = vrot.slane %v2219_v55, 5  ;;  %v309_v55 = vld [vmem:[%s8405_s10 + $0x34] sm:$0xf] }
  0x37   : > { %v2235_v3 = vshll.u32 %v8489_v51, 16  ;;  %v418_v8 = vrot.slane %v417_v59, 4  ;;  %v2227_v9 = vrot.slane %v2225_v60, 5  ;;  %v425_v11 = vshrl.u32 %v305_v57, 16 }
  0x38   : > { %v2231_v10 = vrot.slane %v2229_v62, 4  ;;  %7073 = vmatpush3.bf16.msra.mxu1 %v7723_v36  ;;  %7191 = vmatmul.mubr.msk.bf16.vlgmr.msra.gmra.mrb[0].mxu0 %vm805_vm4, %v6543_v0  ;;  %v413_v12 = vsel %vm8432_vm3, %v408_v47, %v412_v48  ;;  %v2222_v13 = vor.u32 %v2221_v2, %v2218_v54  ;;  %v428_v17 = vshll.u32 %v305_v57, 16  ;;  %v310_v2 = vld [vmem:[%s8405_s10 + $0x38] sm:$0x1] }
  0x39   : > { %v2237_v14 = vrot.slane %v2235_v3, 5  ;;  %7223 = vmatpush3.bf16.msra.mxu0 %v8396_v6  ;;  %v423_v21 = vsel %vm8432_vm3, %v418_v8, %v422_v50  ;;  %v427_v23 = vrot.slane %v425_v11, 4  ;;  %v434_v24 = vshll.u32 %v306_v4, 16 }
  0x3a   : > { %v2232_v22 = vor.u32 %v2231_v10, %v2227_v9  ;;  %v6325_v28 = vcombine.low %v413_v12, %v423_v21  ;;  %v2223_v29 = vrot.slane %v2222_v13, 4  ;;  %v430_v31 = vrot.slane %v428_v17, 5  ;;  %7224 = vmatprep.subr.bf16.mxu0 %v7719_v5  ;;  %v8545_v10 = vld [vmem:[%s8405_s10 + $0x3c] sm:$0xf] }
  0x3b   : > { %v438_v32 = vshrl.u32 %v306_v4, 16  ;;  %v436_v35 = vrot.slane %v434_v24, 5  ;;  %v444_v36 = vshll.u32 %v307_v15, 16  ;;  %v2240_v38 = vshrl.u32 %v8510_v20, 16  ;;  %v8550_v15 = vld [vmem:[%s8405_s10 + $0x40] sm:$0xf] }
  0x3c   : > { %v2233_v6 = vrot.slane %v2232_v22, 4  ;;  %7042 = vmatprep.mubr.msk.bf16.mxu1 %vm805_vm4, %v6325_v28  ;;  %v2228_v39 = vsel %vm8432_vm3, %v2223_v29, %v2227_v9  ;;  %v431_v40 = vor.u32 %v430_v31, %v427_v23  ;;  %v2243_v42 = vshll.u32 %v8510_v20, 16  ;;  %v8555_v31 = vld [vmem:[%s8405_s10 + $0x44] sm:$0x1] }
  0x3d   : > { %v440_v41 = vrot.slane %v438_v32, 4  ;;  %v446_v46 = vrot.slane %v444_v36, 5  ;;  %v2242_v48 = vrot.slane %v2240_v38, 4  ;;  %v2249_v49 = vshll.u32 %v8516_v27, 16  ;;  %7225 = vmatpush3.bf16.msra.mxu0 %v7719_v5 }
  0x3e   : > { %v2238_v45 = vsel %vm8432_vm3, %v2233_v6, %v2237_v14  ;;  %v432_v52 = vrot.slane %v431_v40, 4  ;;  %v2245_v54 = vrot.slane %v2243_v42, 5  ;;  %7642 = vmatprep.subr.msk.bf16.mxu0 %vm854_vm0, %v8521_v33  ;;  %v2253_v58 = vshrl.u32 %v8516_v27, 16  ;;  %v311_v6 = vld [vmem:[%s8405_s10 + $0x3c] sm:$0xf] }
  0x3f   : > { %v6544_v50 = vcombine.low %v2228_v39, %v2238_v45  ;;  %v441_v53 = vor.u32 %v440_v41, %v436_v35  ;;  %v2251_v57 = vrot.slane %v2249_v49, 5  ;;  %v2259_v59 = vshll.u32 %v8524_v37, 16  ;;  %v312_v40 = vld [vmem:[%s8405_s10 + $0x40] sm:$0xf] }
  0x40   : > { %v449_v60 = vshrl.u32 %v308_v43, 16  ;;  %v437_v62 = vsel %vm8432_vm3, %v432_v52, %v436_v35  ;;  %v2246_v47 = vor.u32 %v2245_v54, %v2242_v48  ;;  %v452_v3 = vshll.u32 %v308_v43, 16 }
  0x41   : > { %7194 = vmatprep.mubr.msk.bf16.mxu0 %vm805_vm4, %v6544_v50  ;;  %v442_v0 = vrot.slane %v441_v53, 4  ;;  %v2255_v4 = vrot.slane %v2253_v58, 4  ;;  %v2261_v5 = vrot.slane %v2259_v59, 5  ;;  %v458_v9 = vshll.u32 %v309_v55, 16  ;;  %v313_v59 = vld [vmem:[%s8405_s10 + $0x44] sm:$0x1] }
  0x42   : > { %v451_v8 = vrot.slane %v449_v60, 4  ;;  %v2247_v12 = vrot.slane %v2246_v47, 4  ;;  %v454_v13 = vrot.slane %v452_v3, 5  ;;  %v462_v14 = vshrl.u32 %v309_v55, 16 }
  0x43   : > { %v447_v11 = vsel %vm8432_vm3, %v442_v0, %v446_v46  ;;  %v2256_v21 = vor.u32 %v2255_v4, %v2251_v57  ;;  %v460_v22 = vrot.slane %v458_v9, 5  ;;  %v468_v23 = vshll.u32 %v310_v2, 16  ;;  %v8574_v4 = vld [vmem:[%s8405_s10 + $0x48] sm:$0xf] }
  0x44   : > { %v6326_v17 = vcombine.low %v437_v62, %v447_v11  ;;  %v2252_v24 = vsel %vm8432_vm3, %v2247_v12, %v2251_v57  ;;  %v455_v28 = vor.u32 %v454_v13, %v451_v8  ;;  %v464_v29 = vrot.slane %v462_v14, 4  ;;  %v8577_v12 = vld [vmem:[%s8405_s10 + $0x4c] sm:$0xf] }
  0x45   : > { %v2264_v32 = vshrl.u32 %v8545_v10, 16  ;;  %v2257_v35 = vrot.slane %v2256_v21, 4  ;;  %v470_v36 = vrot.slane %v468_v23, 5  ;;  %v2267_v38 = vshll.u32 %v8545_v10, 16 }
  0x46   : > { %7043 = vmatmul.mubr.msk.bf16.gmra.mrb[4].mxu1 %vm805_vm4, %v6326_v17  ;;  %v2273_v39 = vshll.u32 %v8550_v15, 16  ;;  %v456_v41 = vrot.slane %v455_v28, 4  ;;  %v465_v42 = vor.u32 %v464_v29, %v460_v22  ;;  %v2277_v45 = vshrl.u32 %v8550_v15, 16 }
  0x47   : > { %v2266_v43 = vrot.slane %v2264_v32, 4  ;;  %v2262_v46 = vsel %vm8432_vm3, %v2257_v35, %v2261_v5  ;;  %v2269_v48 = vrot.slane %v2267_v38, 5  ;;  %v2283_v50 = vshll.u32 %v8555_v31, 16  ;;  %v8588_v32 = vld [vmem:[%s8405_s10 + $0x48] sm:$0xf] }
  0x48   : > { %v2275_v49 = vrot.slane %v2273_v39, 5  ;;  %v6545_v52 = vcombine.low %v2252_v24, %v2262_v46  ;;  %v461_v53 = vsel %vm8432_vm3, %v456_v41, %v460_v22  ;;  %v466_v54 = vrot.slane %v465_v42, 4  ;;  %v8583_v24 = vld [vmem:[%s8405_s10 + $0x50] sm:$0x1] }
  0x49   : > { %v2279_v55 = vrot.slane %v2277_v45, 4  ;;  %v2270_v57 = vor.u32 %v2269_v48, %v2266_v43  ;;  %v2285_v58 = vrot.slane %v2283_v50, 5  ;;  %v473_v60 = vshrl.u32 %v311_v6, 16  ;;  %v8596_v43 = vld [vmem:[%s11294_s2 + $0x78] sm:$0xff]   ;;  %v8601_v50 = vld [vmem:[%s8405_s10 + $0x4c] sm:$0xf] }
  0x4a   : > { %v476_v62 = vshll.u32 %v311_v6, 16  ;;  %7195 = vmatmul.mubr.msk.bf16.gmra.mrb[4].mxu0 %vm805_vm4, %v6545_v52  ;;  %v471_v0 = vsel %vm8432_vm3, %v466_v54, %v470_v36  ;;  %v482_v2 = vshll.u32 %v312_v40, 16  ;;  %v486_v3 = vshrl.u32 %v312_v40, 16 }
  0x4b   : > { %v2280_v47 = vor.u32 %v2279_v55, %v2275_v49  ;;  %v6327_v5 = vcombine.low %v461_v53, %v471_v0  ;;  %v2271_v8 = vrot.slane %v2270_v57, 4  ;;  %v475_v9 = vrot.slane %v473_v60, 4  ;;  %v316_v55 = vld [vmem:[%s8405_s10 + $0x50] sm:$0x1] }
  0x4c   : > { %v478_v11 = vrot.slane %v476_v62, 5  ;;  %v484_v14 = vrot.slane %v482_v2, 5  ;;  %v488_v17 = vrot.slane %v486_v3, 4  ;;  %v492_v21 = vshll.u32 %v313_v59, 16 }
  0x4d   : > { %v2281_v13 = vrot.slane %v2280_v47, 4  ;;  %7046 = vmatprep.mubr.msk.bf16.mxu1 %vm805_vm4, %v6327_v5  ;;  %v2276_v22 = vsel %vm8432_vm3, %v2271_v8, %v2275_v49  ;;  %v2288_v28 = vshrl.u32 %v8574_v4, 16  ;;  %v2291_v29 = vshll.u32 %v8574_v4, 16  ;;  %v8617_v47 = vld [vmem:[%s8405_s10 + $0x58] sm:$0xf] }
  0x4e   : > { %v479_v23 = vor.u32 %v478_v11, %v475_v9  ;;  %v489_v35 = vor.u32 %v488_v17, %v484_v14  ;;  %v494_v36 = vrot.slane %v492_v21, 5  ;;  %v2297_v38 = vshll.u32 %v8577_v12, 16  ;;  %v8621_v8 = vld [vmem:[%s8405_s10 + $0x5c] sm:$0x1] }
  0x4f   : > { %v2286_v6 = vsel %vm8432_vm3, %v2281_v13, %v2285_v58  ;;  %v2290_v41 = vrot.slane %v2288_v28, 4  ;;  %v2293_v42 = vrot.slane %v2291_v29, 5  ;;  %v2301_v48 = vshrl.u32 %v8577_v12, 16  ;;  %v8611_v58 = vld [vmem:[%s8405_s10 + $0x54] sm:$0xf] }
  0x50   : > { %v6546_v39 = vcombine.low %v2276_v22, %v2286_v6  ;;  %v480_v40 = vrot.slane %v479_v23, 4  ;;  %v490_v45 = vrot.slane %v489_v35, 4  ;;  %v2299_v46 = vrot.slane %v2297_v38, 5 }
  0x51   : > { %v2307_v49 = vshll.u32 %v8583_v24, 16  ;;  %v2294_v53 = vor.u32 %v2293_v42, %v2290_v41  ;;  %v3110_v54 = vsel %vm854_vm0, %v8521_v33, 0  ;;  %v497_v57 = vshrl.u32 %v8588_v32, 16  ;;  %v8633_v41 = vld [vmem:[%s8405_s10 + $0x54] sm:$0xf] }
  0x52   : > { %7198 = vmatprep.mubr.msk.bf16.mxu0 %vm805_vm4, %v6546_v39  ;;  %v485_v52 = vsel %vm8432_vm3, %v480_v40, %v484_v14  ;;  %v495_v59 = vsel %vm8432_vm3, %v490_v45, %v494_v36  ;;  %v2303_v60 = vrot.slane %v2301_v48, 4  ;;  %7227 = vmatpush3.bf16.msra.mxu0 %v3110_v54  ;;  %v500_v0 = vshll.u32 %v8588_v32, 16 }
  0x53   : > { %v2309_v62 = vrot.slane %v2307_v49, 5  ;;  %v6328_v2 = vcombine.low %v485_v52, %v495_v59  ;;  %v2295_v3 = vrot.slane %v2294_v53, 4  ;;  %v499_v5 = vrot.slane %v497_v57, 4  ;;  %7260 = vmatprep.subr.bf16.mxu0 %v8596_v43  ;;  %v8639_v49 = vld [vmem:[%s8405_s10 + $0x58] sm:$0xf] }
  0x54   : > { %v506_v33 = vshll.u32 %v8601_v50, 16  ;;  %v2304_v9 = vor.u32 %v2303_v60, %v2299_v46  ;;  %v502_v11 = vrot.slane %v500_v0, 5  ;;  %v510_v13 = vshrl.u32 %v8601_v50, 16  ;;  %v319_v57 = vld [vmem:[%s8405_s10 + $0x5c] sm:$0x1] }
  0x55   : > { %v516_v14 = vshll.u32 %v316_v55, 16  ;;  %7047 = vmatmul.mubr.msk.bf16.gmra.mrb[8].mxu1 %vm805_vm4, %v6328_v2  ;;  %v2300_v17 = vsel %vm8432_vm3, %v2295_v3, %v2299_v46  ;;  %v2312_v22 = vshrl.u32 %v8611_v58, 16  ;;  %v2315_v23 = vshll.u32 %v8611_v58, 16  ;;  %v8643_v59 = vld [vmem:[%s8405_s10 + $0x60] sm:$0xf] }
  0x56   : > { %v508_v21 = vrot.slane %v506_v33, 5  ;;  %v2305_v28 = vrot.slane %v2304_v9, 4  ;;  %v503_v29 = vor.u32 %v502_v11, %v499_v5  ;;  %v512_v6 = vrot.slane %v510_v13, 4  ;;  %v8654_v11 = vld [vmem:[%s11294_s2 + $0x10] ss:$0 sps:$4 sm:$0x33]  }
  0x57   : > { %v518_v35 = vrot.slane %v516_v14, 5  ;;  %v2314_v36 = vrot.slane %v2312_v22, 4  ;;  %v2317_v38 = vrot.slane %v2315_v23, 5  ;;  %v2321_v39 = vshll.u32 %v8617_v47, 16  ;;  %v8660_v22 = vld [vmem:[%s8405_s10 + $0x64] sm:$0xf]  ;;  %7637 = vmatprep.subr.msk.bf16.mxu1 %vm854_vm0, %v8654_v11 }
  0x58   : > { %v2325_v40 = vshrl.u32 %v8617_v47, 16  ;;  %v2310_v42 = vsel %vm8432_vm3, %v2305_v28, %v2309_v62  ;;  %v504_v45 = vrot.slane %v503_v29, 4  ;;  %v513_v46 = vor.u32 %v512_v6, %v508_v21 }
  0x59   : > { %v2331_v48 = vshll.u32 %v8621_v8, 16  ;;  %v6547_v52 = vcombine.low %v2300_v17, %v2310_v42  ;;  %v2318_v53 = vor.u32 %v2317_v38, %v2314_v36  ;;  %v2323_v54 = vrot.slane %v2321_v39, 5  ;;  %v8667_v39 = vld [vmem:[%s8405_s10 + $0x68] sm:$0x1] }
  0x5a   : > { %v2327_v55 = vrot.slane %v2325_v40, 4  ;;  %v509_v60 = vsel %vm8432_vm3, %v504_v45, %v508_v21  ;;  %v514_v0 = vrot.slane %v513_v46, 4  ;;  %v521_v62 = vshrl.u32 %v8633_v41, 16 }
  0x5b   : > { %v2333_v2 = vrot.slane %v2331_v48, 5  ;;  %7199 = vmatmul.mubr.msk.bf16.gmra.mrb[8].mxu0 %vm805_vm4, %v6547_v52  ;;  %v2319_v3 = vrot.slane %v2318_v53, 4  ;;  %v524_v33 = vshll.u32 %v8633_v41, 16  ;;  %v530_v9 = vshll.u32 %v8639_v49, 16  ;;  %v8676_v52 = vld [vmem:[%s8405_s10 + $0x60] sm:$0xf] }
  0x5c   : > { %v2328_v5 = vor.u32 %v2327_v55, %v2323_v54  ;;  %v519_v13 = vsel %vm8432_vm3, %v514_v0, %v518_v35  ;;  %v523_v14 = vrot.slane %v521_v62, 4  ;;  %v534_v17 = vshrl.u32 %v8639_v49, 16 }
  0x5d   : > { %v540_v21 = vshll.u32 %v319_v57, 16  ;;  %v6329_v23 = vcombine.low %v509_v60, %v519_v13  ;;  %v2324_v28 = vsel %vm8432_vm3, %v2319_v3, %v2323_v54  ;;  %v526_v6 = vrot.slane %v524_v33, 5  ;;  %v8680_v60 = vld [vmem:[%s8405_s10 + $0x64] sm:$0xf] }
  0x5e   : > { %v2329_v29 = vrot.slane %v2328_v5, 4  ;;  %v532_v36 = vrot.slane %v530_v9, 5  ;;  %v536_v35 = vrot.slane %v534_v17, 4  ;;  %v2336_v40 = vshrl.u32 %v8643_v59, 16 }
  0x5f   : > { %v542_v38 = vrot.slane %v540_v21, 5  ;;  %7050 = vmatprep.mubr.msk.bf16.mxu1 %vm805_vm4, %v6329_v23  ;;  %v527_v45 = vor.u32 %v526_v6, %v523_v14  ;;  %v2339_v46 = vshll.u32 %v8643_v59, 16  ;;  %v2345_v48 = vshll.u32 %v8660_v22, 16  ;;  %v322_v23 = vld [vmem:[%s8405_s10 + $0x68] sm:$0x1] }
  0x60   : > { %v2334_v42 = vsel %vm8432_vm3, %v2329_v29, %v2333_v2  ;;  %v537_v54 = vor.u32 %v536_v35, %v532_v36  ;;  %v2338_v55 = vrot.slane %v2336_v40, 4  ;;  %v2349_v57 = vshrl.u32 %v8660_v22, 16 }
  0x61   : > { %v6548_v53 = vcombine.low %v2324_v28, %v2334_v42  ;;  %v528_v0 = vrot.slane %v527_v45, 4  ;;  %v2341_v62 = vrot.slane %v2339_v46, 5  ;;  %v2347_v3 = vrot.slane %v2345_v48, 5 }
  0x62   : > { %v2355_v2 = vshll.u32 %v8667_v39, 16  ;;  %v538_v5 = vrot.slane %v537_v54, 4  ;;  %v2351_v33 = vrot.slane %v2349_v57, 4  ;;  %v545_v9 = vshrl.u32 %v8676_v52, 16 }
  0x63   : > { %7202 = vmatprep.mubr.msk.bf16.mxu0 %vm805_vm4, %v6548_v53  ;;  %v548_v13 = vshll.u32 %v8676_v52, 16  ;;  %v533_v14 = vsel %vm8432_vm3, %v528_v0, %v532_v36  ;;  %v2342_v17 = vor.u32 %v2341_v62, %v2338_v55  ;;  %v554_v28 = vshll.u32 %v8680_v60, 16  ;;  %v8694_v53 = vld [vmem:[%s8405_s10 + $0x6c] sm:$0xf] }
  0x64   : > { %v2357_v21 = vrot.slane %v2355_v2, 5  ;;  %v543_v29 = vsel %vm8432_vm3, %v538_v5, %v542_v38  ;;  %v2352_v6 = vor.u32 %v2351_v33, %v2347_v3  ;;  %v547_v35 = vrot.slane %v545_v9, 4  ;;  %v8707_v5 = vld [vmem:[%s8405_s10 + $0x70] sm:$0xf] }
  0x65   : > { %v550_v40 = vrot.slane %v548_v13, 5  ;;  %v6330_v42 = vcombine.low %v533_v14, %v543_v29  ;;  %v2343_v45 = vrot.slane %v2342_v17, 4  ;;  %v556_v46 = vrot.slane %v554_v28, 5  ;;  %v325_v14 = vld [vmem:[%s8405_s10 + $0x74] sm:$0x1] }
  0x66   : > { %v558_v48 = vshrl.u32 %v8680_v60, 16  ;;  %v2353_v36 = vrot.slane %v2352_v6, 4  ;;  %v564_v55 = vshll.u32 %v322_v23, 16  ;;  %v6577_v62 = vrot.slane %v8413_v16, 9  ;;  %v8716_v16 = vld [vmem:[%s8405_s10 + $0x78] sm:$0xf] }
  0x67   : > { %v551_v54 = vor.u32 %v550_v40, %v547_v35  ;;  %7051 = vmatmul.mubr.msk.bf16.gmra.mrb[12].mxu1 %vm805_vm4, %v6330_v42  ;;  %v2348_v38 = vsel %vm8432_vm3, %v2343_v45, %v2347_v3  ;;  %v2882_v2 = vrot.slane %v8416_v18, 5  ;;  %v569_v3 = vshrl.u32 %v8694_v53, 16 }
  0x68   : > { %v560_v57 = vrot.slane %v558_v48, 4  ;;  %v2358_v33 = vsel %vm8432_vm3, %v2353_v36, %v2357_v21  ;;  %v566_v13 = vrot.slane %v564_v55, 5  ;;  %v572_v21 = vshll.u32 %v8694_v53, 16 }
  0x69   : > { %v552_v9 = vrot.slane %v551_v54, 4  ;;  %v6549_v17 = vcombine.low %v2348_v38, %v2358_v33  ;;  %v2883_v28 = vsel %vm8700_vm7, %v6577_v62, %v2882_v2  ;;  %v2884_v29 = vrot.slane %v2882_v2, 4  ;;  %v8730_v38 = vld [vmem:[%s8405_s10 + $0x7c] sm:$0xf] }
  0x6a   : > { %v561_v23 = vor.u32 %v560_v57, %v556_v46  ;;  %v571_v6 = vrot.slane %v569_v3, 4  ;;  %v578_v35 = vshll.u32 %v8707_v5, 16  ;;  %v582_v45 = vshrl.u32 %v8707_v5, 16 }
  0x6b   : > { %v557_v18 = vsel %vm8432_vm3, %v552_v9, %v556_v46  ;;  %7203 = vmatmul.mubr.msk.bf16.gmra.mrb[12].mxu0 %vm805_vm4, %v6549_v17  ;;  %v2886_v42 = vsel %vm8700_vm7, %v2884_v29, %v2885_v63  ;;  %v588_v48 = vshll.u32 %v325_v14, 16  ;;  %v574_v54 = vrot.slane %v572_v21, 5  ;;  %v328_v9 = vld [vmem:[%s8405_s10 + $0x80] sm:$0x1] }
  0x6c   : > { %v562_v40 = vrot.slane %v561_v23, 4  ;;  %v6598_v36 = vcombine.low %v2883_v28, %v2886_v42  ;;  %v580_v46 = vrot.slane %v578_v35, 5  ;;  %v6578_v55 = vrot.slane %v8447_v56, 9 }
  0x6d   : > { %v584_v62 = vrot.slane %v582_v45, 4  ;;  %v590_v2 = vrot.slane %v588_v48, 5  ;;  %v2891_v19 = vrot.slane %v2889_v25, 4  ;;  %v575_v33 = vor.u32 %v574_v54, %v571_v6 }
  0x6e   : > { %v567_v57 = vsel %vm8432_vm3, %v562_v40, %v566_v13  ;;  %7228 = vmatprep.mubr.msk.bf16.mxu0 %vm805_vm4, %v6598_v36  ;;  %v2890_v56 = vsel %vm8700_vm7, %v6578_v55, %v2889_v25  ;;  %v593_v14 = vshrl.u32 %v8716_v16, 16  ;;  %v596_v17 = vshll.u32 %v8716_v16, 16  ;;  %v8758_v40 = vld [vmem:[%s8405_s10 + $0x88] sm:$0xf] }
  0x6f   : > { %v6331_v63 = vcombine.low %v557_v18, %v567_v57  ;;  %v585_v13 = vor.u32 %v584_v62, %v580_v46  ;;  %v2893_v3 = vsel %vm8700_vm7, %v2891_v19, %v2892_v30  ;;  %v602_v23 = vshll.u32 %v8730_v38, 16  ;;  %v8752_v18 = vld [vmem:[%s8405_s10 + $0x84] sm:$0xf]  ;;  %v331_v19 = vld [vmem:[%s8405_s10 + $0x8c] sm:$0x1] }
  0x70   : > { %v576_v61 = vrot.slane %v575_v33, 4  ;;  %v6599_v28 = vcombine.low %v2890_v56, %v2893_v3  ;;  %v595_v29 = vrot.slane %v593_v14, 4  ;;  %v606_v25 = vshrl.u32 %v8730_v38, 16 }
  0x71   : > { %7054 = vmatprep.mubr.msk.bf16.mxu1 %vm805_vm4, %v6331_v63  ;;  %v586_v6 = vrot.slane %v585_v13, 4  ;;  %v598_v30 = vrot.slane %v596_v17, 5  ;;  %v604_v21 = vrot.slane %v602_v23, 5  ;;  %v612_v35 = vshll.u32 %v328_v9, 16  ;;  %v8785_v17 = vld [vmem:[%s8405_s10 + $0x90] sm:$0xf] }
  0x72   : > { %v581_v42 = vsel %vm8432_vm3, %v576_v61, %v580_v46  ;;  %v608_v45 = vrot.slane %v606_v25, 4  ;;  %v6579_v48 = vrot.slane %v8475_v26, 9  ;;  %v2896_v36 = vrot.slane %v8485_v44, 5  ;;  %v8775_v44 = vld [vmem:[%s11294_s2 + $0x88] ss:$0 sps:$4 sm:$0x33]  }
  0x73   : > { %v591_v54 = vsel %vm8432_vm3, %v586_v6, %v590_v2  ;;  %7229 = vmatmul.mubr.msk.bf16.vlgmr.msra.gmra.mrb[0].mxu0 %vm805_vm4, %v6599_v28  ;;  %v599_v55 = vor.u32 %v598_v30, %v595_v29  ;;  %v614_v57 = vrot.slane %v612_v35, 5  ;;  %v2899_v62 = vrot.slane %v8489_v51, 5  ;;  %v8790_v25 = vld [vmem:[%s8405_s10 + $0x94] sm:$0xf] }
  0x74   : > { %v6332_v63 = vcombine.low %v581_v42, %v591_v54  ;;  %7261 = vmatpush3.bf16.msra.mxu0 %v8596_v43  ;;  %v609_v46 = vor.u32 %v608_v45, %v604_v21  ;;  %v2897_v26 = vsel %vm8700_vm7, %v6579_v48, %v2896_v36  ;;  %v2898_v33 = vrot.slane %v2896_v36, 4 }
  0x75   : > { %v600_v2 = vrot.slane %v599_v55, 4  ;;  %v617_v56 = vshrl.u32 %v8752_v18, 16  ;;  %v620_v51 = vshll.u32 %v8752_v18, 16  ;;  %v626_v9 = vshll.u32 %v8758_v40, 16  ;;  %7262 = vmatprep.subr.bf16.mxu0 %v7724_v1 }
  0x76   : > { %7055 = vmatmul.mubr.msk.bf16.gmra.mrb[16].mxu1 %vm805_vm4, %v6332_v63  ;;  %v610_v43 = vrot.slane %v609_v46, 4  ;;  %v2900_v14 = vsel %vm8700_vm7, %v2898_v33, %v2899_v62  ;;  %v630_v13 = vshrl.u32 %v8758_v40, 16  ;;  %v636_v3 = vshll.u32 %v331_v19, 16  ;;  %v334_v62 = vld [vmem:[%s8405_s10 + $0x98] sm:$0x1] }
  0x77   : > { %v605_v23 = vsel %vm8432_vm3, %v600_v2, %v604_v21  ;;  %v6600_v61 = vcombine.low %v2897_v26, %v2900_v14  ;;  %v619_v28 = vrot.slane %v617_v56, 4  ;;  %v622_v29 = vrot.slane %v620_v51, 5 }
  0x78   : > { %v615_v6 = vsel %vm8432_vm3, %v610_v43, %v614_v57  ;;  %v628_v30 = vrot.slane %v626_v9, 5  ;;  %v632_v35 = vrot.slane %v630_v13, 4  ;;  %v638_v42 = vrot.slane %v636_v3, 5  ;;  %7263 = vmatpush3.bf16.msra.mxu0 %v7724_v1  ;;  %v8813_v43 = vld [vmem:[%s8405_s10 + $0x9c] sm:$0xf] }
  0x79   : > { %v6333_v45 = vcombine.low %v605_v23, %v615_v6  ;;  %7232 = vmatprep.mubr.msk.bf16.mxu0 %vm805_vm4, %v6600_v61  ;;  %v623_v48 = vor.u32 %v622_v29, %v619_v28  ;;  %v6580_v36 = vrot.slane %v8510_v20, 9  ;;  %v2903_v21 = vrot.slane %v8516_v27, 5  ;;  %7643 = vmatprep.subr.msk.bf16.mxu0 %vm854_vm0, %v8775_v44  ;;  %v8818_v61 = vld [vmem:[%s8405_s10 + $0xa0] sm:$0xf] }
  0x7a   : > { %v633_v54 = vor.u32 %v632_v35, %v628_v30  ;;  %v2906_v55 = vrot.slane %v8524_v37, 5  ;;  %v641_v57 = vshrl.u32 %v8785_v17, 16  ;;  %v644_v1 = vshll.u32 %v8785_v17, 16  ;;  %v337_v35 = vld [vmem:[%s8405_s10 + $0xa4] sm:$0x1] }
  0x7b   : > { %7058 = vmatprep.mubr.msk.bf16.mxu1 %vm805_vm4, %v6333_v45  ;;  %v624_v19 = vrot.slane %v623_v48, 4  ;;  %v2904_v20 = vsel %vm8700_vm7, %v6580_v36, %v2903_v21  ;;  %v2905_v27 = vrot.slane %v2903_v21, 4  ;;  %v650_v63 = vshll.u32 %v8790_v25, 16 }
  0x7c   : > { %v634_v46 = vrot.slane %v633_v54, 4  ;;  %v643_v26 = vrot.slane %v641_v57, 4  ;;  %v646_v33 = vrot.slane %v644_v1, 5  ;;  %v654_v37 = vshrl.u32 %v8790_v25, 16 }
  0x7d   : > { %v629_v2 = vsel %vm8432_vm3, %v624_v19, %v628_v30  ;;  %v2907_v56 = vsel %vm8700_vm7, %v2905_v27, %v2906_v55  ;;  %v652_v51 = vrot.slane %v650_v63, 5  ;;  %v660_v9 = vshll.u32 %v334_v62, 16  ;;  %v8837_v63 = vld [vmem:[%s8405_s10 + $0xa8] sm:$0xf] }
  0x7e   : > { %v639_v14 = vsel %vm8432_vm3, %v634_v46, %v638_v42  ;;  %v6601_v13 = vcombine.low %v2904_v20, %v2907_v56  ;;  %v647_v3 = vor.u32 %v646_v33, %v643_v26  ;;  %v656_v23 = vrot.slane %v654_v37, 4 }
  0x7f   : > { %v6334_v28 = vcombine.low %v629_v2, %v639_v14  ;;  %v662_v29 = vrot.slane %v660_v9, 5  ;;  %v6581_v6 = vrot.slane %v8545_v10, 9  ;;  %v2910_v30 = vrot.slane %v8550_v15, 5  ;;  %v8843_v2 = vld [vmem:[%s8405_s10 + $0xac] sm:$0xf] }
  0x80   : > { %7233 = vmatmul.mubr.msk.bf16.gmra.mrb[4].mxu0 %vm805_vm4, %v6601_v13  ;;  %v648_v45 = vrot.slane %v647_v3, 4  ;;  %v657_v48 = vor.u32 %v656_v23, %v652_v51  ;;  %v2913_v36 = vrot.slane %v8555_v31, 5  ;;  %v665_v42 = vshrl.u32 %v8813_v43, 16  ;;  %v340_v23 = vld [vmem:[%s8405_s10 + $0xb0] sm:$0x1] }
  0x81   : > { %7059 = vmatmul.mubr.msk.bf16.gmra.mrb[20].mxu1 %vm805_vm4, %v6334_v28  ;;  %v2911_v21 = vsel %vm8700_vm7, %v6581_v6, %v2910_v30  ;;  %v2912_v54 = vrot.slane %v2910_v30, 4  ;;  %v668_v10 = vshll.u32 %v8813_v43, 16  ;;  %v674_v15 = vshll.u32 %v8818_v61, 16 }
  0x82   : > { %v653_v55 = vsel %vm8432_vm3, %v648_v45, %v652_v51  ;;  %v658_v62 = vrot.slane %v657_v48, 4  ;;  %v667_v57 = vrot.slane %v665_v42, 4  ;;  %v678_v31 = vshrl.u32 %v8818_v61, 16 }
  0x83   : > { %v2914_v1 = vsel %vm8700_vm7, %v2912_v54, %v2913_v36  ;;  %v670_v19 = vrot.slane %v668_v10, 5  ;;  %v676_v20 = vrot.slane %v674_v15, 5  ;;  %v684_v27 = vshll.u32 %v337_v35, 16  ;;  %v8861_v10 = vld [vmem:[%s8405_s10 + $0xb4] sm:$0xf] }
  0x84   : > { %v663_v46 = vsel %vm8432_vm3, %v658_v62, %v662_v29  ;;  %v6602_v26 = vcombine.low %v2911_v21, %v2914_v1  ;;  %v680_v33 = vrot.slane %v678_v31, 4  ;;  %v6582_v37 = vrot.slane %v8574_v4, 9  ;;  %v8866_v31 = vld [vmem:[%s8405_s10 + $0xb8] sm:$0xf] }
  0x85   : > { %v6335_v56 = vcombine.low %v653_v55, %v663_v46  ;;  %v671_v51 = vor.u32 %v670_v19, %v667_v57  ;;  %v686_v9 = vrot.slane %v684_v27, 5  ;;  %v2917_v14 = vrot.slane %v8577_v12, 5 }
  0x86   : > { %7236 = vmatprep.mubr.msk.bf16.mxu0 %vm805_vm4, %v6602_v26  ;;  %v681_v13 = vor.u32 %v680_v33, %v676_v20  ;;  %v2920_v3 = vrot.slane %v8583_v24, 5  ;;  %v689_v28 = vshrl.u32 %v8837_v63, 16  ;;  %v692_v29 = vshll.u32 %v8837_v63, 16 }
  0x87   : > { %7062 = vmatprep.mubr.msk.bf16.mxu1 %vm805_vm4, %v6335_v56  ;;  %v672_v4 = vrot.slane %v671_v51, 4  ;;  %v2918_v6 = vsel %vm8700_vm7, %v6582_v37, %v2917_v14  ;;  %v2919_v30 = vrot.slane %v2917_v14, 4  ;;  %v698_v12 = vshll.u32 %v8843_v2, 16  ;;  %v343_v37 = vld [vmem:[%s8405_s10 + $0xbc] sm:$0x1] }
  0x88   : > { %v682_v35 = vrot.slane %v681_v13, 4  ;;  %v691_v45 = vrot.slane %v689_v28, 4  ;;  %v694_v48 = vrot.slane %v692_v29, 5  ;;  %v702_v24 = vshrl.u32 %v8843_v2, 16 }
  0x89   : > { %v677_v36 = vsel %vm8432_vm3, %v672_v4, %v676_v20  ;;  %v2921_v42 = vsel %vm8700_vm7, %v2919_v30, %v2920_v3  ;;  %v700_v21 = vrot.slane %v698_v12, 5  ;;  %v708_v54 = vshll.u32 %v340_v23, 16 }
  0x8a   : > { %v687_v15 = vsel %vm8432_vm3, %v682_v35, %v686_v9  ;;  %v6603_v55 = vcombine.low %v2918_v6, %v2921_v42  ;;  %v695_v62 = vor.u32 %v694_v48, %v691_v45  ;;  %v704_v57 = vrot.slane %v702_v24, 4  ;;  %v6473_v6 = vld [vmem:[%s8405_s10 + $0x6c] sm:$0xf]  ;;  %v6474_v48 = vld [vmem:[%s8405_s10 + $0x70] sm:$0xf] }
  0x8b   : > { %v6336_v1 = vcombine.low %v677_v36, %v687_v15  ;;  %v710_v19 = vrot.slane %v708_v54, 5  ;;  %v6583_v20 = vrot.slane %v8611_v58, 9  ;;  %v2924_v27 = vrot.slane %v8617_v47, 5  ;;  %v8892_v24 = vld [vmem:[%s11294_s2 + $0x28] sm:$0xff]   ;;  %v6475_v15 = vld [vmem:[%s8405_s10 + $0x74] sm:$0x1] }
  0x8c   : > { %7237 = vmatmul.mubr.msk.bf16.gmra.mrb[8].mxu0 %vm805_vm4, %v6603_v55  ;;  %v696_v46 = vrot.slane %v695_v62, 4  ;;  %v705_v26 = vor.u32 %v704_v57, %v700_v21  ;;  %v2927_v33 = vrot.slane %v8621_v8, 5  ;;  %v713_v56 = vshrl.u32 %v8861_v10, 16 }
  0x8d   : > { %7063 = vmatmul.mubr.msk.bf16.gmra.mrb[24].mxu1 %vm805_vm4, %v6336_v1  ;;  %v2925_v51 = vsel %vm8700_vm7, %v6583_v20, %v2924_v27  ;;  %v2926_v9 = vrot.slane %v2924_v27, 4  ;;  %v716_v58 = vshll.u32 %v8861_v10, 16  ;;  %v722_v47 = vshll.u32 %v8866_v31, 16 }
  0x8e   : > { %v701_v14 = vsel %vm8432_vm3, %v696_v46, %v700_v21  ;;  %v706_v13 = vrot.slane %v705_v26, 4  ;;  %v715_v8 = vrot.slane %v713_v56, 4  ;;  %v726_v3 = vshrl.u32 %v8866_v31, 16  ;;  %v6477_v56 = vld [vmem:[%s8405_s10 + $0x7c] sm:$0xf] }
  0x8f   : > { %v2928_v23 = vsel %vm8700_vm7, %v2926_v9, %v2927_v33  ;;  %v718_v28 = vrot.slane %v716_v58, 5  ;;  %v724_v29 = vrot.slane %v722_v47, 5  ;;  %v732_v4 = vshll.u32 %v343_v37, 16  ;;  %v6476_v37 = vld [vmem:[%s8405_s10 + $0x78] sm:$0xf] }
  0x90   : > { %v711_v30 = vsel %vm8432_vm3, %v706_v13, %v710_v19  ;;  %v6604_v12 = vcombine.low %v2925_v51, %v2928_v23  ;;  %v728_v35 = vrot.slane %v726_v3, 4  ;;  %v6584_v45 = vrot.slane %v8643_v59, 9  ;;  %v8915_v58 = vld [vmem:[%s8405_s10] sm:$0xf]  ;;  %v8918_v47 = vld [vmem:[%s8405_s10 + $0x4] sm:$0xf] }
  0x91   : > { %v6337_v36 = vcombine.low %v701_v14, %v711_v30  ;;  %v719_v42 = vor.u32 %v718_v28, %v715_v8  ;;  %v734_v21 = vrot.slane %v732_v4, 5  ;;  %v2931_v54 = vrot.slane %v8660_v22, 5  ;;  %v6478_v13 = vld [vmem:[%s8405_s10 + $0x80] sm:$0x1]  ;;  %v6479_v23 = vld [vmem:[%s8405_s10 + $0x84] sm:$0xf] }
  0x92   : > { %7240 = vmatprep.mubr.msk.bf16.mxu0 %vm805_vm4, %v6604_v12  ;;  %v729_v55 = vor.u32 %v728_v35, %v724_v29  ;;  %v2934_v62 = vrot.slane %v8667_v39, 5  ;;  %v1163_v59 = vsel %vm854_vm0, %v8654_v11, 0  ;;  %v6585_v57 = vrot.slane %v6473_v6, 9  ;;  %v6480_v28 = vld [vmem:[%s8405_s10 + $0x88] sm:$0xf] }
  0x93   : > { %7066 = vmatprep.mubr.msk.bf16.mxu1 %vm805_vm4, %v6337_v36  ;;  %v720_v1 = vrot.slane %v719_v42, 4  ;;  %v2932_v19 = vsel %vm8700_vm7, %v6584_v45, %v2931_v54  ;;  %v2933_v22 = vrot.slane %v2931_v54, 4  ;;  %7075 = vmatpush3.bf16.msra.mxu1 %v1163_v59  ;;  %v2938_v20 = vrot.slane %v6474_v48, 5  ;;  %v6481_v6 = vld [vmem:[%s8405_s10 + $0x8c] sm:$0x1] }
  0x94   : > { %v730_v27 = vrot.slane %v729_v55, 4  ;;  %v2941_v39 = vrot.slane %v6475_v15, 5  ;;  %7108 = vmatprep.subr.bf16.mxu1 %v8892_v24  ;;  %v6358_v14 = vcombine.low %v8915_v58, %v8918_v47  ;;  %v6586_v4 = vrot.slane %v6476_v37, 9  ;;  %v6483_v35 = vld [vmem:[%s8405_s10 + $0x94] sm:$0xf]  ;;  %v8934_v45 = vld [vmem:[%s11294_s2 + $0x8c] sm:$0xff]  }
  0x95   : > { %v725_v11 = vsel %vm8432_vm3, %v720_v1, %v724_v29  ;;  %v2935_v46 = vsel %vm8700_vm7, %v2933_v22, %v2934_v62  ;;  %v2939_v26 = vsel %vm8700_vm7, %v6585_v57, %v2938_v20  ;;  %v2940_v33 = vrot.slane %v2938_v20, 4  ;;  %v6482_v42 = vld [vmem:[%s8405_s10 + $0x90] sm:$0xf]  ;;  %v6485_v62 = vld [vmem:[%s8405_s10 + $0x9c] sm:$0xf] }
  0x96   : > { %v735_v51 = vsel %vm8432_vm3, %v730_v27, %v734_v21  ;;  %v6605_v9 = vcombine.low %v2932_v19, %v2935_v46  ;;  %v2945_v30 = vrot.slane %v6477_v56, 5  ;;  %v2948_v12 = vrot.slane %v6478_v13, 5  ;;  %v6484_v21 = vld [vmem:[%s8405_s10 + $0x98] sm:$0x1]  ;;  %v8944_v59 = vld [vmem:[%s8405_s10 + $0xc] sm:$0xf] }
  0x97   : > { %v6338_v8 = vcombine.low %v725_v11, %v735_v51  ;;  %v2942_v3 = vsel %vm8700_vm7, %v2940_v33, %v2941_v39  ;;  %v6587_v48 = vrot.slane %v6479_v23, 9  ;;  %v2952_v36 = vrot.slane %v6480_v28, 5  ;;  %v8947_v57 = vld [vmem:[%s8405_s10 + $0x10] sm:$0xf]  ;;  %v6486_v27 = vld [vmem:[%s8405_s10 + $0xa0] sm:$0xf] }
  0x98   : > { %7241 = vmatmul.mubr.msk.bf16.gmra.mrb[12].mxu0 %vm805_vm4, %v6605_v9  ;;  %v6606_v29 = vcombine.low %v2939_v26, %v2942_v3  ;;  %v2946_v54 = vsel %vm8700_vm7, %v6586_v4, %v2945_v30  ;;  %v2947_v15 = vrot.slane %v2945_v30, 4  ;;  %v2955_v55 = vrot.slane %v6481_v6, 5  ;;  %v6487_v39 = vld [vmem:[%s8405_s10 + $0xa4] sm:$0x1]  ;;  %v8960_v56 = vld [vmem:[%s8405_s10 + $0x18] sm:$0xf] }
  0x99   : > { %7067 = vmatmul.mubr.msk.bf16.gmra.mrb[28].mxu1 %vm805_vm4, %v6338_v8  ;;  %v6359_v1 = vcombine.low %v8944_v59, %v8947_v57  ;;  %v2953_v19 = vsel %vm8700_vm7, %v6587_v48, %v2952_v36  ;;  %v2954_v22 = vrot.slane %v2952_v36, 4  ;;  %v2959_v20 = vrot.slane %v6483_v35, 5  ;;  %v8963_v51 = vld [vmem:[%s8405_s10 + $0x1c] sm:$0xf]  ;;  %v6489_v8 = vld [vmem:[%s8405_s10 + $0xac] sm:$0xf] }
  0x9a   : > { %7076 = vmatprep.mubr.msk.bf16.mxu1 %vm805_vm4, %v6358_v14  ;;  %7244 = vmatprep.mubr.msk.bf16.mxu0 %vm805_vm4, %v6606_v29  ;;  %v2949_v11 = vsel %vm8700_vm7, %v2947_v15, %v2948_v12  ;;  %v6588_v46 = vrot.slane %v6482_v42, 9  ;;  %v2962_v26 = vrot.slane %v6484_v21, 5  ;;  %v3507_v33 = vsel %vm854_vm0, %v8775_v44, 0  ;;  %v7745_v29 = vld [vmem:[%s11294_s2 + $0x30] sm:$0xff]   ;;  %v6492_v4 = vld [vmem:[%s8405_s10 + $0xb8] sm:$0xf] }
  0x9b   : > { %v6607_v37 = vcombine.low %v2946_v54, %v2949_v11  ;;  %v6360_v9 = vcombine.low %v8960_v56, %v8963_v51  ;;  %v2956_v14 = vsel %vm8700_vm7, %v2954_v22, %v2955_v55  ;;  %v2961_v13 = vrot.slane %v2959_v20, 4  ;;  %7265 = vmatpush3.bf16.msra.mxu0 %v3507_v33  ;;  %v6488_v36 = vld [vmem:[%s8405_s10 + $0xa8] sm:$0xf]  ;;  %v6490_v42 = vld [vmem:[%s8405_s10 + $0xb0] sm:$0x1] }
  0x9c   : > { %v6608_v3 = vcombine.low %v2953_v19, %v2956_v14  ;;  %v6589_v23 = vrot.slane %v6485_v62, 9  ;;  %v2966_v44 = vrot.slane %v6486_v27, 5  ;;  %v2969_v28 = vrot.slane %v6487_v39, 5  ;;  %7298 = vmatprep.subr.bf16.mxu0 %v8934_v45  ;;  %v6491_v21 = vld [vmem:[%s8405_s10 + $0xb4] sm:$0xf] }
  0x9d   : > { %v2960_v6 = vsel %vm8700_vm7, %v6588_v46, %v2959_v20  ;;  %v2963_v30 = vsel %vm8700_vm7, %v2961_v13, %v2962_v26  ;;  %v2973_v35 = vrot.slane %v6489_v8, 5  ;;  %v6493_v15 = vld [vmem:[%s8405_s10 + $0xbc] sm:$0x1]  ;;  %v2980_v55 = vrot.slane %v6492_v4, 5  ;;  %v8999_v19 = vld [vmem:[%s8405_s10 + $0x28] sm:$0xf] }
  0x9e   : > { %v2968_v12 = vrot.slane %v2966_v44, 4  ;;  %v2967_v48 = vsel %vm8700_vm7, %v6589_v23, %v2966_v44  ;;  %v7755_v62 = vld [vmem:[%s11294_s2 + $0x38] ss:$0 sps:$4 sm:$0x33]   ;;  %v6609_v20 = vcombine.low %v2960_v6, %v2963_v30  ;;  %v6590_v27 = vrot.slane %v6488_v36, 9 }
  0x9f   : > { %v2975_v39 = vrot.slane %v2973_v35, 4  ;;  %v2976_v11 = vrot.slane %v6490_v42, 5  ;;  %v9004_v46 = vld [vmem:[%s8405_s10 + $0x30] sm:$0xf]  ;;  %v9007_v26 = vld [vmem:[%s8405_s10 + $0x34] sm:$0xf] }
  0xa0   : > { %7245 = vmatmul.mubr.msk.bf16.gmra.mrb[16].mxu0 %vm805_vm4, %v6607_v37  ;;  %v2970_v54 = vsel %vm8700_vm7, %v2968_v12, %v2969_v28  ;;  %v6362_v33 = vcombine.low %v9004_v46, %v9007_v26  ;;  %v6591_v37 = vrot.slane %v6491_v21, 9  ;;  %v2983_v14 = vrot.slane %v6493_v15, 5  ;;  %v6495_v13 = vld [vmem:[%s8405_s10 + $0xc4] sm:$0xf]  ;;  %v6496_v4 = vld [vmem:[%s8405_s10 + $0xc8] sm:$0x1] }
  0xa1   : > { %7077 = vmatmul.mubr.msk.bf16.vlgmr.msra.gmra.mrb[0].mxu1 %vm805_vm4, %v6359_v1  ;;  %7248 = vmatprep.mubr.msk.bf16.mxu0 %vm805_vm4, %v6608_v3  ;;  %v8996_v1 = vld [vmem:[%s8405_s10 + $0x24] sm:$0xf]  ;;  %v2974_v8 = vsel %vm8700_vm7, %v6590_v27, %v2973_v35  ;;  %v2977_v3 = vsel %vm8700_vm7, %v2975_v39, %v2976_v11  ;;  %v2987_v23 = vrot.slane %v6495_v13, 5  ;;  %v9028_v6 = vld [vmem:[%s8405_s10 + $0x3c] sm:$0xf]  ;;  %v2990_v21 = vrot.slane %v6496_v4, 5 }
  0xa2   : > { %7080 = vmatprep.mubr.msk.bf16.mxu1 %vm805_vm4, %v6360_v9  ;;  %7109 = vmatpush3.bf16.msra.mxu1 %v8892_v24  ;;  %v6361_v22 = vcombine.low %v8996_v1, %v8999_v19  ;;  %v6610_v24 = vcombine.low %v2967_v48, %v2970_v54  ;;  %v2982_v9 = vrot.slane %v2980_v55, 4  ;;  %v2981_v44 = vsel %vm8700_vm7, %v6591_v37, %v2980_v55  ;;  %v9031_v30 = vld [vmem:[%s8405_s10 + $0x40] sm:$0xf]  ;;  %v9068_v11 = vld [vmem:[%s8405_s10 + $0x24] sm:$0xf] }
  0xa3   : > { %7110 = vmatprep.subr.bf16.mxu1 %v7745_v29  ;;  %v6363_v12 = vcombine.low %v9028_v6, %v9031_v30  ;;  %v6611_v35 = vcombine.low %v2974_v8, %v2977_v3  ;;  %v2989_v42 = vrot.slane %v2987_v23, 4  ;;  %v6364_v54 = vcombine.low %v8588_v32, %v8601_v50  ;;  %v9040_v15 = vld [vmem:[%s11294_s2 + $0x3c] sm:$0xff]   ;;  %v9052_v50 = vld [vmem:[%s8405_s10 + $0x18] sm:$0xf]  ;;  %v9112_v8 = vld [vmem:[%s8405_s10 + $0x8] sm:$0x1] }
  0xa4   : > { %v2984_v28 = vsel %vm8700_vm7, %v2982_v9, %v2983_v14  ;;  %v1575_v32 = vsel %vm854_vm0, %v7755_v62, 0  ;;  %v6365_v27 = vcombine.low %v8633_v41, %v8639_v49  ;;  %v9075_v41 = vld [vmem:[%s8405_s10 + $0x30] sm:$0xf]  ;;  %v9078_v49 = vld [vmem:[%s8405_s10 + $0x34] sm:$0xf]  ;;  %v6368_v37 = vcombine.low %v8716_v16, %v8730_v38 }
  0xa5   : > { %v6612_v48 = vcombine.low %v2981_v44, %v2984_v28  ;;  %v6688_v9 = vcombine.low %v9075_v41, %v9078_v49  ;;  %v7750_v14 = vld [vmem:[%s11294_s2 + $0x94] sm:$0xff]   ;;  %v9095_v13 = vld [vmem:[%s8405_s10 + $0x3c] sm:$0xf]  ;;  %v9106_v16 = vld [vmem:[%s8405_s10 + $0x4c] sm:$0xf]  ;;  %v1354_v3 = vrot.slane %v8947_v57, 5 }
  0xa6   : > { %7111 = vmatpush3.bf16.msra.mxu1 %v7745_v29  ;;  %v6494_v29 = vld [vmem:[%s8405_s10 + $0xc0] sm:$0xf]  ;;  %v7760_v38 = vld [vmem:[%s11294_s2 + $0x9c] ss:$0 sps:$4 sm:$0x33]   ;;  %v3703_v28 = vshrl.u32 %v9052_v50, 16 }
  0xa7   : > { %7638 = vmatprep.subr.msk.bf16.mxu1 %vm854_vm0, %v7755_v62  ;;  %v6592_v36 = vrot.slane %v6494_v29, 9  ;;  %v6366_v62 = vcombine.low %v8676_v52, %v8680_v60  ;;  %v6367_v60 = vcombine.low %v8694_v53, %v8707_v5  ;;  %v9098_v53 = vld [vmem:[%s8405_s10 + $0x40] sm:$0xf]  ;;  %v9101_v5 = vld [vmem:[%s8405_s10 + $0x48] sm:$0xf]  ;;  %v3706_v29 = vshll.u32 %v9052_v50, 16 }
  0xa8   : > { %7249 = vmatmul.mubr.msk.bf16.gmra.mrb[20].mxu0 %vm805_vm4, %v6609_v20  ;;  %v9055_v20 = vld [vmem:[%s8405_s10 + $0x1c] sm:$0xf] }
  0xa9   : > { %7081 = vmatmul.mubr.msk.bf16.gmra.mrb[4].mxu1 %vm805_vm4, %v6361_v22  ;;  %7252 = vmatprep.mubr.msk.bf16.mxu0 %vm805_vm4, %v6610_v24  ;;  %v2988_v55 = vsel %vm8700_vm7, %v6592_v36, %v2987_v23  ;;  %v2991_v22 = vsel %vm8700_vm7, %v2989_v42, %v2990_v21  ;;  %v6686_v39 = vcombine.low %v9052_v50, %v9055_v20  ;;  %v9117_v23 = vld [vmem:[%s8405_s10 + $0x14] sm:$0x1]  ;;  %v3716_v4 = vshrl.u32 %v9055_v20, 16 }
  0xaa   : > { %7084 = vmatprep.mubr.msk.bf16.mxu1 %vm805_vm4, %v6362_v33  ;;  %7113 = vmatpush3.bf16.msra.mxu1 %v1575_v32  ;;  %v6613_v24 = vcombine.low %v2988_v55, %v2991_v22  ;;  %v9071_v33 = vld [vmem:[%s8405_s10 + $0x28] sm:$0xf]  ;;  %v1357_v44 = vrot.slane %v9117_v23, 5  ;;  %v6369_v36 = vcombine.low %v8752_v18, %v8758_v40  ;;  %v6690_v42 = vcombine.low %v9101_v5, %v9106_v16  ;;  %v9132_v21 = vld [vmem:[%s8405_s10 + $0x54] sm:$0xf]  ;;  %v9146_v18 = vld [vmem:[%s11294_s2 + $0xa0] sm:$0xff]  }
  0xab   : > { %7146 = vmatprep.subr.bf16.mxu1 %v9040_v15  ;;  %v6687_v52 = vcombine.low %v9068_v11, %v9071_v33  ;;  %v6370_v32 = vcombine.low %v8785_v17, %v8790_v25  ;;  %11329 = vst [vmem:[#allocation9_spill] sm:$0xff] %v9146_v18  ;;  %v4204_v17 = vsel %vm854_vm0, %v7760_v38, 0  ;;  %v9189_v25 = vld [vmem:[%s8405_s10 + $0x7c] sm:$0xf]  ;;  %v9208_v22 = vld [vmem:[%s8405_s10 + $0x88] sm:$0xf] }
  0xac   : > { %v6395_v23 = vrot.slane %v8960_v56, 9  ;;  %v8067_v56 = vld [vmem:[%s8405_s10 + $0x5c] sm:$0x1] }
  0xb0   : > { %7253 = vmatmul.mubr.msk.bf16.gmra.mrb[24].mxu0 %vm805_vm4, %v6611_v35 }
  0xb1   : > { %7085 = vmatmul.mubr.msk.bf16.gmra.mrb[8].mxu1 %vm805_vm4, %v6363_v12  ;;  %7256 = vmatprep.mubr.msk.bf16.mxu0 %vm805_vm4, %v6612_v48  ;;  %v6689_v12 = vcombine.low %v9095_v13, %v9098_v53 }
  0xb2   : > { %7088 = vmatprep.mubr.msk.bf16.mxu1 %vm805_vm4, %v6364_v54 }
  0xb8   : > { %7257 = vmatmul.mubr.msk.bf16.gmra.mrb[28].mxu0 %vm805_vm4, %v6613_v24  ;;  %v9140_v24 = vld [vmem:[%s8405_s10 + $0x58] sm:$0xf] }
  0xb9   : > { %7089 = vmatmul.mubr.msk.bf16.gmra.mrb[12].mxu1 %vm805_vm4, %v6365_v27  ;;  %7266 = vmatprep.mubr.msk.bf16.mxu0 %vm805_vm4, %v6686_v39  ;;  %v9151_v39 = vld [vmem:[%s8405_s10 + $0x60] sm:$0xf] }
  0xba   : > { %7092 = vmatprep.mubr.msk.bf16.mxu1 %vm805_vm4, %v6366_v62  ;;  %v1347_v62 = vrot.slane %v8918_v47, 5  ;;  %v6372_v47 = vcombine.low %v8837_v63, %v8843_v2  ;;  %v1361_v2 = vrot.slane %v8963_v51, 5  ;;  %v8059_v63 = vld [vmem:[%s8405_s10 + $0x38] sm:$0x1] }
  0xbb   : > { %v1378_v35 = vrot.slane %v8059_v63, 5  ;;  %v8066_v63 = vld [vmem:[%s8405_s10 + $0x54] sm:$0xf] }
  0xbc   : > { %v6400_v50 = vrot.slane %v8066_v63, 9 }
  0xc0   : > { %7267 = vmatmul.mubr.msk.bf16.vlgmr.msra.gmra.mrb[0].mxu0 %vm805_vm4, %v6687_v52  ;;  %v1349_v52 = vrot.slane %v1347_v62, 4 }
  0xc1   : > { %7093 = vmatmul.mubr.msk.bf16.gmra.mrb[16].mxu1 %vm805_vm4, %v6367_v60  ;;  %7299 = vmatpush3.bf16.msra.mxu0 %v8934_v45  ;;  %v1350_v45 = vrot.slane %v9112_v8, 5  ;;  %v9172_v60 = vld [vmem:[%s8405_s10 + $0x6c] sm:$0xf]  ;;  %v1368_v8 = vrot.slane %v8999_v19, 5 }
  0xc2   : > { %7096 = vmatprep.mubr.msk.bf16.mxu1 %vm805_vm4, %v6368_v37  ;;  %7270 = vmatprep.mubr.msk.bf16.mxu0 %vm805_vm4, %v6688_v9  ;;  %v9161_v9 = vld [vmem:[%s8405_s10 + $0x64] sm:$0xf]  ;;  %11330 = vst [vmem:[#allocation10_spill] sm:$0xff] %v9172_v60  ;;  %v9175_v37 = vld [vmem:[%s8405_s10 + $0x70] sm:$0xf] }
  0xc3   : > { %7300 = vmatprep.subr.bf16.mxu0 %v7750_v14  ;;  %v9223_v40 = vsel %vm8700_vm7, %v1349_v52, %v1350_v45  ;;  %v9248_v52 = vld [vmem:[%s8405_s10 + $0x94] sm:$0xf]  ;;  %v9262_v45 = vld [vmem:[%s8405_s10 + $0x9c] sm:$0xf]  ;;  %v1370_v19 = vrot.slane %v1368_v8, 4 }
  0xc4   : > { %11333 = vst [vmem:[#allocation13_spill] sm:$0xff] %v9262_v45 }
  0xc5   : > { %7301 = vmatpush3.bf16.msra.mxu0 %v7750_v14  ;;  %v6371_v14 = vcombine.low %v8813_v43, %v8818_v61  ;;  %v6393_v43 = vrot.slane %v8915_v58, 9  ;;  %v9184_v61 = vld [vmem:[%s8405_s10 + $0x78] sm:$0xf] }
  0xc6   : > { %7644 = vmatprep.subr.msk.bf16.mxu0 %vm854_vm0, %v7760_v38  ;;  %v6691_v38 = vcombine.low %v9132_v21, %v9140_v24  ;;  %11331 = vst [vmem:[#allocation11_spill] sm:$0xff] %v9184_v61  ;;  %v6694_v55 = vcombine.low %v9184_v61, %v9189_v25  ;;  %v8069_v61 = vld [vmem:[%s8405_s10 + $0x70] sm:$0xf] }
  0xc7   : > { %v9214_v58 = vsel %vm8700_vm7, %v6393_v43, %v1347_v62  ;;  %v9238_v43 = vld [vmem:[%s8405_s10 + $0x90] sm:$0xf] }
  0xc8   : > { %7271 = vmatmul.mubr.msk.bf16.gmra.mrb[4].mxu0 %vm805_vm4, %v6689_v12  ;;  %v6692_v12 = vcombine.low %v9151_v39, %v9161_v9  ;;  %11332 = vst [vmem:[#allocation12_spill] sm:$0xff] %v9238_v43  ;;  %v6414_v57 = vcombine.low %v9214_v58, %v9223_v40  ;;  %v8058_v40 = vld [vmem:[%s8405_s10 + $0x2c] sm:$0x1] }
  0xc9   : > { %7097 = vmatmul.mubr.msk.bf16.gmra.mrb[20].mxu1 %vm805_vm4, %v6369_v36  ;;  %7274 = vmatprep.mubr.msk.bf16.mxu0 %vm805_vm4, %v6690_v42  ;;  %v1356_v42 = vrot.slane %v1354_v3, 4  ;;  %v9201_v36 = vld [vmem:[%s8405_s10 + $0x84] sm:$0xf]  ;;  %v1371_v58 = vrot.slane %v8058_v40, 5 }
  0xca   : > { %7100 = vmatprep.mubr.msk.bf16.mxu1 %vm805_vm4, %v6370_v32  ;;  %7303 = vmatpush3.bf16.msra.mxu0 %v4204_v17  ;;  %v6394_v32 = vrot.slane %v8944_v59, 9  ;;  %v6373_v17 = vcombine.low %v8861_v10, %v8866_v31  ;;  %v6693_v59 = vcombine.low %v9172_v60, %v9175_v37  ;;  %v8070_v60 = vld [vmem:[%s8405_s10 + $0x68] sm:$0x1] }
  0xcb   : > { %7336 = vmatprep.subr.bf16.mxu0 %v9146_v18  ;;  %v9235_v62 = vsel %vm8700_vm7, %v1356_v42, %v1357_v44  ;;  %v8057_v42 = vld [vmem:[%s8405_s10 + $0x20] sm:$0x1]  ;;  %v1375_v44 = vrot.slane %v9007_v26, 5  ;;  %v1382_v26 = vrot.slane %v9031_v30, 5  ;;  %v9293_v30 = vld [vmem:[%s8405_s10 + $0xac] sm:$0xf]  ;;  %v9302_v40 = vsel %vm8700_vm7, %v1370_v19, %v1371_v58 }
  0xcc   : > { %v9229_v51 = vsel %vm8700_vm7, %v6394_v32, %v1354_v3  ;;  %v1364_v32 = vrot.slane %v8057_v42, 5  ;;  %11335 = vst [vmem:[#allocation15_spill] sm:$0xff] %v9293_v30  ;;  %v1399_v3 = vrot.slane %v8067_v56, 5  ;;  %v1406_v56 = vrot.slane %v8070_v60, 5 }
  0xcd   : > { %v1377_v54 = vrot.slane %v1375_v44, 4  ;;  %v1384_v48 = vrot.slane %v1382_v26, 4 }
  0xd0   : > { %7275 = vmatmul.mubr.msk.bf16.gmra.mrb[8].mxu0 %vm805_vm4, %v6691_v38  ;;  %v1363_v38 = vrot.slane %v1361_v2, 4 }
  0xd1   : > { %7101 = vmatmul.mubr.msk.bf16.gmra.mrb[24].mxu1 %vm805_vm4, %v6371_v14  ;;  %7278 = vmatprep.mubr.msk.bf16.mxu0 %vm805_vm4, %v6692_v12  ;;  %v9265_v12 = vld [vmem:[%s8405_s10 + $0xa0] sm:$0xf]  ;;  %v9274_v14 = vsel %vm8700_vm7, %v6395_v23, %v1361_v2  ;;  %v9288_v2 = vld [vmem:[%s8405_s10 + $0xa8] sm:$0xf]  ;;  %v6397_v23 = vrot.slane %v9004_v46, 9 }
  0xd2   : > { %7104 = vmatprep.mubr.msk.bf16.mxu1 %vm805_vm4, %v6372_v47  ;;  %11334 = vst [vmem:[#allocation14_spill] sm:$0xff] %v9265_v12  ;;  %v6396_v47 = vrot.slane %v8996_v1, 9  ;;  %v9281_v27 = vsel %vm8700_vm7, %v1363_v38, %v1364_v32  ;;  %v6398_v38 = vrot.slane %v9028_v6, 9  ;;  %v8060_v6 = vld [vmem:[%s8405_s10 + $0x44] sm:$0x1] }
  0xd3   : > { %v1385_v42 = vrot.slane %v8060_v6, 5  ;;  %v8062_v6 = vld [vmem:[%s8405_s10 + $0x58] sm:$0xf]  ;;  %v9326_v31 = vsel %vm8700_vm7, %v6397_v23, %v1375_v44  ;;  %v9344_v1 = vld [vmem:[%s8405_s10 + $0xc0] sm:$0xf] }
  0xd4   : > { %v9298_v32 = vsel %vm8700_vm7, %v6396_v47, %v1368_v8  ;;  %v3712_v8 = vshll.u32 %v9055_v20, 16  ;;  %v8061_v47 = vld [vmem:[%s8405_s10 + $0x4c] sm:$0xf]  ;;  %v1396_v46 = vrot.slane %v8062_v6, 5  ;;  %v8063_v6 = vld [vmem:[%s8405_s10 + $0x48] sm:$0xf] }
  0xd5   : > { %v1389_v58 = vrot.slane %v8061_v47, 5  ;;  %v9337_v47 = vld [vmem:[%s8405_s10 + $0xb4] sm:$0xf]  ;;  %v6399_v19 = vrot.slane %v8063_v6, 9  ;;  %v8064_v44 = vld [vmem:[%s8405_s10 + $0x64] sm:$0xf] }
  0xd6   : > { %v1403_v23 = vrot.slane %v8064_v44, 5  ;;  %v9359_v10 = vrot.slane %v3712_v8, 5  ;;  %v3718_v44 = vrot.slane %v3716_v4, 4  ;;  %v8068_v8 = vld [vmem:[%s8405_s10 + $0x60] sm:$0xf]  ;;  %v1410_v20 = vrot.slane %v8069_v61, 5 }
  0xd8   : > { %7279 = vmatmul.mubr.msk.bf16.gmra.mrb[12].mxu0 %vm805_vm4, %v6693_v59  ;;  %v9357_v59 = vld [vmem:[%s8405_s10 + $0xc4] sm:$0xf]  ;;  %v1405_v63 = vrot.slane %v1403_v23, 4  ;;  %v3719_v60 = vor.u32 %v3718_v44, %v9359_v10  ;;  %v3736_v44 = vshll.u32 %v9071_v33, 16 }
  0xd9   : > { %7105 = vmatmul.mubr.msk.bf16.gmra.mrb[28].mxu1 %vm805_vm4, %v6373_v17  ;;  %7282 = vmatprep.mubr.msk.bf16.mxu0 %vm805_vm4, %v6694_v55  ;;  %v9330_v55 = vsel %vm8700_vm7, %v1377_v54, %v1378_v35  ;;  %v9334_v17 = vsel %vm8700_vm7, %v6398_v38, %v1382_v26  ;;  %v3705_v35 = vrot.slane %v3703_v28, 4  ;;  %v3708_v54 = vrot.slane %v3706_v29, 5  ;;  %v8065_v38 = vld [vmem:[%s8405_s10 + $0x50] sm:$0x1] }
  0xda   : > { %7114 = vmatprep.mubr.msk.bf16.mxu1 %vm805_vm4, %v6414_v57  ;;  %v9340_v57 = vld [vmem:[%s8405_s10 + $0xb8] sm:$0xf]  ;;  %v9353_v26 = vsel %vm8700_vm7, %v1384_v48, %v1385_v42  ;;  %v1392_v6 = vrot.slane %v8065_v38, 5  ;;  %v1391_v28 = vrot.slane %v1389_v58, 4  ;;  %v1398_v29 = vrot.slane %v1396_v46, 4  ;;  %v7767_v48 = vld [vmem:[%s11294_s2 + $0x44] sm:$0xff]  }
  0xdb   : > { %v6401_v38 = vrot.slane %v8068_v8, 9  ;;  %v3709_v18 = vor.u32 %v3708_v54, %v3705_v35  ;;  %v11337_v42 = vcombine.low %v9201_v36, %v9208_v22  ;;  %v9388_v8 = vsel %vm8700_vm7, %v6399_v19, %v1389_v58 }
  0xdc   : > { %v3722_v35 = vshll.u32 %v9366_v7, 16  ;;  %v11338_v54 = vcombine.low %v9229_v51, %v9235_v62  ;;  %v9402_v4 = vsel %vm8700_vm7, %v1391_v28, %v1392_v6  ;;  %v9406_v19 = vsel %vm8700_vm7, %v6400_v50, %v1396_v46  ;;  %v9413_v51 = vld [vmem:[%s8405_s10 + $0xcc] sm:$0xf]  ;;  %v9416_v62 = vld [vmem:[%s8405_s10 + $0xd0] sm:$0xf] }
  0xdd   : > { %v9410_v58 = vsel %vm8700_vm7, %v1398_v29, %v1399_v3  ;;  %v9426_v46 = vsel %vm8700_vm7, %v6401_v38, %v1403_v23  ;;  %v8071_v3 = vld [vmem:[%s8405_s10 + $0x6c] sm:$0xf]  ;;  %v1412_v28 = vrot.slane %v1410_v20, 4  ;;  %v8072_v50 = vld [vmem:[%s8405_s10 + $0x74] sm:$0x1]  ;;  %v3710_v61 = vrot.slane %v3709_v18, 4 }
  0xde   : > { %v6402_v6 = vrot.slane %v8071_v3, 9  ;;  %v1413_v29 = vrot.slane %v8072_v50, 5  ;;  %v7769_v23 = vld [vmem:[%s11294_s2 + $0x4c] ss:$0 sps:$4 sm:$0x33]   ;;  %v3724_v18 = vrot.slane %v3722_v35, 5  ;;  %v11349_v3 = vcombine.low %v9298_v32, %v9302_v40 }
  0xdf   : > { %v9450_v50 = vrot.slane %v3736_v44, 5  ;;  %v3760_v7 = vshll.u32 %v9078_v49, 16  ;;  %v3784_v44 = vshll.u32 %v9098_v53, 16  ;;  %v9471_v38 = vld [vmem:[%s8405_s10 + $0x78] sm:$0xf]  ;;  %v11352_v40 = vcombine.low %v9326_v31, %v9330_v55 }
  0xe0   : > { %7283 = vmatmul.mubr.msk.bf16.gmra.mrb[16].mxu0 %vm805_vm4, %v11337_v42  ;;  %v11339_v42 = vcombine.low %v9238_v43, %v9248_v52  ;;  %v9463_v35 = vsel %vm8700_vm7, %v1412_v28, %v1413_v29  ;;  %v11347_v28 = vshrl.u32 %v9075_v41, 16  ;;  %v9512_v32 = vld [vmem:[%s8405_s10 + $0x44] sm:$0x1]  ;;  %v8075_v55 = vld [vmem:[%s8405_s10 + $0x80] sm:$0x1] }
  0xe1   : > { %7115 = vmatmul.mubr.msk.bf16.vlgmr.msra.gmra.mrb[0].mxu1 %vm805_vm4, %v11338_v54  ;;  %v11340_v54 = vcombine.low %v9274_v14, %v9281_v27  ;;  %v11341_v27 = vshrl.u32 %v9068_v11, 16  ;;  %11353 = vst [vmem:[#allocation19_spill] sm:$0xff] %v9512_v32 }
  0xe2   : > { %7286 = vmatprep.mubr.msk.bf16.mxu0 %vm805_vm4, %v11339_v42  ;;  %7147 = vmatpush3.bf16.msra.mxu1 %v9040_v15  ;;  %v9432_v42 = vsel %vm8700_vm7, %v1405_v63, %v1406_v56  ;;  %v11342_v15 = vshll.u32 %v9068_v11, 16  ;;  %v3720_v63 = vrot.slane %v3719_v60, 4  ;;  %v9446_v56 = vld [vmem:[%s8405_s10 + $0x2c] sm:$0x1]  ;;  %v9459_v60 = vsel %vm8700_vm7, %v6402_v6, %v1410_v20  ;;  %v9482_v6 = vld [vmem:[%s8405_s10 + $0x7c] sm:$0xf] }
  0xe3   : > { %7118 = vmatprep.mubr.msk.bf16.mxu1 %vm805_vm4, %v11340_v54  ;;  %v3729_v14 = vrot.slane %v11341_v27, 4  ;;  %7148 = vmatprep.subr.bf16.mxu1 %v7767_v48  ;;  %11343 = vst [vmem:[#allocation17_spill] sm:$0xff] %v9446_v56  ;;  %v11344_v27 = vshrl.u32 %v9071_v33, 16  ;;  %v3715_v33 = vsel %vm8432_vm3, %v3710_v61, %v9359_v10  ;;  %v3746_v11 = vshll.u32 %v9446_v56, 16  ;;  %v9486_v61 = vld [vmem:[%s8405_s10 + $0x38] sm:$0x1] }
  0xe4   : > { %v3732_v54 = vrot.slane %v11342_v15, 5  ;;  %v11345_v20 = vcombine.low %v9262_v45, %v9265_v12  ;;  %11346 = vst [vmem:[#allocation18_spill] sm:$0xff] %v9486_v61  ;;  %v3753_v29 = vrot.slane %v11347_v28, 4  ;;  %v9503_v28 = vrot.slane %v3760_v7, 5 }
  0xe5   : > { %v3742_v15 = vrot.slane %v11344_v27, 4  ;;  %v11356_v7 = vshrl.u32 %v9098_v53, 16  ;;  %v9524_v31 = vrot.slane %v3746_v11, 5  ;;  %v3770_v56 = vshll.u32 %v9486_v61, 16 }
  0xe6   : > { %7149 = vmatpush3.bf16.msra.mxu1 %v7767_v48  ;;  %v3733_v27 = vor.u32 %v3732_v54, %v3729_v14  ;;  %v3725_v48 = vsel %vm8432_vm3, %v3720_v63, %v3724_v18  ;;  %v11348_v14 = vshll.u32 %v9075_v41, 16  ;;  %v11350_v63 = vcombine.low %v9288_v2, %v9293_v30 }
  0xe7   : > { %7639 = vmatprep.subr.msk.bf16.mxu1 %vm854_vm0, %v7769_v23  ;;  %v11351_v41 = vshrl.u32 %v9078_v49, 16  ;;  %v11355_v18 = vshll.u32 %v9095_v13, 16  ;;  %v3790_v49 = vrot.slane %v11356_v7, 4  ;;  %v3794_v7 = vshll.u32 %v9512_v32, 16  ;;  %v8082_v32 = vld [vmem:[%s8405_s10 + $0x98] sm:$0x1] }
  0xe8   : > { %7287 = vmatmul.mubr.msk.bf16.gmra.mrb[20].mxu0 %vm805_vm4, %v11345_v20  ;;  %v3756_v54 = vrot.slane %v11348_v14, 5  ;;  %v3743_v20 = vor.u32 %v3742_v15, %v9450_v50  ;;  %v9518_v15 = vrot.slane %v3784_v44, 5  ;;  %v9528_v45 = vrot.slane %v3733_v27, 4  ;;  %v8077_v27 = vld [vmem:[%s8405_s10 + $0x94] sm:$0xf] }
  0xe9   : > { %7119 = vmatmul.mubr.msk.bf16.gmra.mrb[4].mxu1 %vm805_vm4, %v11349_v3  ;;  %7290 = vmatprep.mubr.msk.bf16.mxu0 %vm805_vm4, %v11350_v63  ;;  %v3766_v14 = vrot.slane %v11351_v41, 4  ;;  %v11354_v3 = vshrl.u32 %v9095_v13, 16  ;;  %v3780_v10 = vrot.slane %v11355_v18, 5  ;;  %v9522_v41 = vcombine.low %v3715_v33, %v3725_v48  ;;  %v8076_v48 = vld [vmem:[%s8405_s10 + $0x88] sm:$0xf] }
  0xea   : > { %7122 = vmatprep.mubr.msk.bf16.mxu1 %vm805_vm4, %v11352_v40  ;;  %v1420_v40 = vrot.slane %v8075_v55, 5  ;;  %v11357_v13 = vrot.slane %v9482_v6, 5  ;;  %v3757_v44 = vor.u32 %v3756_v54, %v3753_v29  ;;  %v9533_v53 = vrot.slane %v3743_v20, 4  ;;  %v8078_v29 = vld [vmem:[%s8405_s10 + $0x84] sm:$0xf] }
  0xeb   : > { %v3777_v63 = vrot.slane %v11354_v3, 4  ;;  %v3808_v3 = vshll.u32 %v9106_v16, 16  ;;  %v3767_v33 = vor.u32 %v3766_v14, %v9503_v28  ;;  %v1424_v11 = vrot.slane %v8076_v48, 5 }
  0xec   : > { %v1419_v18 = vrot.slane %v11357_v13, 4  ;;  %v3791_v61 = vor.u32 %v3790_v49, %v9518_v15  ;;  %v1431_v30 = vrot.slane %v8077_v27, 5  ;;  %v1972_v12 = vsel %vm854_vm0, %v7769_v23, 0  ;;  %v8079_v23 = vld [vmem:[%s8405_s10 + $0x8c] sm:$0x1] }
  0xed   : > { %v3781_v55 = vor.u32 %v3780_v10, %v3777_v63  ;;  %v9541_v13 = vrot.slane %v3770_v56, 5  ;;  %v6404_v54 = vrot.slane %v8078_v29, 9  ;;  %v11358_v20 = vshrl.u32 %v9101_v5, 16  ;;  %7151 = vmatpush3.bf16.msra.mxu1 %v1972_v12 }
  0xee   : > { %v11359_v14 = vshll.u32 %v9101_v5, 16  ;;  %v11360_v10 = vcombine.low %v9337_v47, %v9340_v57  ;;  %v3758_v63 = vrot.slane %v3757_v44, 4  ;;  %v1427_v56 = vrot.slane %v8079_v23, 5  ;;  %v9560_v5 = vld [vmem:[%s11294_s2 + $0x50] sm:$0xff]  }
  0xef   : > { %v3801_v43 = vrot.slane %v11358_v20, 4  ;;  %v9553_v49 = vrot.slane %v3808_v3, 5  ;;  %v11361_v27 = vshrl.u32 %v9106_v16, 16  ;;  %11362 = vst [vmem:[#allocation20_spill] sm:$0xff] %v9560_v5  ;;  %7374 = vmatprep.subr.bf16.mxu1 %v9560_v5  ;;  %v11363_v12 = vcombine.low %v9334_v17, %v9353_v26  ;;  %v9573_v23 = vld [vmem:[%s8405_s10 + $0x50] sm:$0x1] }
  0xf0   : > { %v3804_v48 = vrot.slane %v11359_v14, 5  ;;  %7291 = vmatmul.mubr.msk.bf16.gmra.mrb[24].mxu0 %vm805_vm4, %v11360_v10  ;;  %v11364_v44 = vcombine.low %v9344_v1, %v9357_v59  ;;  %v3768_v16 = vrot.slane %v3767_v33, 4  ;;  %v1426_v3 = vrot.slane %v1424_v11, 4  ;;  %v8081_v14 = vld [vmem:[%s8405_s10 + $0x90] sm:$0xf] }
  0xf1   : > { %v3814_v29 = vrot.slane %v11361_v27, 4  ;;  %7123 = vmatmul.mubr.msk.bf16.gmra.mrb[8].mxu1 %vm805_vm4, %v11363_v12  ;;  %v3796_v20 = vrot.slane %v3794_v7, 5  ;;  %v6405_v10 = vrot.slane %v8081_v14, 9  ;;  %v11365_v27 = vcombine.low %v9388_v8, %v9402_v4 }
  0xf2   : > { %7294 = vmatprep.mubr.msk.bf16.mxu0 %vm805_vm4, %v11364_v44  ;;  %v3782_v17 = vrot.slane %v3781_v55, 4  ;;  %v3792_v26 = vrot.slane %v3791_v61, 4  ;;  %v1433_v12 = vrot.slane %v1431_v30, 4  ;;  %v1434_v5 = vrot.slane %v8082_v32, 5  ;;  %v8083_v55 = vld [vmem:[%s8405_s10 + $0xa0] sm:$0xf] }
  0xf3   : > { %7126 = vmatprep.mubr.msk.bf16.mxu1 %vm805_vm4, %v11365_v27  ;;  %v3739_v33 = vsel %vm8432_vm3, %v9528_v45, %v9450_v50  ;;  %v11366_v7 = vrot.slane %v9482_v6, 5  ;;  %v11367_v44 = vrot.slane %v9471_v38, 9  ;;  %v9594_v4 = vsel %vm8700_vm7, %v1419_v18, %v1420_v40 }
  0xf4   : > { %v3805_v8 = vor.u32 %v3804_v48, %v3801_v43  ;;  %v3749_v61 = vsel %vm8432_vm3, %v9533_v53, %v9524_v31  ;;  %v3815_v45 = vor.u32 %v3814_v29, %v9553_v49  ;;  %v3818_v50 = vshll.u32 %v9573_v23, 16 }
  0xf5   : > { %v9590_v14 = vsel %vm8700_vm7, %v11367_v44, %v11366_v7  ;;  %v3832_v38 = vshll.u32 %v9140_v24, 16  ;;  %v3763_v6 = vsel %vm8432_vm3, %v3758_v63, %v9503_v28  ;;  %v3773_v43 = vsel %vm8432_vm3, %v3768_v16, %v9541_v13 }
  0xf6   : > { %v9611_v32 = vsel %vm8700_vm7, %v6404_v54, %v1424_v11  ;;  %v9615_v31 = vsel %vm8700_vm7, %v1426_v3, %v1427_v56  ;;  %v3787_v40 = vsel %vm8432_vm3, %v3782_v17, %v9518_v15  ;;  %v3797_v28 = vsel %vm8432_vm3, %v3792_v26, %v3796_v20 }
  0xf7   : > { %v9624_v18 = vsel %vm8700_vm7, %v6405_v10, %v1431_v30  ;;  %v9628_v53 = vsel %vm8700_vm7, %v1433_v12, %v1434_v5  ;;  %v3806_v11 = vrot.slane %v3805_v8, 4  ;;  %v1438_v13 = vrot.slane %v8083_v55, 5  ;;  %v9640_v5 = vld [vmem:[%s8405_s10 + $0x5c] sm:$0x1]  ;;  %v5105_v8 = vld [vmem:[%s9670_s13 + $0x10] sm:$0xff] }
  0xf8   : > { %v11368_v54 = vshrl.u32 %v9132_v21, 16  ;;  %v11369_v15 = vshll.u32 %v9132_v21, 16  ;;  %v11370_v56 = vcombine.low %v9413_v51, %v9416_v62  ;;  %v3816_v30 = vrot.slane %v3815_v45, 4  ;;  %v8084_v12 = vld [vmem:[%s8405_s10 + $0x9c] sm:$0xf]  ;;  %5171 = vrot.lane.b32.xlu1 %v5105_v8, %s8278_s15  ;;  %v11379_v8 = vld [vmem:[#allocation10_spill] sm:$0xff] }
  0xf9   : > { %v3820_v29 = vrot.slane %v3818_v50, 5  ;;  %v9642_v16 = vrot.slane %v3832_v38, 5  ;;  %v11371_v3 = vshrl.u32 %v9140_v24, 16  ;;  %v11372_v10 = vcombine.low %v9406_v19, %v9410_v58 }
  0xfa   : > { %v3825_v48 = vrot.slane %v11368_v54, 4  ;;  %v3828_v63 = vrot.slane %v11369_v15, 5  ;;  %7295 = vmatmul.mubr.msk.bf16.gmra.mrb[28].mxu0 %vm805_vm4, %v11370_v56  ;;  %v6727_v21 = vcombine.low %v3739_v33, %v3749_v61  ;;  %v6424_v27 = vcombine.low %v9590_v14, %v9594_v4  ;;  %v5103_v4 = vld [vmem:[%s9670_s13] sm:$0xff] }
  0xfb   : > { %v3838_v20 = vrot.slane %v11371_v3, 4  ;;  %7127 = vmatmul.mubr.msk.bf16.gmra.mrb[12].mxu1 %vm805_vm4, %v11372_v10  ;;  %7304 = vmatprep.mubr.msk.bf16.mxu0 %vm805_vm4, %v9522_v41  ;;  %v6425_v17 = vcombine.low %v9611_v32, %v9615_v31  ;;  %v3856_v26 = vshll.u32 %v9161_v9, 16  ;;  %v11373_v24 = vcombine.low %v9426_v46, %v9432_v42  ;;  %v8085_v46 = vld [vmem:[%s8405_s10 + $0xa4] sm:$0x1]  ;;  %v7768_v10 = vld [vmem:[%s11294_s2 + $0xa8] sm:$0xff]  }
  0xfc   : > { %v6728_v19 = vcombine.low %v3763_v6, %v3773_v43  ;;  %v9662_v58 = vcombine.low %v3787_v40, %v3797_v28  ;;  %v6426_v41 = vcombine.low %v9624_v18, %v9628_v53  ;;  %v6406_v33 = vrot.slane %v8084_v12, 9  ;;  %v9684_v6 = vld [vmem:[%s8405_s10 + $0x68] sm:$0x1]  ;;  %5167 = vrot.lane.b32.xlu0 %v5103_v4, %s8278_s15  ;;  %v9724_v4 = vld [vmem:[%s8405_s10 + $0x74] sm:$0x1] }
  0xfd   : > { %7130 = vmatprep.mubr.msk.bf16.mxu1 %vm805_vm4, %v11373_v24  ;;  %v1440_v7 = vrot.slane %v1438_v13, 4  ;;  %v1441_v42 = vrot.slane %v8085_v46, 5  ;;  %v3829_v44 = vor.u32 %v3828_v63, %v3825_v48  ;;  %v3842_v14 = vshll.u32 %v9640_v5, 16  ;;  %v5104_v48 = vld [vmem:[%s9670_s13 + $0x8] sm:$0xff] }
  0xfe   : > { %v3994_v61 = vshll.u32 %v9288_v2, 16  ;;  %v3811_v45 = vsel %vm8432_vm3, %v3806_v11, %v9553_v49  ;;  %v3821_v50 = vsel %vm8432_vm3, %v3816_v30, %v3820_v29  ;;  %v3839_v38 = vor.u32 %v3838_v20, %v9642_v16  ;;  %v8086_v63 = vld [vmem:[%s8405_s10 + $0xa8] sm:$0xf]  ;;  %v8087_v30 = vld [vmem:[%s8405_s10 + $0xac] sm:$0xf] }
  0xff   : > { %v11374_v43 = vshrl.u32 %v9151_v39, 16  ;;  %v11375_v28 = vshll.u32 %v9151_v39, 16  ;;  %v9692_v49 = vrot.slane %v3856_v26, 5  ;;  %v11376_v11 = vshrl.u32 %v9161_v9, 16 }
 0x100   : > { %v9699_v15 = vsel %vm8700_vm7, %v6406_v33, %v1438_v13  ;;  %v6407_v56 = vrot.slane %v8086_v63, 9  ;;  %v1445_v29 = vrot.slane %v8087_v30, 5  ;;  %v3880_v3 = vshll.u32 %v9175_v37, 16  ;;  %v8088_v13 = vld [vmem:[%s8405_s10 + $0xb0] sm:$0x1]  ;;  %5169 = vrot.lane.b32.xlu0 %v5104_v48, %s8278_s15 }
 0x101   : > { %v3849_v40 = vrot.slane %v11374_v43, 4  ;;  %v3852_v55 = vrot.slane %v11375_v28, 5  ;;  %v3862_v54 = vrot.slane %v11376_v11, 4  ;;  %v9706_v39 = vsel %vm8700_vm7, %v1440_v7, %v1441_v42  ;;  %v5106_v7 = vld [vmem:[%s9670_s13 + $0x18] sm:$0xff]  ;;  %v5107_v28 = vld [vmem:[%s9670_s13 + $0x20] sm:$0xff] }
 0x102   : > { %v3830_v20 = vrot.slane %v3829_v44, 4  ;;  %v3844_v9 = vrot.slane %v3842_v14, 5  ;;  %v1448_v26 = vrot.slane %v8088_v13, 5  ;;  %7305 = vmatmul.mubr.msk.bf16.vlgmr.msra.gmra.mrb[0].mxu0 %vm805_vm4, %v6727_v21  ;;  %v6730_v24 = vcombine.low %v3811_v45, %v3821_v50  ;;  %v11378_v44 = vld [vmem:[#allocation9_spill] sm:$0xff]  ;;  %v9752_v63 = vld [vmem:[%s8405_s10 + $0x80] sm:$0x1]  ;;  %5173 = vrot.lane.b32.xlu1 %v5106_v7, %s8278_s15 }
 0x103   : > { %v3840_v12 = vrot.slane %v3839_v38, 4  ;;  %v3866_v33 = vshll.u32 %v9684_v6, 16  ;;  %v3904_v46 = vshll.u32 %v9189_v25, 16  ;;  %v11377_v42 = vcombine.low %v9459_v60, %v9463_v35  ;;  %7337 = vmatpush3.bf16.msra.mxu0 %v11378_v44  ;;  %7308 = vmatprep.mubr.msk.bf16.mxu0 %vm805_vm4, %v6728_v19  ;;  %v9748_v19 = vld [vmem:[%s8405_s10 + $0xb8] sm:$0xf]  ;;  %v5109_v7 = vld [vmem:[%s9670_s13 + $0x30] sm:$0xff] }
 0x104   : > { %v3853_v14 = vor.u32 %v3852_v55, %v3849_v40  ;;  %v3863_v21 = vor.u32 %v3862_v54, %v9692_v49  ;;  %v11380_v45 = vshrl.u32 %v11379_v8, 16  ;;  %v11381_v38 = vshll.u32 %v11379_v8, 16  ;;  %v7774_v54 = vld [vmem:[%s11294_s2 + $0xb0] ss:$0 sps:$4 sm:$0x33]   ;;  %7338 = vmatprep.subr.bf16.mxu0 %v7768_v10  ;;  %5175 = vrot.lane.b32.xlu0 %v5107_v28, %s8278_s15  ;;  %v5108_v8 = vld [vmem:[%s9670_s13 + $0x28] sm:$0xff] }
 0x105   : > { %7131 = vmatmul.mubr.msk.bf16.gmra.mrb[16].mxu1 %vm805_vm4, %v11377_v42  ;;  %v9735_v60 = vsel %vm8700_vm7, %v6407_v56, %v1445_v29  ;;  %v1447_v35 = vrot.slane %v1445_v29, 4  ;;  %v9737_v40 = vrot.slane %v3880_v3, 5  ;;  %v11382_v55 = vshrl.u32 %v9175_v37, 16  ;;  %v11383_v56 = vld [vmem:[#allocation11_spill] sm:$0xff] }
 0x106   : > { %v3873_v50 = vrot.slane %v11380_v45, 4  ;;  %v3876_v43 = vrot.slane %v11381_v38, 5  ;;  %7134 = vmatprep.mubr.msk.bf16.mxu1 %vm805_vm4, %v6424_v27  ;;  %v3835_v27 = vsel %vm8432_vm3, %v3830_v20, %v9642_v16  ;;  %v1452_v48 = vrot.slane %v9748_v19, 5  ;;  %5177 = vrot.lane.b32.xlu1 %v5108_v8, %s8278_s15 }
 0x107   : > { %v3886_v11 = vrot.slane %v11382_v55, 4  ;;  %v11384_v37 = vshrl.u32 %v11383_v56, 16  ;;  %v11385_v29 = vshll.u32 %v11383_v56, 16  ;;  %v3845_v16 = vsel %vm8432_vm3, %v3840_v12, %v3844_v9  ;;  %7339 = vmatpush3.bf16.msra.mxu0 %v7768_v10  ;;  %v8090_v12 = vld [vmem:[%s8405_s10 + $0xb4] sm:$0xf] }
 0x108   : > { %v3868_v20 = vrot.slane %v3866_v33, 5  ;;  %v9761_v13 = vrot.slane %v3904_v46, 5  ;;  %v11386_v42 = vshrl.u32 %v9189_v25, 16  ;;  %v3854_v45 = vrot.slane %v3853_v14, 4  ;;  %7645 = vmatprep.subr.msk.bf16.mxu0 %vm854_vm0, %v7774_v54  ;;  %v8091_v10 = vld [vmem:[%s8405_s10 + $0xbc] sm:$0x1]  ;;  %5179 = vrot.lane.b32.xlu0 %v5109_v7, %s8278_s15 }
 0x109   : > { %v3897_v30 = vrot.slane %v11384_v37, 4  ;;  %v3900_v3 = vrot.slane %v11385_v29, 5  ;;  %v3864_v38 = vrot.slane %v3863_v21, 4  ;;  %v3877_v55 = vor.u32 %v3876_v43, %v3873_v50  ;;  %v5110_v37 = vld [vmem:[%s9670_s13 + $0x38] sm:$0xff]  ;;  %v5111_v29 = vld [vmem:[%s9670_s13 + $0x40] sm:$0xff] }
 0x10a   : > { %v3910_v44 = vrot.slane %v11386_v42, 4  ;;  %v3890_v56 = vshll.u32 %v9724_v4, 16  ;;  %v9771_v9 = vsel %vm8700_vm7, %v1447_v35, %v1448_v26  ;;  %v6408_v33 = vrot.slane %v8090_v12, 9  ;;  %7309 = vmatmul.mubr.msk.bf16.gmra.mrb[4].mxu0 %vm805_vm4, %v9662_v58  ;;  %5181 = vrot.lane.b32.xlu1 %v5110_v37, %s8278_s15 }
 0x10b   : > { %v3887_v25 = vor.u32 %v3886_v11, %v9737_v40  ;;  %v3914_v46 = vshll.u32 %v9752_v63, 16  ;;  %v1455_v14 = vrot.slane %v8091_v10, 5  ;;  %v3901_v21 = vor.u32 %v3900_v3, %v3897_v30  ;;  %7312 = vmatprep.mubr.msk.bf16.mxu0 %vm805_vm4, %v6730_v24 }
 0x10c   : > { %v3928_v50 = vshll.u32 %v9208_v22, 16  ;;  %v4645_v43 = vsel %vm854_vm0, %v7774_v54, 0  ;;  %v6731_v26 = vcombine.low %v3835_v27, %v3845_v16  ;;  %v1454_v28 = vrot.slane %v1452_v48, 4  ;;  %5183 = vrot.lane.b32.xlu0 %v5111_v29, %s8278_s15 }
 0x10d   : > { %v3911_v35 = vor.u32 %v3910_v44, %v9761_v13  ;;  %v3952_v11 = vshll.u32 %v9248_v52, 16  ;;  %7135 = vmatmul.mubr.msk.bf16.gmra.mrb[20].mxu1 %vm805_vm4, %v6425_v17  ;;  %v3859_v58 = vsel %vm8432_vm3, %v3854_v45, %v9692_v49  ;;  %v3869_v54 = vsel %vm8432_vm3, %v3864_v38, %v3868_v20  ;;  %v9805_v17 = vld [vmem:[%s8405_s10 + $0x8c] sm:$0x1]  ;;  %7341 = vmatpush3.bf16.msra.mxu0 %v4645_v43  ;;  %v11390_v44 = vld [vmem:[#allocation12_spill] sm:$0xff] }
 0x10e   : > { %v3878_v27 = vrot.slane %v3877_v55, 4  ;;  %v3892_v30 = vrot.slane %v3890_v56, 5  ;;  %7138 = vmatprep.mubr.msk.bf16.mxu1 %vm805_vm4, %v6426_v41  ;;  %v3888_v32 = vrot.slane %v3887_v25, 4  ;;  %v3916_v31 = vrot.slane %v3914_v46, 5  ;;  %v9816_v41 = vld [vmem:[%s8405_s10 + $0x98] sm:$0x1] }
 0x10f   : > { %v11387_v24 = vshrl.u32 %v9201_v36, 16  ;;  %v11388_v49 = vshll.u32 %v9201_v36, 16  ;;  %v3902_v20 = vrot.slane %v3901_v21, 4  ;;  %v9811_v42 = vrot.slane %v3928_v50, 5  ;;  %v5113_v50 = vld [vmem:[%s9670_s13 + $0x50] sm:$0xff] }
 0x110   : > { %v11389_v18 = vshrl.u32 %v9208_v22, 16  ;;  %v11391_v8 = vshrl.u32 %v11390_v44, 16  ;;  %v3912_v38 = vrot.slane %v3911_v35, 4  ;;  %v11392_v55 = vshll.u32 %v11390_v44, 16  ;;  %v5112_v22 = vld [vmem:[%s9670_s13 + $0x48] sm:$0xff]  ;;  %5187 = vrot.lane.b32.xlu0 %v5113_v50, %s8278_s15  ;;  %v5117_v50 = vld [vmem:[%s9670_s13 + $0x70] sm:$0xff] }
 0x111   : > { %v3921_v3 = vrot.slane %v11387_v24, 4  ;;  %v3924_v16 = vrot.slane %v11388_v49, 5  ;;  %v9823_v56 = vrot.slane %v3952_v11, 5  ;;  %v11393_v7 = vshrl.u32 %v9248_v52, 16  ;;  %5185 = vrot.lane.b32.xlu1 %v5112_v22, %s8278_s15  ;;  %v11395_v11 = vld [vmem:[#allocation15_spill] sm:$0xff]  ;;  %v11396_v24 = vld [vmem:[#allocation13_spill] sm:$0xff] }
 0x112   : > { %v3934_v53 = vrot.slane %v11389_v18, 4  ;;  %v3945_v45 = vrot.slane %v11391_v8, 4  ;;  %v3948_v36 = vrot.slane %v11392_v55, 5  ;;  %v6427_v25 = vcombine.low %v9699_v15, %v9706_v39  ;;  %7313 = vmatmul.mubr.msk.bf16.gmra.mrb[8].mxu0 %vm805_vm4, %v6731_v26  ;;  %v9880_v8 = vld [vmem:[%s8405_s10 + $0xb0] sm:$0x1] }
 0x113   : > { %v3958_v12 = vrot.slane %v11393_v7, 4  ;;  %v6428_v46 = vcombine.low %v9735_v60, %v9771_v9  ;;  %v6732_v10 = vcombine.low %v3859_v58, %v3869_v54  ;;  %v9837_v21 = vsel %vm8700_vm7, %v6408_v33, %v1452_v48 }
 0x114   : > { %v9842_v52 = vsel %vm8700_vm7, %v1454_v28, %v1455_v14  ;;  %v3883_v15 = vsel %vm8432_vm3, %v3878_v27, %v9737_v40  ;;  %v3925_v39 = vor.u32 %v3924_v16, %v3921_v3  ;;  %v3938_v60 = vshll.u32 %v9805_v17, 16  ;;  %v11394_v28 = vld [vmem:[#allocation14_spill] sm:$0xff] }
 0x115   : > { %v3893_v19 = vsel %vm8432_vm3, %v3888_v32, %v3892_v30  ;;  %v3907_v48 = vsel %vm8432_vm3, %v3902_v20, %v9761_v13  ;;  %v3935_v9 = vor.u32 %v3934_v53, %v9811_v42  ;;  %v3962_v33 = vshll.u32 %v9816_v41, 16  ;;  %v5114_v13 = vld [vmem:[%s9670_s13 + $0x58] sm:$0xff]  ;;  %7139 = vmatmul.mubr.msk.bf16.gmra.mrb[24].mxu1 %vm805_vm4, %v6427_v25  ;;  %7316 = vmatprep.mubr.msk.bf16.mxu0 %vm805_vm4, %v6732_v10  ;;  %v5115_v27 = vld [vmem:[%s9670_s13 + $0x60] sm:$0xff] }
 0x116   : > { %v3917_v40 = vsel %vm8432_vm3, %v3912_v38, %v3916_v31  ;;  %v3949_v14 = vor.u32 %v3948_v36, %v3945_v45  ;;  %v3959_v43 = vor.u32 %v3958_v12, %v9823_v56  ;;  %v3976_v35 = vshll.u32 %v11394_v28, 16  ;;  %7142 = vmatprep.mubr.msk.bf16.mxu1 %vm805_vm4, %v6428_v46  ;;  %v9873_v31 = vld [vmem:[%s8405_s10 + $0xa4] sm:$0x1]  ;;  %5189 = vrot.lane.b32.xlu1 %v5114_v13, %s8278_s15  ;;  %v5116_v12 = vld [vmem:[%s9670_s13 + $0x68] sm:$0xff] }
 0x117   : > { %v4004_v37 = vshrl.u32 %v11395_v11, 16  ;;  %v4015_v58 = vshrl.u32 %v9337_v47, 16  ;;  %v6429_v26 = vcombine.low %v9837_v21, %v9842_v52  ;;  %v4000_v54 = vshll.u32 %v11395_v11, 16  ;;  %5191 = vrot.lane.b32.xlu0 %v5115_v27, %s8278_s15  ;;  %v8094_v27 = vld [vmem:[%s8405_s10 + $0x18] sm:$0xf] }
 0x118   : > { %v6733_v30 = vcombine.low %v3883_v15, %v3893_v19  ;;  %v3926_v29 = vrot.slane %v3925_v39, 4  ;;  %v3940_v32 = vrot.slane %v3938_v60, 5  ;;  %v11397_v3 = vshrl.u32 %v11396_v24, 16  ;;  %v8092_v60 = vld [vmem:[%s8405_s10 + $0xc] sm:$0xf] }
 0x119   : > { %v6734_v16 = vcombine.low %v3907_v48, %v3917_v40  ;;  %v3936_v20 = vrot.slane %v3935_v9, 4  ;;  %v3964_v18 = vrot.slane %v3962_v33, 5  ;;  %v11398_v53 = vshll.u32 %v11396_v24, 16  ;;  %v8093_v19 = vld [vmem:[%s8405_s10 + $0x10] sm:$0xf] }
 0x11a   : > { %v3969_v49 = vrot.slane %v11397_v3, 4  ;;  %v3950_v45 = vrot.slane %v3949_v14, 4  ;;  %v3960_v38 = vrot.slane %v3959_v43, 4  ;;  %v9883_v55 = vrot.slane %v3976_v35, 5  ;;  %5193 = vrot.lane.b32.xlu1 %v5116_v12, %s8278_s15  ;;  %7317 = vmatmul.mubr.msk.bf16.gmra.mrb[12].mxu0 %vm805_vm4, %v6733_v30  ;;  %v8095_v30 = vld [vmem:[%s8405_s10 + $0x1c] sm:$0xf] }
 0x11b   : > { %v3972_v44 = vrot.slane %v11398_v53, 5  ;;  %v11399_v36 = vshrl.u32 %v11394_v28, 16  ;;  %v11400_v22 = vshrl.u32 %v9288_v2, 16  ;;  %v3996_v46 = vrot.slane %v3994_v61, 5  ;;  %5195 = vrot.lane.b32.xlu0 %v5117_v50, %s8278_s15  ;;  %v5118_v28 = vld [vmem:[%s9670_s13 + $0x78] sm:$0xff]  ;;  %7320 = vmatprep.mubr.msk.bf16.mxu0 %vm805_vm4, %v6734_v16 }
 0x11c   : > { %v9893_v10 = vrot.slane %v4000_v54, 5  ;;  %v4006_v21 = vrot.slane %v4004_v37, 4  ;;  %v4018_v52 = vshll.u32 %v9337_v47, 16  ;;  %v4028_v15 = vshrl.u32 %v9340_v57, 16  ;;  %v5119_v37 = vld [vmem:[%s9670_s13 + $0x80] sm:$0xff] }
 0x11d   : > { %v3982_v7 = vrot.slane %v11399_v36, 4  ;;  %v3993_v25 = vrot.slane %v11400_v22, 4  ;;  %v4039_v39 = vshrl.u32 %v9344_v1, 16  ;;  %v6502_v48 = vcombine.low %v8092_v60, %v8093_v19  ;;  %7143 = vmatmul.mubr.msk.bf16.gmra.mrb[28].mxu1 %vm805_vm4, %v6429_v26  ;;  %v5121_v22 = vld [vmem:[%s9670_s13 + $0x90] sm:$0xff] }
 0x11e   : > { %v3931_v9 = vsel %vm8432_vm3, %v3926_v29, %v9811_v42  ;;  %v3941_v2 = vsel %vm8432_vm3, %v3936_v20, %v3940_v32  ;;  %v3973_v61 = vor.u32 %v3972_v44, %v3969_v49  ;;  %v3986_v33 = vshll.u32 %v9873_v31, 16  ;;  %v8097_v32 = vld [vmem:[%s8405_s10 + $0x28] sm:$0xf]  ;;  %5197 = vrot.lane.b32.xlu1 %v5118_v28, %s8278_s15  ;;  %v8098_v28 = vld [vmem:[%s8405_s10 + $0x30] sm:$0xf] }
 0x11f   : > { %v3955_v40 = vsel %vm8432_vm3, %v3950_v45, %v9823_v56  ;;  %v3965_v42 = vsel %vm8432_vm3, %v3960_v38, %v3964_v18  ;;  %v3983_v14 = vor.u32 %v3982_v7, %v9883_v55  ;;  %v4010_v43 = vshll.u32 %v9880_v8, 16  ;;  %7152 = vmatprep.mubr.msk.bf16.mxu1 %vm805_vm4, %v6502_v48  ;;  %5199 = vrot.lane.b32.xlu0 %v5119_v37, %s8278_s15  ;;  %v5120_v38 = vld [vmem:[%s9670_s13 + $0x88] sm:$0xff] }
 0x120   : > { %v4042_v35 = vshll.u32 %v9344_v1, 16  ;;  %v3997_v56 = vor.u32 %v3996_v46, %v3993_v25  ;;  %v4007_v13 = vor.u32 %v4006_v21, %v9893_v10  ;;  %v4024_v11 = vshll.u32 %v9340_v57, 16  ;;  %v8096_v1 = vld [vmem:[%s8405_s10 + $0x24] sm:$0xf]  ;;  %v9932_v57 = vld [vmem:[%s8405_s10 + $0xbc] sm:$0x1] }
 0x121   : > { %v4052_v54 = vshrl.u32 %v9357_v59, 16  ;;  %v6503_v29 = vcombine.low %v8094_v27, %v8095_v30  ;;  %v6504_v26 = vcombine.low %v8096_v1, %v8097_v32  ;;  %v4048_v24 = vshll.u32 %v9357_v59, 16  ;;  %v5124_v32 = vld [vmem:[%s9670_s13 + $0xa8] sm:$0xff] }
 0x122   : > { %v6735_v3 = vcombine.low %v3931_v9, %v3941_v2  ;;  %v6736_v49 = vcombine.low %v3955_v40, %v3965_v42  ;;  %v3974_v16 = vrot.slane %v3973_v61, 4  ;;  %v3988_v20 = vrot.slane %v3986_v33, 5  ;;  %5201 = vrot.lane.b32.xlu1 %v5120_v38, %s8278_s15  ;;  %v5123_v61 = vld [vmem:[%s9670_s13 + $0xa0] sm:$0xff] }
 0x123   : > { %v3984_v18 = vrot.slane %v3983_v14, 4  ;;  %v4012_v53 = vrot.slane %v4010_v43, 5  ;;  %v4017_v44 = vrot.slane %v4015_v58, 4  ;;  %v4020_v45 = vrot.slane %v4018_v52, 5  ;;  %v9947_v52 = vld [vmem:[%s8405_s10 + $0xc8] sm:$0x1]  ;;  %5203 = vrot.lane.b32.xlu0 %v5121_v22, %s8278_s15 }
 0x124   : > { %v3998_v59 = vrot.slane %v3997_v56, 4  ;;  %v4008_v36 = vrot.slane %v4007_v13, 4  ;;  %v9939_v7 = vrot.slane %v4024_v11, 5  ;;  %v4030_v12 = vrot.slane %v4028_v15, 4  ;;  %7321 = vmatmul.mubr.msk.bf16.gmra.mrb[16].mxu0 %vm805_vm4, %v6735_v3  ;;  %v11401_v43 = vld [vmem:[#allocation20_spill] sm:$0xff]  ;;  %v8100_v56 = vld [vmem:[%s11294_s2 + $0x58] sm:$0xff]  }
 0x125   : > { %v4041_v25 = vrot.slane %v4039_v39, 4  ;;  %v4044_v46 = vrot.slane %v4042_v35, 5  ;;  %v9942_v21 = vrot.slane %v4048_v24, 5  ;;  %v4054_v50 = vrot.slane %v4052_v54, 4  ;;  %7153 = vmatmul.mubr.msk.bf16.vlgmr.msra.gmra.mrb[0].mxu1 %vm805_vm4, %v6503_v29  ;;  %7324 = vmatprep.mubr.msk.bf16.mxu0 %vm805_vm4, %v6736_v49  ;;  %v8102_v24 = vld [vmem:[%s8405_s10 + $0x40] sm:$0xf] }
 0x126   : > { %v4063_v47 = vshrl.u32 %v9413_v51, 16  ;;  %v4066_v58 = vshll.u32 %v9413_v51, 16  ;;  %v3979_v15 = vsel %vm8432_vm3, %v3974_v16, %v9883_v55  ;;  %v3989_v39 = vsel %vm8432_vm3, %v3984_v18, %v3988_v20  ;;  %v5122_v51 = vld [vmem:[%s9670_s13 + $0x98] sm:$0xff]  ;;  %7156 = vmatprep.mubr.msk.bf16.mxu1 %vm805_vm4, %v6504_v26  ;;  %7377 = vmatpush3.bf16.msra.mxu1 %v11401_v43  ;;  %v9987_v18 = vld [vmem:[%s8405_s10 + $0xd4] sm:$0x1] }
 0x127   : > { %v4021_v60 = vor.u32 %v4020_v45, %v4017_v44  ;;  %v4034_v19 = vshll.u32 %v9932_v57, 16  ;;  %v4076_v48 = vshrl.u32 %v9416_v62, 16  ;;  %v4003_v55 = vsel %vm8432_vm3, %v3998_v59, %v9893_v10  ;;  %v8099_v10 = vld [vmem:[%s8405_s10 + $0x34] sm:$0xf]  ;;  %7375 = vmatprep.subr.bf16.mxu1 %v8100_v56  ;;  %5205 = vrot.lane.b32.xlu1 %v5122_v51, %s8278_s15  ;;  %v8101_v26 = vld [vmem:[%s8405_s10 + $0x3c] sm:$0xf] }
 0x128   : > { %v4031_v9 = vor.u32 %v4030_v12, %v9939_v7  ;;  %v4072_v2 = vshll.u32 %v9416_v62, 16  ;;  %v4013_v33 = vsel %vm8432_vm3, %v4008_v36, %v4012_v53  ;;  %v4045_v40 = vor.u32 %v4044_v46, %v4041_v25  ;;  %5207 = vrot.lane.b32.xlu0 %v5123_v61, %s8278_s15  ;;  %v8103_v53 = vld [vmem:[%s11294_s2 + $0x60] ss:$0 sps:$4 sm:$0x33]   ;;  %v5125_v45 = vld [vmem:[%s9670_s13 + $0xb0] sm:$0xff]  ;;  %v5126_v22 = vld [vmem:[%s9670_s13 + $0xb8] sm:$0xff] }
 0x129   : > { %v4055_v42 = vor.u32 %v4054_v50, %v9942_v21  ;;  %v4058_v14 = vshll.u32 %v9947_v52, 16  ;;  %v6505_v35 = vcombine.low %v8098_v28, %v8099_v10  ;;  %v6737_v62 = vcombine.low %v3979_v15, %v3989_v39  ;;  %v8110_v43 = vld [vmem:[%s8405_s10 + $0x58] sm:$0xf] }
 0x12a   : > { %v4022_v13 = vrot.slane %v4021_v60, 4  ;;  %v4036_v11 = vrot.slane %v4034_v19, 5  ;;  %v4065_v37 = vrot.slane %v4063_v47, 4  ;;  %v4068_v54 = vrot.slane %v4066_v58, 5  ;;  %7378 = vmatpush3.bf16.msra.mxu1 %v8100_v56  ;;  %v11402_v47 = vld [vmem:[#allocation8_spill] sm:$0xff] }
 0x12b   : > { %v6738_v27 = vcombine.low %v4003_v55, %v4013_v33  ;;  %v4032_v30 = vrot.slane %v4031_v9, 4  ;;  %v9981_v29 = vrot.slane %v4072_v2, 5  ;;  %v4078_v1 = vrot.slane %v4076_v48, 4  ;;  %7641 = vmatprep.subr.msk.bf16.mxu1 %vm854_vm0, %v8103_v53  ;;  %5209 = vrot.lane.b32.xlu1 %v5124_v32, %s8278_s15  ;;  %v10015_v58 = vld [vmem:[%s8405_s10 + $0x78] sm:$0xf]  ;;  %v5127_v55 = vld [vmem:[%s9670_s13 + $0xc0] sm:$0xff] }
 0x12c   : > { %v6506_v3 = vcombine.low %v8101_v26, %v8102_v24  ;;  %v4046_v49 = vrot.slane %v4045_v40, 4  ;;  %v4056_v16 = vrot.slane %v4055_v42, 4  ;;  %v4060_v20 = vrot.slane %v4058_v14, 5  ;;  %7325 = vmatmul.mubr.msk.bf16.gmra.mrb[20].mxu0 %vm805_vm4, %v6737_v62  ;;  %5211 = vrot.lane.b32.xlu0 %v5125_v45, %s8278_s15  ;;  %v8107_v60 = vld [vmem:[%s8405_s10 + $0x4c] sm:$0xf]  ;;  %v11403_v56 = vld [vmem:[#allocation16_spill] sm:$0xff] }
 0x12d   : > { %v4069_v44 = vor.u32 %v4068_v54, %v4065_v37  ;;  %7157 = vmatmul.mubr.msk.bf16.gmra.mrb[4].mxu1 %vm805_vm4, %v6505_v35  ;;  %7328 = vmatprep.mubr.msk.bf16.mxu0 %vm805_vm4, %v6738_v27  ;;  %v4027_v38 = vsel %vm8432_vm3, %v4022_v13, %v9939_v7  ;;  %v4037_v59 = vsel %vm8432_vm3, %v4032_v30, %v4036_v11  ;;  %v4082_v12 = vshll.u32 %v9987_v18, 16  ;;  %v8104_v7 = vld [vmem:[%s8405_s10 + $0x1c] sm:$0xf]  ;;  %v8108_v33 = vld [vmem:[%s8405_s10 + $0x28] sm:$0xf] }
 0x12e   : > { %v4079_v36 = vor.u32 %v4078_v1, %v9981_v29  ;;  %7160 = vmatprep.mubr.msk.bf16.mxu1 %vm805_vm4, %v6506_v3  ;;  %v4051_v25 = vsel %vm8432_vm3, %v4046_v49, %v9942_v21  ;;  %v4061_v46 = vsel %vm8432_vm3, %v4056_v16, %v4060_v20  ;;  %v4417_v50 = vrot.slane %v8104_v7, 5  ;;  %7379 = vmatpush3.bf16.msra.mxu1 %v11402_v47  ;;  %v8106_v21 = vld [vmem:[%s8405_s10 + $0x48] sm:$0xf]  ;;  %v8109_v14 = vld [vmem:[%s8405_s10 + $0x54] sm:$0xf]  ;;  %v11404_v20 = vld [vmem:[#allocation17_spill] sm:$0xff] }
 0x12f   : > { %v2384_v15 = vshrl.u32 %v10015_v58, 16  ;;  %v2387_v39 = vshll.u32 %v10015_v58, 16  ;;  %v6507_v19 = vcombine.low %v8106_v21, %v8107_v60  ;;  %v6739_v51 = vcombine.low %v4027_v38, %v4037_v59  ;;  %5213 = vrot.lane.b32.xlu1 %v5126_v22, %s8278_s15  ;;  %v5128_v42 = vld [vmem:[%s9670_s13 + $0xc8] sm:$0xff]  ;;  %v8111_v10 = vld [vmem:[%s8405_s10 + $0x18] sm:$0xf]  ;;  %v5129_v3 = vld [vmem:[%s9670_s13 + $0xd0] sm:$0xff] }
 0x130   : > { %v4070_v48 = vrot.slane %v4069_v44, 4  ;;  %v6740_v9 = vcombine.low %v4051_v25, %v4061_v46  ;;  %v4080_v2 = vrot.slane %v4079_v36, 4  ;;  %v4084_v61 = vrot.slane %v4082_v12, 5  ;;  %v10031_v11 = vld [vmem:[%s8405_s10 + $0x7c] sm:$0xf]  ;;  %5215 = vrot.lane.b32.xlu0 %v5127_v55, %s8278_s15  ;;  %v11405_v55 = vld [vmem:[#allocation18_spill] sm:$0xff] }
 0x131   : > { %v4424_v40 = vrot.slane %v8108_v33, 5  ;;  %v6508_v28 = vcombine.low %v8109_v14, %v8110_v43  ;;  %v6761_v35 = vrot.slane %v8111_v10, 9  ;;  %v4419_v62 = vrot.slane %v4417_v50, 4  ;;  %v8113_v27 = vld [vmem:[%s8405_s10 + $0x80] sm:$0x1]  ;;  %v5130_v45 = vld [vmem:[%s9670_s13 + $0xd8] sm:$0xff] }
 0x132   : > { %v4420_v13 = vrot.slane %v11403_v56, 5  ;;  %v2393_v37 = vshll.u32 %v10031_v11, 16  ;;  %v2397_v54 = vshrl.u32 %v10031_v11, 16  ;;  %v2403_v30 = vshll.u32 %v8113_v27, 16  ;;  %v8114_v26 = vld [vmem:[%s8405_s10 + $0x24] sm:$0xf] }
 0x133   : > { %v10037_v1 = vrot.slane %v2384_v15, 4  ;;  %v4075_v32 = vsel %vm8432_vm3, %v4070_v48, %v9981_v29  ;;  %v6762_v24 = vrot.slane %v8114_v26, 9  ;;  %5217 = vrot.lane.b32.xlu1 %v5128_v42, %s8278_s15  ;;  %v4085_v49 = vsel %vm8432_vm3, %v4080_v2, %v4084_v61  ;;  %v8115_v44 = vld [vmem:[%s8405_s10 + $0x34] sm:$0xf]  ;;  %v8116_v12 = vld [vmem:[%s8405_s10 + $0x30] sm:$0xf] }
 0x134   : > { %7329 = vmatmul.mubr.msk.bf16.gmra.mrb[24].mxu0 %vm805_vm4, %v6739_v51  ;;  %v4426_v16 = vrot.slane %v4424_v40, 4  ;;  %v4427_v53 = vrot.slane %v11404_v20, 5  ;;  %v4431_v29 = vrot.slane %v8115_v44, 5  ;;  %v10053_v38 = vrot.slane %v2387_v39, 5  ;;  %v8117_v47 = vld [vmem:[%s8405_s10 + $0x40] sm:$0xf]  ;;  %5219 = vrot.lane.b32.xlu0 %v5129_v3, %s8278_s15 }
 0x135   : > { %7161 = vmatmul.mubr.msk.bf16.gmra.mrb[8].mxu1 %vm805_vm4, %v6507_v19  ;;  %7332 = vmatprep.mubr.msk.bf16.mxu0 %vm805_vm4, %v6740_v9  ;;  %v4418_v59 = vsel %vm8700_vm7, %v6761_v35, %v4417_v50  ;;  %v4421_v36 = vsel %vm8700_vm7, %v4419_v62, %v4420_v13  ;;  %v6763_v22 = vrot.slane %v8116_v12, 9  ;;  %v10061_v25 = vrot.slane %v2393_v37, 5  ;;  %v8118_v39 = vld [vmem:[%s8405_s10 + $0x60] sm:$0xf]  ;;  %v8119_v50 = vld [vmem:[%s8405_s10 + $0x64] sm:$0xf] }
 0x136   : > { %7164 = vmatprep.mubr.msk.bf16.mxu1 %vm805_vm4, %v6508_v28  ;;  %v10063_v46 = vrot.slane %v2397_v54, 4  ;;  %v10065_v7 = vrot.slane %v2403_v30, 5  ;;  %v4438_v15 = vrot.slane %v8117_v47, 5  ;;  %v6509_v21 = vcombine.low %v8118_v39, %v8119_v50  ;;  %v8120_v19 = vld [vmem:[%s8405_s10 + $0x6c] sm:$0xf]  ;;  %v5131_v2 = vld [vmem:[%s9670_s13 + $0xe0] sm:$0xff] }
 0x137   : > { %v6741_v60 = vcombine.low %v4075_v32, %v4085_v49  ;;  %v10073_v51 = vld [vmem:[%s8405_s10 + $0x70] sm:$0xf]  ;;  %v4434_v9 = vrot.slane %v11405_v55, 5  ;;  %5221 = vrot.lane.b32.xlu1 %v5130_v45, %s8278_s15  ;;  %v6782_v61 = vcombine.low %v4418_v59, %v4421_v36  ;;  %v10081_v33 = vsel %vm8700_vm7, %v6762_v24, %v4424_v40  ;;  %v10090_v28 = vld [vmem:[%s8405_s10 + $0x84] sm:$0xf]  ;;  %v11406_v30 = vld [vmem:[#allocation19_spill] sm:$0xff] }
 0x138   : > { %v6510_v48 = vcombine.low %v8120_v19, %v10073_v51  ;;  %v10085_v42 = vsel %vm8700_vm7, %v4426_v16, %v4427_v53  ;;  %v4433_v14 = vrot.slane %v4431_v29, 4  ;;  %v6511_v43 = vcombine.low %v10015_v58, %v10031_v11  ;;  %v10093_v10 = vld [vmem:[%s8405_s10 + $0x88] sm:$0xf]  ;;  %v8124_v62 = vld [vmem:[%s8405_s10 + $0x3c] sm:$0xf]  ;;  %5223 = vrot.lane.b32.xlu0 %v5131_v2, %s8278_s15 }
 0x139   : > { %v6512_v35 = vcombine.low %v10090_v28, %v10093_v10  ;;  %v10099_v40 = vsel %vm8700_vm7, %v6763_v22, %v4431_v29  ;;  %v6764_v56 = vrot.slane %v8124_v62, 9  ;;  %v10103_v13 = vld [vmem:[%s8405_s10 + $0x94] sm:$0xf]  ;;  %v10106_v37 = vld [vmem:[%s8405_s10 + $0x90] sm:$0xf]  ;;  %v4440_v27 = vrot.slane %v4438_v15, 4 }
 0x13a   : > { %v6513_v54 = vcombine.low %v10106_v37, %v10103_v13  ;;  %v4441_v32 = vrot.slane %v11406_v30, 5  ;;  %v8127_v26 = vld [vmem:[%s8405_s10 + $0x4c] sm:$0xf]  ;;  %v6783_v3 = vcombine.low %v10081_v33, %v10085_v42  ;;  %v8128_v49 = vld [vmem:[%s8405_s10 + $0x58] sm:$0xf]  ;;  %v2360_v20 = vshrl.u32 %v8120_v19, 16 }
 0x13b   : > { %v4445_v24 = vrot.slane %v8127_v26, 5  ;;  %v4452_v16 = vrot.slane %v8128_v49, 5  ;;  %v2363_v53 = vshll.u32 %v8120_v19, 16  ;;  %v4435_v44 = vsel %vm8700_vm7, %v4433_v14, %v4434_v9  ;;  %v10122_v29 = vld [vmem:[%s8405_s10 + $0x9c] sm:$0xf] }
 0x13c   : > { %7333 = vmatmul.mubr.msk.bf16.gmra.mrb[28].mxu0 %vm805_vm4, %v6741_v60  ;;  %v10125_v45 = vld [vmem:[%s8405_s10 + $0xa0] sm:$0xf]  ;;  %v8131_v36 = vld [vmem:[%s8405_s10 + $0x48] sm:$0xf]  ;;  %v8132_v22 = vld [vmem:[%s8405_s10 + $0x64] sm:$0xf]  ;;  %v10134_v39 = vsel %vm8700_vm7, %v6764_v56, %v4438_v15  ;;  %v10141_v9 = vsel %vm8700_vm7, %v4440_v27, %v4441_v32  ;;  %v6784_v14 = vcombine.low %v10099_v40, %v4435_v44 }
 0x13d   : > { %7165 = vmatmul.mubr.msk.bf16.gmra.mrb[12].mxu1 %vm805_vm4, %v6509_v21  ;;  %7342 = vmatprep.mubr.msk.bf16.mxu0 %vm805_vm4, %v6782_v61  ;;  %v6514_v59 = vcombine.low %v10122_v29, %v10125_v45  ;;  %v6765_v12 = vrot.slane %v8131_v36, 9  ;;  %v4459_v47 = vrot.slane %v8132_v22, 5  ;;  %v4448_v50 = vrot.slane %v9573_v23, 5  ;;  %v8133_v21 = vld [vmem:[%s8405_s10 + $0x54] sm:$0xf] }
 0x13e   : > { %7168 = vmatprep.mubr.msk.bf16.mxu1 %vm805_vm4, %v6510_v48  ;;  %v6766_v60 = vrot.slane %v8133_v21, 9  ;;  %v8134_v19 = vld [vmem:[%s8405_s10 + $0x70] sm:$0xf]  ;;  %v4447_v2 = vrot.slane %v4445_v24, 4  ;;  %v2369_v48 = vshll.u32 %v10073_v51, 16  ;;  %v2373_v61 = vshrl.u32 %v10073_v51, 16 }
 0x13f   : > { %v4466_v55 = vrot.slane %v8134_v19, 5  ;;  %v4454_v15 = vrot.slane %v4452_v16, 4  ;;  %v4455_v33 = vrot.slane %v9640_v5, 5  ;;  %v2362_v23 = vrot.slane %v2360_v20, 4  ;;  %v8135_v62 = vld [vmem:[%s8405_s10 + $0x60] sm:$0xf] }
 0x140   : > { %v2365_v42 = vrot.slane %v2363_v53, 5  ;;  %v6767_v56 = vrot.slane %v8135_v62, 9  ;;  %v4461_v30 = vrot.slane %v4459_v47, 4  ;;  %v4462_v26 = vrot.slane %v9684_v6, 5  ;;  %v10150_v27 = vld [vmem:[%s8405_s10 + $0xac] sm:$0xf] }
 0x141   : > { %v10153_v32 = vld [vmem:[%s8405_s10 + $0xa8] sm:$0xf]  ;;  %v8138_v51 = vld [vmem:[%s8405_s10 + $0x6c] sm:$0xf]  ;;  %v4468_v5 = vrot.slane %v4466_v55, 4  ;;  %v4469_v20 = vrot.slane %v9724_v4, 5  ;;  %v6785_v40 = vcombine.low %v10134_v39, %v10141_v9  ;;  %v4446_v6 = vsel %vm8700_vm7, %v6765_v12, %v4445_v24 }
 0x142   : > { %v6515_v49 = vcombine.low %v10153_v32, %v10150_v27  ;;  %v6768_v36 = vrot.slane %v8138_v51, 9  ;;  %v10163_v53 = vrot.slane %v2369_v48, 5  ;;  %v2375_v44 = vrot.slane %v2373_v61, 4  ;;  %v8139_v12 = vld [vmem:[%s8405_s10 + $0x74] sm:$0x1] }
 0x143   : > { %v4449_v22 = vsel %vm8700_vm7, %v4447_v2, %v4448_v50  ;;  %v10170_v4 = vsel %vm8700_vm7, %v6766_v60, %v4452_v16  ;;  %v10174_v39 = vsel %vm8700_vm7, %v4454_v15, %v4455_v33  ;;  %v2366_v24 = vor.u32 %v2365_v42, %v2362_v23  ;;  %v8140_v21 = vld [vmem:[%s8405_s10 + $0x78] sm:$0xf]  ;;  %v10199_v11 = vld [vmem:[%s8405_s10 + $0xb4] sm:$0xf]  ;;  %v8143_v9 = vld [vmem:[%s8405_s10 + $0x7c] sm:$0xf] }
 0x144   : > { %7343 = vmatmul.mubr.msk.bf16.vlgmr.msra.gmra.mrb[0].mxu0 %vm805_vm4, %v6783_v3  ;;  %v10183_v3 = vsel %vm8700_vm7, %v6767_v56, %v4459_v47  ;;  %v10187_v16 = vsel %vm8700_vm7, %v4461_v30, %v4462_v26  ;;  %v2379_v50 = vshll.u32 %v8139_v12, 16  ;;  %v6769_v60 = vrot.slane %v8140_v21, 9  ;;  %v10196_v58 = vld [vmem:[%s8405_s10 + $0xb8] sm:$0xf]  ;;  %v10216_v61 = vld [vmem:[%s8405_s10 + $0xc0] sm:$0xf] }
 0x145   : > { %7169 = vmatmul.mubr.msk.bf16.gmra.mrb[16].mxu1 %vm805_vm4, %v6511_v43  ;;  %7346 = vmatprep.mubr.msk.bf16.mxu0 %vm805_vm4, %v6784_v14  ;;  %v6516_v43 = vcombine.low %v10199_v11, %v10196_v58  ;;  %v10205_v47 = vsel %vm8700_vm7, %v6768_v36, %v4466_v55  ;;  %v10209_v19 = vsel %vm8700_vm7, %v4468_v5, %v4469_v20  ;;  %v4473_v2 = vrot.slane %v8143_v9, 5  ;;  %v8146_v51 = vld [vmem:[%s8405_s10 + $0x84] sm:$0xf] }
 0x146   : > { %7172 = vmatprep.mubr.msk.bf16.mxu1 %vm805_vm4, %v6512_v35  ;;  %v6786_v48 = vcombine.low %v4446_v6, %v4449_v22  ;;  %v10213_v35 = vld [vmem:[%s8405_s10 + $0xc4] sm:$0xf]  ;;  %v2376_v33 = vor.u32 %v2375_v44, %v10163_v53  ;;  %v2390_v55 = vor.u32 %v10053_v38, %v10037_v1  ;;  %v6787_v23 = vcombine.low %v10170_v4, %v10174_v39  ;;  %v8147_v39 = vld [vmem:[%s8405_s10 + $0x88] sm:$0xf] }
 0x147   : > { %v6517_v15 = vcombine.low %v10216_v61, %v10213_v35  ;;  %v6788_v42 = vcombine.low %v10183_v3, %v10187_v16  ;;  %v10227_v14 = vrot.slane %v2366_v24, 4  ;;  %v2400_v62 = vor.u32 %v10063_v46, %v10061_v25 }
 0x148   : > { %v6789_v56 = vcombine.low %v10205_v47, %v10209_v19  ;;  %v10233_v30 = vrot.slane %v2379_v50, 5  ;;  %v10237_v1 = vsel %vm8700_vm7, %v6769_v60, %v4473_v2  ;;  %v4476_v38 = vrot.slane %v9752_v63, 5 }
 0x149   : > { %v4475_v26 = vrot.slane %v4473_v2, 4  ;;  %v6770_v36 = vrot.slane %v8146_v51, 9  ;;  %v2408_v5 = vshrl.u32 %v10090_v28, 16  ;;  %v2411_v46 = vshll.u32 %v10090_v28, 16  ;;  %v8148_v28 = vld [vmem:[%s8405_s10 + $0x94] sm:$0xf] }
 0x14a   : > { %v10243_v20 = vrot.slane %v2376_v33, 4  ;;  %v10245_v6 = vrot.slane %v2390_v55, 4  ;;  %v2417_v44 = vshll.u32 %v10093_v10, 16  ;;  %v2421_v22 = vshrl.u32 %v10093_v10, 16  ;;  %v8149_v33 = vld [vmem:[%s8405_s10 + $0x8c] sm:$0x1] }
 0x14b   : > { %v2372_v63 = vsel %vm8432_vm3, %v10227_v14, %v10163_v53  ;;  %v10254_v4 = vrot.slane %v2400_v62, 4  ;;  %v4480_v24 = vrot.slane %v8147_v39, 5  ;;  %v4487_v12 = vrot.slane %v8148_v28, 5  ;;  %v8151_v39 = vld [vmem:[%s8405_s10 + $0xa0] sm:$0xf] }
 0x14c   : > { %7347 = vmatmul.mubr.msk.bf16.gmra.mrb[4].mxu0 %vm805_vm4, %v6785_v40  ;;  %v2432_v10 = vshrl.u32 %v10106_v37, 16  ;;  %v2435_v40 = vshll.u32 %v10106_v37, 16  ;;  %v2441_v53 = vshll.u32 %v10103_v13, 16  ;;  %v2445_v50 = vshrl.u32 %v10103_v13, 16 }
 0x14d   : > { %7173 = vmatmul.mubr.msk.bf16.gmra.mrb[20].mxu1 %vm805_vm4, %v6513_v54  ;;  %7350 = vmatprep.mubr.msk.bf16.mxu0 %vm805_vm4, %v6786_v48  ;;  %v10273_v54 = vsel %vm8700_vm7, %v4475_v26, %v4476_v38  ;;  %v4483_v21 = vrot.slane %v9805_v17, 5  ;;  %v2410_v60 = vrot.slane %v2408_v5, 4  ;;  %v2413_v9 = vrot.slane %v2411_v46, 5  ;;  %v8150_v17 = vld [vmem:[%s8405_s10 + $0x90] sm:$0xf] }
 0x14e   : > { %7176 = vmatprep.mubr.msk.bf16.mxu1 %vm805_vm4, %v6514_v59  ;;  %v2382_v37 = vsel %vm8432_vm3, %v10243_v20, %v10233_v30  ;;  %v2396_v13 = vsel %vm8432_vm3, %v10245_v6, %v10061_v25  ;;  %v10284_v2 = vrot.slane %v2417_v44, 5  ;;  %v2423_v59 = vrot.slane %v2421_v22, 4 }
 0x14f   : > { %v4482_v48 = vrot.slane %v4480_v24, 4  ;;  %v2427_v55 = vshll.u32 %v8149_v33, 16  ;;  %v6771_v14 = vrot.slane %v8150_v17, 9  ;;  %v4489_v62 = vrot.slane %v4487_v12, 4 }
 0x150   : > { %v2434_v38 = vrot.slane %v2432_v10, 4  ;;  %v2437_v26 = vrot.slane %v2435_v40, 5  ;;  %v10288_v51 = vrot.slane %v2441_v53, 5  ;;  %v2447_v30 = vrot.slane %v2445_v50, 4 }
 0x151   : > { %v2414_v5 = vor.u32 %v2413_v9, %v2410_v60  ;;  %v4490_v46 = vrot.slane %v9816_v41, 5  ;;  %v2456_v25 = vshrl.u32 %v10122_v29, 16  ;;  %v2459_v20 = vshll.u32 %v10122_v29, 16 }
 0x152   : > { %v2406_v6 = vsel %vm8432_vm3, %v10254_v4, %v10065_v7  ;;  %v10299_v44 = vsel %vm8700_vm7, %v6770_v36, %v4480_v24  ;;  %v2424_v22 = vor.u32 %v2423_v59, %v10284_v2  ;;  %v4494_v28 = vrot.slane %v8151_v39, 5  ;;  %v8152_v24 = vld [vmem:[%s8405_s10 + $0x98] sm:$0x1] }
 0x153   : > { %v10306_v41 = vsel %vm8700_vm7, %v4482_v48, %v4483_v21  ;;  %v10308_v29 = vrot.slane %v2427_v55, 5  ;;  %v2465_v10 = vshll.u32 %v10125_v45, 16  ;;  %v2469_v7 = vshrl.u32 %v10125_v45, 16 }
 0x154   : > { %7351 = vmatmul.mubr.msk.bf16.gmra.mrb[8].mxu0 %vm805_vm4, %v6787_v23  ;;  %v10322_v23 = vsel %vm8700_vm7, %v6771_v14, %v4487_v12  ;;  %v2438_v36 = vor.u32 %v2437_v26, %v2434_v38  ;;  %v2448_v4 = vor.u32 %v2447_v30, %v10288_v51  ;;  %v2451_v40 = vshll.u32 %v8152_v24, 16  ;;  %v8153_v12 = vld [vmem:[%s8405_s10 + $0x9c] sm:$0xf]  ;;  %v8155_v26 = vld [vmem:[%s8405_s10 + $0xa4] sm:$0x1] }
 0x155   : > { %7177 = vmatmul.mubr.msk.bf16.gmra.mrb[24].mxu1 %vm805_vm4, %v6515_v49  ;;  %7354 = vmatprep.mubr.msk.bf16.mxu0 %vm805_vm4, %v6788_v42  ;;  %v2415_v45 = vrot.slane %v2414_v5, 4  ;;  %v10332_v49 = vsel %vm8700_vm7, %v4489_v62, %v4490_v46  ;;  %v2458_v3 = vrot.slane %v2456_v25, 4  ;;  %v2461_v16 = vrot.slane %v2459_v20, 5  ;;  %v8156_v20 = vld [vmem:[%s8405_s10 + $0xa8] sm:$0xf] }
 0x156   : > { %7180 = vmatprep.mubr.msk.bf16.mxu1 %vm805_vm4, %v6516_v43  ;;  %v2425_v42 = vrot.slane %v2424_v22, 4  ;;  %v6772_v53 = vrot.slane %v8153_v12, 9  ;;  %v4496_v50 = vrot.slane %v4494_v28, 4  ;;  %v4497_v21 = vrot.slane %v9873_v31, 5  ;;  %v8154_v31 = vld [vmem:[%s8405_s10 + $0xac] sm:$0xf] }
 0x157   : > { %v6550_v60 = vcombine.low %v2372_v63, %v2382_v37  ;;  %v6790_v9 = vcombine.low %v10237_v1, %v10273_v54  ;;  %v10338_v59 = vrot.slane %v2465_v10, 5  ;;  %v2471_v43 = vrot.slane %v2469_v7, 4  ;;  %v8157_v12 = vld [vmem:[%s8405_s10 + $0xb0] sm:$0x1] }
 0x158   : > { %v6551_v48 = vcombine.low %v2396_v13, %v2406_v6  ;;  %v2439_v33 = vrot.slane %v2438_v36, 4  ;;  %v2449_v55 = vrot.slane %v2448_v4, 4  ;;  %v2453_v17 = vrot.slane %v2451_v40, 5 }
 0x159   : > { %v6791_v14 = vcombine.low %v10299_v44, %v10306_v41  ;;  %v6792_v62 = vcombine.low %v10322_v23, %v10332_v49  ;;  %v2462_v38 = vor.u32 %v2461_v16, %v2458_v3  ;;  %v4501_v63 = vrot.slane %v8154_v31, 5 }
 0x15a   : > { %v2420_v1 = vsel %vm8432_vm3, %v2415_v45, %v10284_v2  ;;  %v2430_v54 = vsel %vm8432_vm3, %v2425_v42, %v10308_v29  ;;  %v10353_v37 = vsel %vm8700_vm7, %v6772_v53, %v4494_v28  ;;  %v10357_v13 = vsel %vm8700_vm7, %v4496_v50, %v4497_v21  ;;  %v8158_v50 = vld [vmem:[%s8405_s10 + $0xb8] sm:$0xf] }
 0x15b   : > { %v2472_v2 = vor.u32 %v2471_v43, %v10338_v59  ;;  %v2475_v30 = vshll.u32 %v8155_v26, 16  ;;  %v2480_v5 = vshrl.u32 %v10153_v32, 16  ;;  %v2483_v46 = vshll.u32 %v10153_v32, 16 }
 0x15c   : > { %7355 = vmatmul.mubr.msk.bf16.gmra.mrb[12].mxu0 %vm805_vm4, %v6789_v56  ;;  %v2444_v47 = vsel %vm8432_vm3, %v2439_v33, %v10288_v51  ;;  %v2454_v19 = vsel %vm8432_vm3, %v2449_v55, %v2453_v17  ;;  %v2489_v56 = vshll.u32 %v10150_v27, 16  ;;  %v2493_v25 = vshrl.u32 %v10150_v27, 16  ;;  %v8160_v33 = vld [vmem:[%s8405_s10 + $0xc4] sm:$0xf] }
 0x15d   : > { %7181 = vmatmul.mubr.msk.bf16.gmra.mrb[28].mxu1 %vm805_vm4, %v6517_v15  ;;  %7358 = vmatprep.mubr.msk.bf16.mxu0 %vm805_vm4, %v6790_v9  ;;  %v2463_v32 = vrot.slane %v2462_v38, 4  ;;  %v6773_v6 = vrot.slane %v8156_v20, 9  ;;  %v4503_v44 = vrot.slane %v4501_v63, 4  ;;  %v4504_v15 = vrot.slane %v9880_v8, 5 }
 0x15e   : > { %7206 = vmatprep.mubr.msk.bf16.mxu1 %vm805_vm4, %v6550_v60  ;;  %v2504_v22 = vshrl.u32 %v10199_v11, 16  ;;  %v2507_v39 = vshll.u32 %v10199_v11, 16  ;;  %v2513_v51 = vshll.u32 %v10196_v58, 16  ;;  %v2517_v28 = vshrl.u32 %v10196_v58, 16 }
 0x15f   : > { %v2473_v41 = vrot.slane %v2472_v2, 4  ;;  %v2477_v29 = vrot.slane %v2475_v30, 5  ;;  %v2482_v10 = vrot.slane %v2480_v5, 4  ;;  %v2485_v27 = vrot.slane %v2483_v46, 5  ;;  %v8162_v5 = vld [vmem:[%s8405_s10 + $0xc0] sm:$0xf] }
 0x160   : > { %v6552_v7 = vcombine.low %v2420_v1, %v2430_v54  ;;  %v6793_v23 = vcombine.low %v10353_v37, %v10357_v13  ;;  %v10388_v36 = vrot.slane %v2489_v56, 5  ;;  %v2495_v8 = vrot.slane %v2493_v25, 4  ;;  %v8161_v1 = vld [vmem:[%s8405_s10 + $0xbc] sm:$0x1] }
 0x161   : > { %v6553_v4 = vcombine.low %v2444_v47, %v2454_v19  ;;  %v2468_v11 = vsel %vm8432_vm3, %v2463_v32, %v10338_v59  ;;  %v4502_v58 = vsel %vm8700_vm7, %v6773_v6, %v4501_v63  ;;  %v4505_v24 = vsel %vm8700_vm7, %v4503_v44, %v4504_v15  ;;  %v8159_v59 = vld [vmem:[%s8405_s10 + $0xb4] sm:$0xf] }
 0x162   : > { %v2506_v40 = vrot.slane %v2504_v22, 4  ;;  %v2509_v45 = vrot.slane %v2507_v39, 5  ;;  %v10397_v49 = vrot.slane %v2513_v51, 5  ;;  %v2519_v3 = vrot.slane %v2517_v28, 4  ;;  %v8163_v39 = vld [vmem:[%s8405_s10 + $0xd0] sm:$0xf] }
 0x163   : > { %v2478_v16 = vsel %vm8432_vm3, %v2473_v41, %v2477_v29  ;;  %v2486_v42 = vor.u32 %v2485_v27, %v2482_v10  ;;  %v2499_v53 = vshll.u32 %v8157_v12, 16  ;;  %v4508_v21 = vrot.slane %v8158_v50, 5  ;;  %v8164_v10 = vld [vmem:[%s8405_s10 + $0xc8] sm:$0x1] }
 0x164   : > { %7359 = vmatmul.mubr.msk.bf16.gmra.mrb[16].mxu0 %vm805_vm4, %v6791_v14  ;;  %v6794_v60 = vcombine.low %v4502_v58, %v4505_v24  ;;  %v2496_v9 = vor.u32 %v2495_v8, %v10388_v36  ;;  %v6774_v43 = vrot.slane %v8159_v59, 9  ;;  %v4515_v55 = vrot.slane %v8160_v33, 5  ;;  %v5134_v59 = vld [vmem:[%s9670_s13 + $0xf8] sm:$0xff] }
 0x165   : > { %7207 = vmatmul.mubr.msk.bf16.vlgmr.msra.gmra.mrb[16].mxu1 %vm805_vm4, %v6551_v48  ;;  %7362 = vmatprep.mubr.msk.bf16.mxu0 %vm805_vm4, %v6792_v62  ;;  %v2528_v17 = vshrl.u32 %v10216_v61, 16  ;;  %v2531_v14 = vshll.u32 %v10216_v61, 16  ;;  %v2537_v38 = vshll.u32 %v10213_v35, 16  ;;  %v2541_v48 = vshrl.u32 %v10213_v35, 16 }
 0x166   : > { %7210 = vmatprep.mubr.msk.bf16.mxu1 %vm805_vm4, %v6552_v7  ;;  %v6554_v31 = vcombine.low %v2468_v11, %v2478_v16  ;;  %v2510_v62 = vor.u32 %v2509_v45, %v2506_v40  ;;  %v2520_v63 = vor.u32 %v2519_v3, %v10397_v49  ;;  %v2523_v54 = vshll.u32 %v8161_v1, 16  ;;  %v8165_v11 = vld [vmem:[%s8405_s10 + $0xcc] sm:$0xf]  ;;  %s8170_s10 = sshll.u32 %s8281_s7, 4  ;;  %s8171_s10 = int_to_ptr.vmem [resolvable:$false] %s8170_s10 }
 0x167   : > { %v2487_v37 = vrot.slane %v2486_v42, 4  ;;  %v2501_v13 = vrot.slane %v2499_v53, 5  ;;  %v4510_v2 = vrot.slane %v4508_v21, 4  ;;  %v4511_v26 = vrot.slane %v9932_v57, 5  ;;  %s8172_s8 = scalar_lea.vmem %s8171_s10, 8192 }
 0x168   : > { %v2497_v30 = vrot.slane %v2496_v9, 4  ;;  %v6775_v46 = vrot.slane %v8162_v5, 9  ;;  %v4517_v47 = vrot.slane %v4515_v55, 4  ;;  %v4518_v61 = vrot.slane %v9947_v52, 5  ;;  %v5133_v9 = vld [vmem:[%s9670_s13 + $0xf0] sm:$0xff] }
 0x169   : > { %v2530_v19 = vrot.slane %v2528_v17, 4  ;;  %v2533_v35 = vrot.slane %v2531_v14, 5  ;;  %v2539_v56 = vrot.slane %v2537_v38, 5  ;;  %v2543_v25 = vrot.slane %v2541_v48, 4  ;;  %5227 = vrot.lane.b32.xlu0 %v5133_v9, %s8278_s15 }
 0x16a   : > { %v2511_v32 = vrot.slane %v2510_v62, 4  ;;  %v2521_v20 = vrot.slane %v2520_v63, 4  ;;  %v2525_v6 = vrot.slane %v2523_v54, 5  ;;  %v2492_v57 = vsel %vm8432_vm3, %v2487_v37, %v10388_v36 }
 0x16b   : > { %v4509_v44 = vsel %vm8700_vm7, %v6774_v43, %v4508_v21  ;;  %v2502_v52 = vsel %vm8432_vm3, %v2497_v30, %v2501_v13  ;;  %v4512_v15 = vsel %vm8700_vm7, %v4510_v2, %v4511_v26  ;;  %v4516_v22 = vsel %vm8700_vm7, %v6775_v46, %v4515_v55  ;;  %v10470_v26 = vld [vmem:[%s11295_s3] ss:$0 sm:$0xff] }
 0x16c   : > { %7363 = vmatmul.mubr.msk.bf16.gmra.mrb[20].mxu0 %vm805_vm4, %v6793_v23  ;;  %v4522_v51 = vrot.slane %v8163_v39, 5  ;;  %v4519_v28 = vsel %vm8700_vm7, %v4517_v47, %v4518_v61  ;;  %v2534_v41 = vor.u32 %v2533_v35, %v2530_v19  ;;  %v2544_v29 = vor.u32 %v2543_v25, %v2539_v56 }
 0x16d   : > { %7211 = vmatmul.mubr.msk.bf16.gmra.mrb[20].mxu1 %vm805_vm4, %v6553_v4  ;;  %7366 = vmatprep.mubr.msk.bf16.mxu0 %vm805_vm4, %v6794_v60  ;;  %v2547_v27 = vshll.u32 %v8164_v10, 16  ;;  %v2516_v7 = vsel %vm8432_vm3, %v2511_v32, %v10397_v49  ;;  %v2526_v23 = vsel %vm8432_vm3, %v2521_v20, %v2525_v6  ;;  %v6555_v36 = vcombine.low %v2492_v57, %v2502_v52  ;;  %v5132_v60 = vld [vmem:[%s9670_s13 + $0xe8] sm:$0xff]  ;;  %s10990_s13 = scalar_lea.vmem [#allocation4], %s6313_s12 }
 0x16e   : > { %7214 = vmatprep.mubr.msk.bf16.mxu1 %vm805_vm4, %v6554_v31  ;;  %v6795_v8 = vcombine.low %v4509_v44, %v4512_v15  ;;  %v6796_v4 = vcombine.low %v4516_v22, %v4519_v28  ;;  %v6776_v58 = vrot.slane %v8165_v11, 9  ;;  %v4524_v24 = vrot.slane %v4522_v51, 4  ;;  %5225 = vrot.lane.b32.xlu1 %v5132_v60, %s8278_s15  ;;  %s6169_s25 = sshll.u32 %s10990_s13, 4  ;;  %s11131_s25 = int_to_ptr.vmem [resolvable:$true] %s6169_s25 }
 0x16f   : > { %v4525_v40 = vrot.slane %v9987_v18, 5  ;;  %v6556_v45 = vcombine.low %v2516_v7, %v2526_v23  ;;  %v2535_v3 = vrot.slane %v2534_v41, 4  ;;  %v2545_v16 = vrot.slane %v2544_v29, 4  ;;  %s8166_s29 = scalar_lea.vmem %s11131_s25, 4096  ;;  %p8173_p1 = scmp.lt.s32.totalorder %s11131_s25, %s8171_s10 }
 0x170   : > { %v2549_v42 = vrot.slane %v2547_v27, 5  ;;  %v4523_v49 = vsel %vm8700_vm7, %v6776_v58, %v4522_v51  ;;  %p8167_p12 = scmp.ne.s32.totalorder %s11131_s25, %s8166_s29  ;;  %p8174_p2 = scmp.lt.s32.totalorder %s8172_s8, %s8166_s29 }
 0x171   : > { %v4526_v12 = vsel %vm8700_vm7, %v4524_v24, %v4525_v40  ;;  %v2540_v18 = vsel %vm8432_vm3, %v2535_v3, %v2539_v56 }
 0x172   : > { %v2550_v53 = vsel %vm8432_vm3, %v2545_v16, %v2549_v42  ;;  %v6797_v50 = vcombine.low %v4523_v49, %v4526_v12  ;;  %5229 = vrot.lane.b32.xlu1 %v5134_v59, %s8278_s15  ;;  %p8168_p13 = pnand %p8167_p12, %p8355_p4  ;;  %p8175_p3 = por %p8174_p2, %p8173_p1 }
 0x173   : > { %v6557_v21 = vcombine.low %v2540_v18, %v2550_v53 }
 0x174   : > { %7367 = vmatmul.mubr.msk.bf16.gmra.mrb[24].mxu0 %vm805_vm4, %v6795_v8  ;;  %p8169_p0 = pneg %p8168_p13 }
 0x175   : > { %7215 = vmatmul.mubr.msk.bf16.gmra.mrb[24].mxu1 %vm805_vm4, %v6555_v36  ;;  %7370 = vmatprep.mubr.msk.bf16.mxu0 %vm805_vm4, %v6796_v4 }
 0x176   : > { %7218 = vmatprep.mubr.msk.bf16.mxu1 %vm805_vm4, %v6556_v45  ;;  %p8176_p5 = pnand %p8175_p3, %p8169_p0 }
 0x17c   : > { %7371 = vmatmul.mubr.msk.bf16.gmra.mrb[28].mxu0 %vm805_vm4, %v6797_v50 }
 0x17d   : > { %7219 = vmatmul.mubr.msk.bf16.gmra.mrb[28].mxu1 %vm805_vm4, %v6557_v21 }
 0x1f8   : > { %v7154_v0 = vpop.f32.mrb[0].mxu1 }
 0x1f9   : > { %v2008_v43 = vpop.f32.mrb[1].mxu1 }
 0x1fa   : > { %v7155_v33 = vpop.f32.mrb[2].mxu1 }
 0x1fb   : > { %v2011_v34 = vpop.f32.mrb[3].mxu1 }
 0x200   : > { %v7158_v55 = vpop.f32.mrb[4].mxu1 }
 0x201   : > { %v2024_v17 = vpop.f32.mrb[5].mxu1 }
 0x202   : > { %v7159_v14 = vpop.f32.mrb[6].mxu1 }
 0x203   : > { %v2027_v38 = vpop.f32.mrb[7].mxu1 }
 0x208   : > { %v7162_v48 = vpop.f32.mrb[8].mxu1 }
 0x209   : > { %v2040_v31 = vpop.f32.mrb[9].mxu1 }
 0x20a   : > { %v7163_v62 = vpop.f32.mrb[10].mxu1 }
 0x20b   : > { %v2043_v63 = vpop.f32.mrb[11].mxu1 }
 0x210   : > { %v7166_v1 = vpop.f32.mrb[12].mxu1 }
 0x211   : > { %v2056_v54 = vpop.f32.mrb[13].mxu1 }
 0x212   : > { %v7167_v37 = vpop.f32.mrb[14].mxu1 }
 0x213   : > { %v10465_v13 = vpop.f32.mrb[15].mxu1 }
 0x217   : > { %v7344_v2 = vpop.f32.mrb[0].mxu0 }
 0x218   : > { %v7380_v30 = vadd.f32 %v7344_v2, %v7154_v0  ;;  %v4681_v5 = vpop.f32.mrb[1].mxu0 }
 0x219   : > { %v7381_v46 = vadd.f32 %v4681_v5, %v2008_v43  ;;  %v7345_v47 = vpop.f32.mrb[2].mxu0 }
 0x21a   : > { %v10473_v61 = vadd.f32 %v7380_v30, %v10470_v26  ;;  %v7382_v19 = vadd.f32 %v7345_v47, %v7155_v33  ;;  %v4684_v35 = vpop.f32.mrb[3].mxu0 }
 0x21b   : > { %v7383_v56 = vadd.f32 %v4684_v35, %v2011_v34  ;;  %v10477_v25 = vadd.f32 %v7381_v46, %v10470_v26  ;;  %v10523_v34 = vpop.permute.xlu0 %5167 }
 0x21c   : > { %7787 = vtanh.f32 %v10473_v61  ;;  %v10480_v32 = vadd.f32 %v7382_v19, %v10470_v26 }
 0x21d   : > { %7789 = vtanh.f32 %v10477_v25  ;;  %v10485_v44 = vadd.f32 %v7383_v56, %v10470_v26 }
 0x21e   : > { %7791 = vtanh.f32 %v10480_v32 }
 0x21f   : > { %v7348_v20 = vpop.f32.mrb[4].mxu0  ;;  %v10543_v35 = vpop.permute.xlu0 %5169 }
 0x220   : > { %v7384_v6 = vadd.f32 %v7348_v20, %v7158_v55  ;;  %v4697_v57 = vpop.f32.mrb[5].mxu0  ;;  %v10525_v55 = vpop.permute.xlu1 %5171 }
 0x221   : > { %v7385_v52 = vadd.f32 %v4697_v57, %v2024_v17  ;;  %v7349_v15 = vpop.f32.mrb[6].mxu0 }
 0x222   : > { %v10488_v22 = vadd.f32 %v7384_v6, %v10470_v26  ;;  %v7386_v39 = vadd.f32 %v7349_v15, %v7159_v14  ;;  %v4700_v51 = vpop.f32.mrb[7].mxu0 }
 0x223   : > { %v7387_v28 = vadd.f32 %v4700_v51, %v2027_v38  ;;  %v10492_v41 = vadd.f32 %v7385_v52, %v10470_v26 }
 0x224   : > { %7793 = vtanh.f32 %v10488_v22  ;;  %v10496_v29 = vadd.f32 %v7386_v39, %v10470_v26  ;;  %v10548_v20 = vpop.permute.xlu1 %5173 }
 0x225   : > { %7795 = vtanh.f32 %v10485_v44  ;;  %v10502_v11 = vadd.f32 %v7387_v28, %v10470_v26 }
 0x226   : > { %v7788_v10 = vpop.eup %7787  ;;  %7797 = vtanh.f32 %v10492_v41 }
 0x227   : > { %v7352_v27 = vpop.f32.mrb[8].mxu0  ;;  %5331 = vrot.lane.b32.xlu0 %v7788_v10, %s8278_s15  ;;  %7799 = vtanh.f32 %v10496_v29  ;;  %v7790_v4 = vpop.eup %7789 }
 0x228   : > { %v7388_v7 = vadd.f32 %v7352_v27, %v7162_v48  ;;  %v4713_v23 = vpop.f32.mrb[9].mxu0  ;;  %v7792_v40 = vpop.eup %7791  ;;  %7801 = vtanh.f32 %v10502_v11 }
 0x229   : > { %v7389_v36 = vadd.f32 %v4713_v23, %v2040_v31  ;;  %v7353_v8 = vpop.f32.mrb[10].mxu0  ;;  %5333 = vrot.lane.b32.xlu1 %v7792_v40, %s8278_s15 }
 0x22a   : > { %v7390_v58 = vadd.f32 %v7353_v8, %v7163_v62  ;;  %v4716_v24 = vpop.f32.mrb[11].mxu0  ;;  %v10507_v3 = vadd.f32 %v7388_v7, %v10470_v26 }
 0x22b   : > { %v7391_v45 = vadd.f32 %v4716_v24, %v2043_v63  ;;  %5327 = vrot.lane.b32.xlu0 %v7790_v4, %s8278_s15  ;;  %v10514_v60 = vadd.f32 %v7389_v36, %v10470_v26 }
 0x22c   : > { %7803 = vtanh.f32 %v10507_v3  ;;  %v10520_v33 = vadd.f32 %v7390_v58, %v10470_v26 }
 0x22d   : > { %7805 = vtanh.f32 %v10514_v60  ;;  %v10529_v31 = vadd.f32 %v7391_v45, %v10470_v26  ;;  %v10565_v45 = vpop.permute.xlu0 %5175 }
 0x22e   : > { %v7794_v16 = vpop.eup %7793  ;;  %7807 = vtanh.f32 %v10520_v33 }
 0x22f   : > { %v7796_v42 = vpop.eup %7795  ;;  %v7356_v49 = vpop.f32.mrb[12].mxu0  ;;  %5339 = vrot.lane.b32.xlu0 %v7794_v16, %s8278_s15  ;;  %7809 = vtanh.f32 %v10529_v31 }
 0x230   : > { %5329 = vrot.lane.b32.xlu1 %v7796_v42, %s8278_s15  ;;  %v7392_v12 = vadd.f32 %v7356_v49, %v7166_v1  ;;  %v4729_v18 = vpop.f32.mrb[13].mxu0  ;;  %v7798_v21 = vpop.eup %7797 }
 0x231   : > { %v7393_v53 = vadd.f32 %v4729_v18, %v2056_v54  ;;  %v7357_v50 = vpop.f32.mrb[14].mxu0  ;;  %v7800_v0 = vpop.eup %7799 }
 0x232   : > { %v7394_v9 = vadd.f32 %v7357_v50, %v7167_v37  ;;  %v4732_v59 = vpop.f32.mrb[15].mxu0  ;;  %v7802_v14 = vpop.eup %7801  ;;  %v10533_v54 = vadd.f32 %v7392_v12, %v10470_v26 }
 0x233   : > { %v7395_v43 = vadd.f32 %v4732_v59, %v10465_v13  ;;  %5335 = vrot.lane.b32.xlu0 %v7798_v21, %s8278_s15  ;;  %v10541_v19 = vadd.f32 %v7393_v53, %v10470_v26  ;;  %v10571_v49 = vpop.permute.xlu1 %5177 }
 0x234   : > { %5341 = vrot.lane.b32.xlu1 %v7800_v0, %s8278_s15  ;;  %7811 = vtanh.f32 %v10533_v54  ;;  %v10546_v56 = vadd.f32 %v7394_v9, %v10470_v26 }
 0x235   : > { %7813 = vtanh.f32 %v10541_v19  ;;  %v10556_v36 = vadd.f32 %v7395_v43, %v10470_v26 }
 0x236   : > { %v7804_v30 = vpop.eup %7803  ;;  %7815 = vtanh.f32 %v10546_v56 }
 0x237   : > { %v7360_v17 = vpop.f32.mrb[16].mxu0  ;;  %5347 = vrot.lane.b32.xlu0 %v7804_v30, %s8278_s15  ;;  %v7806_v57 = vpop.eup %7805  ;;  %7817 = vtanh.f32 %v10556_v36 }
 0x238   : > { %v7208_v38 = vpop.f32.mrb[16].mxu1  ;;  %v4745_v48 = vpop.f32.mrb[17].mxu0  ;;  %5337 = vrot.lane.b32.xlu1 %v7802_v14, %s8278_s15 }
 0x239   : > { %v7396_v62 = vadd.f32 %v7360_v17, %v7208_v38  ;;  %v2769_v63 = vpop.f32.mrb[17].mxu1  ;;  %v7361_v1 = vpop.f32.mrb[18].mxu0 }
 0x23a   : > { %v7397_v37 = vadd.f32 %v4745_v48, %v2769_v63  ;;  %v7209_v13 = vpop.f32.mrb[18].mxu1  ;;  %v4748_v2 = vpop.f32.mrb[19].mxu0 }
 0x23b   : > { %v7398_v5 = vadd.f32 %v7361_v1, %v7209_v13  ;;  %v2772_v46 = vpop.f32.mrb[19].mxu1  ;;  %5343 = vrot.lane.b32.xlu0 %v7806_v57, %s8278_s15  ;;  %v7808_v23 = vpop.eup %7807  ;;  %v10563_v40 = vadd.f32 %v7396_v62, %v10470_v26 }
 0x23c   : > { %v10536_v47 = vadd.f32 %v4748_v2, %v2772_v46  ;;  %5349 = vrot.lane.b32.xlu1 %v7808_v23, %s8278_s15  ;;  %v7810_v42 = vpop.eup %7809  ;;  %v10577_v0 = vadd.f32 %v7397_v37, %v10470_v26  ;;  %v10588_v46 = vpop.permute.xlu0 %5179 }
 0x23d   : > { %7819 = vtanh.f32 %v10563_v40  ;;  %v10583_v1 = vadd.f32 %v7398_v5, %v10470_v26  ;;  %v10599_v5 = vpop.permute.xlu1 %5181 }
 0x23e   : > { %v7812_v18 = vpop.eup %7811  ;;  %7821 = vtanh.f32 %v10577_v0 }
 0x23f   : > { %v7364_v6 = vpop.f32.mrb[20].mxu0  ;;  %5355 = vrot.lane.b32.xlu0 %v7812_v18, %s8278_s15  ;;  %v7814_v63 = vpop.eup %7813  ;;  %7823 = vtanh.f32 %v10583_v1 }
 0x240   : > { %v7212_v52 = vpop.f32.mrb[20].mxu1  ;;  %v4761_v15 = vpop.f32.mrb[21].mxu0  ;;  %5345 = vrot.lane.b32.xlu1 %v7810_v42, %s8278_s15 }
 0x241   : > { %v7400_v39 = vadd.f32 %v7364_v6, %v7212_v52  ;;  %v2785_v51 = vpop.f32.mrb[21].mxu1  ;;  %v7365_v28 = vpop.f32.mrb[22].mxu0  ;;  %v10604_v52 = vadd.f32 %v10536_v47, %v10470_v26 }
 0x242   : > { %v10552_v10 = vadd.f32 %v4761_v15, %v2785_v51  ;;  %v7213_v27 = vpop.f32.mrb[22].mxu1  ;;  %v4764_v7 = vpop.f32.mrb[23].mxu0 }
 0x243   : > { %v7402_v8 = vadd.f32 %v7365_v28, %v7213_v27  ;;  %v2788_v4 = vpop.f32.mrb[23].mxu1  ;;  %v7816_v30 = vpop.eup %7815  ;;  %5351 = vrot.lane.b32.xlu0 %v7814_v63, %s8278_s15  ;;  %7825 = vtanh.f32 %v10604_v52 }
 0x244   : > { %v7403_v58 = vadd.f32 %v4764_v7, %v2788_v4  ;;  %5357 = vrot.lane.b32.xlu1 %v7816_v30, %s8278_s15  ;;  %v7818_v28 = vpop.eup %7817 }
 0x245   : > { %v10560_v24 = vadd.f32 %v7402_v8, %v10470_v26  ;;  %v10607_v8 = vadd.f32 %v7400_v39, %v10470_v26 }
 0x246   : > { %v10568_v16 = vadd.f32 %v7403_v58, %v10470_v26 }
 0x247   : > { %v7368_v12 = vpop.f32.mrb[24].mxu0  ;;  %7827 = vtanh.f32 %v10607_v8 }
 0x248   : > { %v7216_v53 = vpop.f32.mrb[24].mxu1  ;;  %v4777_v50 = vpop.f32.mrb[25].mxu0  ;;  %5353 = vrot.lane.b32.xlu1 %v7818_v28, %s8278_s15 }
 0x249   : > { %v7404_v21 = vadd.f32 %v7368_v12, %v7216_v53  ;;  %v2801_v9 = vpop.f32.mrb[25].mxu1  ;;  %v7369_v59 = vpop.f32.mrb[26].mxu0 }
 0x24a   : > { %v7405_v43 = vadd.f32 %v4777_v50, %v2801_v9  ;;  %v7217_v17 = vpop.f32.mrb[26].mxu1  ;;  %v4780_v14 = vpop.f32.mrb[27].mxu0 }
 0x24b   : > { %v10580_v38 = vadd.f32 %v7404_v21, %v10470_v26  ;;  %v7406_v48 = vadd.f32 %v7369_v59, %v7217_v17  ;;  %v2804_v62 = vpop.f32.mrb[27].mxu1  ;;  %v10610_v12 = vpop.permute.xlu0 %5183  ;;  %v10626_v59 = vadd.f32 %v10552_v10, %v10470_v26 }
 0x24c   : > { %v10586_v13 = vadd.f32 %v7405_v43, %v10470_v26  ;;  %v7407_v2 = vadd.f32 %v4780_v14, %v2804_v62  ;;  %v7820_v50 = vpop.eup %7819  ;;  %v10631_v14 = vpop.permute.xlu1 %5185 }
 0x24d   : > { %v10592_v37 = vadd.f32 %v7406_v48, %v10470_v26  ;;  %5363 = vrot.lane.b32.xlu0 %v7820_v50, %s8278_s15  ;;  %v7822_v17 = vpop.eup %7821  ;;  %7829 = vtanh.f32 %v10626_v59 }
 0x24e   : > { %v10597_v6 = vadd.f32 %v7407_v2, %v10470_v26  ;;  %v7824_v62 = vpop.eup %7823  ;;  %7831 = vtanh.f32 %v10560_v24 }
 0x24f   : > { %v7372_v57 = vpop.f32.mrb[28].mxu0  ;;  %v10633_v48 = vpop.permute.xlu0 %5187  ;;  %5365 = vrot.lane.b32.xlu1 %v7824_v62, %s8278_s15  ;;  %7833 = vtanh.f32 %v10568_v16  ;;  %v6820_v62 = vmul.f32 -1.442695, %v10473_v61 }
 0x250   : > { %v7220_v15 = vpop.f32.mrb[28].mxu1  ;;  %v4793_v51 = vpop.f32.mrb[29].mxu0  ;;  %7835 = vtanh.f32 %v10580_v38 }
 0x251   : > { %v7408_v27 = vadd.f32 %v7372_v57, %v7220_v15  ;;  %v2817_v7 = vpop.f32.mrb[29].mxu1  ;;  %v7373_v23 = vpop.f32.mrb[30].mxu0  ;;  %5359 = vrot.lane.b32.xlu0 %v7822_v17, %s8278_s15  ;;  %7837 = vtanh.f32 %v10586_v13 }
 0x252   : > { %v7409_v4 = vadd.f32 %v4793_v51, %v2817_v7  ;;  %v7221_v58 = vpop.f32.mrb[30].mxu1  ;;  %v4796_v42 = vpop.f32.mrb[31].mxu0  ;;  %7839 = vtanh.f32 %v10592_v37 }
 0x253   : > { %v10613_v18 = vadd.f32 %v7408_v27, %v10470_v26  ;;  %v7410_v47 = vadd.f32 %v7373_v23, %v7221_v58  ;;  %v2820_v53 = vpop.f32.mrb[31].mxu1  ;;  %v7826_v63 = vpop.eup %7825  ;;  %7841 = vtanh.f32 %v10597_v6 }
 0x254   : > { %v10617_v21 = vadd.f32 %v7409_v4, %v10470_v26  ;;  %v7411_v39 = vadd.f32 %v4796_v42, %v2820_v53  ;;  %v10639_v10 = vpop.permute.xlu1 %5189  ;;  %v10641_v2 = vpop.permute.xlu0 %5191  ;;  %5361 = vrot.lane.b32.xlu1 %v7826_v63, %s8278_s15 }
 0x255   : > { %v10621_v9 = vadd.f32 %v7410_v47, %v10470_v26  ;;  %7843 = vtanh.f32 %v10613_v18 }
 0x256   : > { %v10629_v43 = vadd.f32 %v7411_v39, %v10470_v26  ;;  %v7828_v26 = vpop.eup %7827  ;;  %7845 = vtanh.f32 %v10617_v21 }
 0x257   : > { %5371 = vrot.lane.b32.xlu0 %v7828_v26, %s8278_s15  ;;  %v7830_v30 = vpop.eup %7829  ;;  %7847 = vtanh.f32 %v10621_v9 }
 0x258   : > { %v10647_v57 = vpop.permute.xlu1 %5193  ;;  %v10649_v15 = vpop.permute.xlu0 %5195  ;;  %7849 = vtanh.f32 %v10629_v43 }
 0x259   : > { %v7832_v51 = vpop.eup %7831  ;;  %7851 = vpow2.f32 %v6820_v62 }
 0x25a   : > { %5373 = vrot.lane.b32.xlu1 %v7832_v51, %s8278_s15  ;;  %v7834_v28 = vpop.eup %7833 }
 0x25b   : > { %5367 = vrot.lane.b32.xlu0 %v7830_v30, %s8278_s15  ;;  %v7836_v23 = vpop.eup %7835 }
 0x25c   : > { %v10655_v27 = vpop.permute.xlu1 %5197  ;;  %v10657_v7 = vpop.permute.xlu0 %5199 }
 0x25d   : > { %v7838_v4 = vpop.eup %7837 }
 0x25e   : > { %5369 = vrot.lane.b32.xlu1 %v7834_v28, %s8278_s15  ;;  %v7840_v47 = vpop.eup %7839  ;;  %v6818_v28 = vmul.f32 -1.442695, %v10477_v25  ;;  %v6822_v25 = vmul.f32 -1.442695, %v10492_v41 }
 0x25f   : > { %5379 = vrot.lane.b32.xlu0 %v7836_v23, %s8278_s15  ;;  %v7842_v53 = vpop.eup %7841  ;;  %v6821_v23 = vmul.f32 -1.442695, %v10480_v32  ;;  %v6825_v32 = vmul.f32 -1.442695, %v10496_v29 }
 0x260   : > { %v10663_v58 = vpop.permute.xlu1 %5201  ;;  %v10665_v42 = vpop.permute.xlu0 %5203  ;;  %7853 = vpow2.f32 %v6818_v28 }
 0x261   : > { %v7844_v17 = vpop.eup %7843  ;;  %7855 = vpow2.f32 %v6821_v23 }
 0x262   : > { %5381 = vrot.lane.b32.xlu1 %v7840_v47, %s8278_s15  ;;  %v7846_v63 = vpop.eup %7845  ;;  %v6824_v47 = vmul.f32 -1.442695, %v10488_v22 }
 0x263   : > { %5375 = vrot.lane.b32.xlu0 %v7838_v4, %s8278_s15  ;;  %v7848_v51 = vpop.eup %7847 }
 0x264   : > { %v10671_v50 = vpop.permute.xlu1 %5205  ;;  %v10673_v39 = vpop.permute.xlu0 %5207  ;;  %7857 = vpow2.f32 %v6824_v47 }
 0x265   : > { %v7850_v4 = vpop.eup %7849 }
 0x266   : > { %5377 = vrot.lane.b32.xlu1 %v7842_v53, %s8278_s15  ;;  %v6819_v53 = vmul.f32 -1.442695, %v10485_v44  ;;  %v7852_v62 = vpop.eup %7851  ;;  %v6823_v44 = vmul.f32 -1.442695, %v10502_v11 }
 0x267   : > { %5387 = vrot.lane.b32.xlu0 %v7844_v17, %s8278_s15  ;;  %v4977_v22 = vadd.f32 1.0, %v7852_v62 }
 0x268   : > { %v10679_v26 = vpop.permute.xlu1 %5209  ;;  %v10681_v30 = vpop.permute.xlu0 %5211  ;;  %7859 = vpow2.f32 %v6819_v53 }
 0x269   : > { %7861 = vpow2.f32 %v6822_v25  ;;  %v6826_v25 = vmul.f32 -1.442695, %v10514_v60 }
 0x26a   : > { %5389 = vrot.lane.b32.xlu1 %v7848_v51, %s8278_s15  ;;  %7863 = vpow2.f32 %v6825_v32  ;;  %v7854_v28 = vpop.eup %7853 }
 0x26b   : > { %5383 = vrot.lane.b32.xlu0 %v7846_v63, %s8278_s15  ;;  %v7856_v23 = vpop.eup %7855  ;;  %7865 = vrcp.f32 %v4977_v22  ;;  %v4975_v41 = vadd.f32 1.0, %v7854_v28  ;;  %v6829_v22 = vmul.f32 -1.442695, %v10520_v33  ;;  %v6832_v33 = vmul.f32 -1.442695, %v10533_v54 }
 0x26c   : > { %v10688_v61 = vpop.permute.xlu1 %5213  ;;  %v10691_v17 = vpop.permute.xlu0 %5215  ;;  %7867 = vpow2.f32 %v6823_v44  ;;  %v6833_v54 = vmul.f32 -1.442695, %v10546_v56 }
 0x26d   : > { %11407 = vst [vmem:[#allocation9_spill] sm:$0xff] %v10691_v17  ;;  %v4978_v17 = vadd.f32 1.0, %v7856_v23 }
 0x26e   : > { %5385 = vrot.lane.b32.xlu1 %v7850_v4, %s8278_s15  ;;  %v6828_v4 = vmul.f32 -1.442695, %v10507_v3  ;;  %v7858_v29 = vpop.eup %7857 }
 0x26f   : > { %v4981_v32 = vadd.f32 1.0, %v7858_v29 }
 0x270   : > { %v10696_v63 = vpop.permute.xlu1 %5217  ;;  %v10698_v51 = vpop.permute.xlu0 %5219  ;;  %7869 = vpow2.f32 %v6828_v4 }
 0x271   : > { %11408 = vst [vmem:[#allocation10_spill] sm:$0xff] %v10696_v63  ;;  %11409 = vst [vmem:[#allocation11_spill] sm:$0xff] %v10698_v51  ;;  %7871 = vrcp.f32 %v4975_v41 }
 0x272   : > { %v7860_v63 = vpop.eup %7859  ;;  %7873 = vrcp.f32 %v4978_v17  ;;  %v6827_v17 = vmul.f32 -1.442695, %v10529_v31 }
 0x273   : > { %v7862_v62 = vpop.eup %7861  ;;  %v4976_v11 = vadd.f32 1.0, %v7860_v63  ;;  %7875 = vpow2.f32 %v6826_v25 }
 0x274   : > { %v10702_v47 = vpop.permute.xlu1 %5221  ;;  %v10704_v53 = vpop.permute.xlu0 %5223  ;;  %7877 = vrcp.f32 %v4981_v32  ;;  %v4979_v28 = vadd.f32 1.0, %v7862_v62 }
 0x275   : > { %11410 = vst [vmem:[#allocation12_spill] sm:$0xff] %v10702_v47  ;;  %11411 = vst [vmem:[#allocation14_spill] sm:$0xff] %v10704_v53  ;;  %v7864_v3 = vpop.eup %7863  ;;  %7879 = vrcp.f32 %v4976_v11 }
 0x276   : > { %v4982_v44 = vadd.f32 1.0, %v7864_v3  ;;  %v10712_v23 = vpop.eup %7865  ;;  %7881 = vpow2.f32 %v6829_v22 }
 0x277   : > { %v7868_v4 = vpop.eup %7867  ;;  %7883 = vrcp.f32 %v4979_v28 }
 0x278   : > { %v10707_v51 = vpop.permute.xlu1 %5225  ;;  %v10709_v47 = vpop.permute.xlu0 %5227  ;;  %7885 = vrcp.f32 %v4982_v44  ;;  %v4980_v32 = vadd.f32 1.0, %v7868_v4 }
 0x279   : > { %11412 = vst [vmem:[#allocation15_spill] sm:$0xff] %v10707_v51  ;;  %11413 = vst [vmem:[#allocation13_spill] sm:$0xff] %v10709_v47  ;;  %7887 = vpow2.f32 %v6827_v17 }
 0x27a   : > { %v7870_v29 = vpop.eup %7869  ;;  %7889 = vpow2.f32 %v6832_v33 }
 0x27b   : > { %v10720_v25 = vpop.eup %7871  ;;  %v4985_v3 = vadd.f32 1.0, %v7870_v29  ;;  %7891 = vrcp.f32 %v4980_v32  ;;  %v6831_v32 = vmul.f32 -1.442695, %v10556_v36 }
 0x27c   : > { %v10715_v63 = vpop.permute.xlu1 %5229  ;;  %11415 = vst [vmem:[#allocation8_spill] sm:$0xff] %v10720_v25  ;;  %v10722_v11 = vpop.eup %7873 }
 0x27d   : > { %11414 = vst [vmem:[#allocation20_spill] sm:$0xff] %v10715_v63  ;;  %v7876_v44 = vpop.eup %7875  ;;  %7893 = vrcp.f32 %v4985_v3 }
 0x299   : > { %v5332_v60 = vpop.permute.xlu0 %5331 }
 0x29a   : > { %v5425_v41 = vmul.f32 %v10712_v23, %v5332_v60  ;;  %v6830_v60 = vmul.f32 -1.442695, %v10541_v19 }
 0x29b   : > { %v5334_v31 = vpop.permute.xlu1 %5333 }
 0x29c   : > { %5491 = vrot.lane.b32.xlu0 %v5425_v41, %s8278_s15  ;;  %v5426_v28 = vmul.f32 %v10722_v11, %v5334_v31  ;;  %v10729_v41 = vpop.eup %7877  ;;  %7895 = vpow2.f32 %v6830_v60  ;;  %v4983_v31 = vadd.f32 1.0, %v7876_v44  ;;  %v6836_v44 = vmul.f32 -1.442695, %v10563_v40 }
 0x29d   : > { %v5328_v62 = vpop.permute.xlu0 %5327  ;;  %v10732_v17 = vpop.eup %7879  ;;  %7897 = vpow2.f32 %v6833_v54 }
 0x29e   : > { %v5423_v22 = vmul.f32 %v10720_v25, %v5328_v62  ;;  %5493 = vrot.lane.b32.xlu1 %v5426_v28, %s8278_s15  ;;  %v7882_v33 = vpop.eup %7881  ;;  %7899 = vrcp.f32 %v4983_v31 }
 0x29f   : > { %v10737_v56 = vpop.eup %7883  ;;  %v4986_v60 = vadd.f32 1.0, %v7882_v33  ;;  %7901 = vpow2.f32 %v6831_v32  ;;  %v6834_v33 = vmul.f32 -1.442695, %v10577_v0  ;;  %v6837_v32 = vmul.f32 -1.442695, %v10583_v1 }
 0x2a0   : > { %5487 = vrot.lane.b32.xlu0 %v5423_v22, %s8278_s15  ;;  %v10741_v28 = vpop.eup %7885  ;;  %v6840_v1 = vmul.f32 -1.442695, %v10607_v8 }
 0x2a1   : > { %v5340_v4 = vpop.permute.xlu0 %5339  ;;  %v7888_v51 = vpop.eup %7887  ;;  %7903 = vrcp.f32 %v4986_v60 }
 0x2a2   : > { %v5330_v29 = vpop.permute.xlu1 %5329  ;;  %v5429_v19 = vmul.f32 %v10729_v41, %v5340_v4  ;;  %v7890_v36 = vpop.eup %7889  ;;  %7905 = vpow2.f32 %v6836_v44  ;;  %v6835_v44 = vmul.f32 -1.442695, %v10604_v52  ;;  %v6838_v52 = vmul.f32 -1.442695, %v10626_v59 }
 0x2a3   : > { %v5424_v62 = vmul.f32 %v10732_v17, %v5330_v29  ;;  %v10748_v54 = vpop.eup %7891  ;;  %v4989_v40 = vadd.f32 1.0, %v7890_v36 }
 0x2a4   : > { %5499 = vrot.lane.b32.xlu0 %v5429_v19, %s8278_s15  ;;  %v4984_v19 = vadd.f32 1.0, %v7888_v51  ;;  %v10750_v63 = vpop.eup %7893 }
 0x2a5   : > { %5489 = vrot.lane.b32.xlu1 %v5424_v62, %s8278_s15  ;;  %v5336_v22 = vpop.permute.xlu0 %5335 }
 0x2a6   : > { %v5342_v3 = vpop.permute.xlu1 %5341  ;;  %v5427_v4 = vmul.f32 %v10737_v56, %v5336_v22  ;;  %v7896_v22 = vpop.eup %7895  ;;  %7907 = vrcp.f32 %v4984_v19 }
 0x2a7   : > { %v5430_v29 = vmul.f32 %v10741_v28, %v5342_v3  ;;  %v7898_v3 = vpop.eup %7897  ;;  %v4987_v51 = vadd.f32 1.0, %v7896_v22  ;;  %7909 = vpow2.f32 %v6834_v33 }
 0x2a8   : > { %5495 = vrot.lane.b32.xlu0 %v5427_v4, %s8278_s15  ;;  %7911 = vrcp.f32 %v4989_v40  ;;  %v10758_v0 = vpop.eup %7899 }
 0x2a9   : > { %5501 = vrot.lane.b32.xlu1 %v5430_v29, %s8278_s15  ;;  %v5348_v4 = vpop.permute.xlu0 %5347  ;;  %v4990_v29 = vadd.f32 1.0, %v7898_v3  ;;  %7913 = vpow2.f32 %v6837_v32  ;;  %v7902_v36 = vpop.eup %7901 }
 0x2aa   : > { %v5338_v62 = vpop.permute.xlu1 %5337  ;;  %v5433_v60 = vmul.f32 %v10750_v63, %v5348_v4  ;;  %7915 = vrcp.f32 %v4987_v51  ;;  %v4988_v22 = vadd.f32 1.0, %v7902_v36 }
 0x2ab   : > { %v5428_v31 = vmul.f32 %v10748_v54, %v5338_v62  ;;  %7917 = vrcp.f32 %v4990_v29 }
 0x2ac   : > { %5507 = vrot.lane.b32.xlu0 %v5433_v60, %s8278_s15  ;;  %7919 = vpow2.f32 %v6835_v44  ;;  %v6841_v60 = vmul.f32 -1.442695, %v10560_v24 }
 0x2ad   : > { %5497 = vrot.lane.b32.xlu1 %v5428_v31, %s8278_s15  ;;  %v5344_v62 = vpop.permute.xlu0 %5343  ;;  %v10763_v31 = vpop.eup %7903  ;;  %7921 = vpow2.f32 %v6840_v1 }
 0x2ae   : > { %v5431_v19 = vmul.f32 %v10758_v0, %v5344_v62  ;;  %v7906_v33 = vpop.eup %7905  ;;  %v5350_v40 = vpop.permute.xlu1 %5349  ;;  %7923 = vrcp.f32 %v4988_v22 }
 0x2af   : > { %v5434_v3 = vmul.f32 %v10763_v31, %v5350_v40  ;;  %v4993_v4 = vadd.f32 1.0, %v7906_v33  ;;  %7925 = vpow2.f32 %v6838_v52  ;;  %v6839_v33 = vmul.f32 -1.442695, %v10568_v16 }
 0x2b0   : > { %5503 = vrot.lane.b32.xlu0 %v5431_v19, %s8278_s15  ;;  %v10768_v32 = vpop.eup %7907  ;;  %v6844_v52 = vmul.f32 -1.442695, %v10580_v38 }
 0x2b1   : > { %5509 = vrot.lane.b32.xlu1 %v5434_v3, %s8278_s15  ;;  %v7910_v8 = vpop.eup %7909  ;;  %v5356_v36 = vpop.permute.xlu0 %5355  ;;  %7927 = vrcp.f32 %v4993_v4 }
 0x2b2   : > { %v5346_v51 = vpop.permute.xlu1 %5345  ;;  %v10772_v29 = vpop.eup %7911  ;;  %v4991_v59 = vadd.f32 1.0, %v7910_v8  ;;  %7929 = vpow2.f32 %v6841_v60 }
 0x2b3   : > { %v5432_v44 = vmul.f32 %v10768_v32, %v5346_v51  ;;  %v7914_v62 = vpop.eup %7913  ;;  %v5437_v1 = vmul.f32 %v10772_v29, %v5356_v36  ;;  %v6842_v36 = vmul.f32 -1.442695, %v10586_v13  ;;  %v6843_v13 = vmul.f32 -1.442695, %v10597_v6 }
 0x2b4   : > { %v10777_v19 = vpop.eup %7915  ;;  %v4994_v22 = vadd.f32 1.0, %v7914_v62  ;;  %7931 = vrcp.f32 %v4991_v59 }
 0x2b5   : > { %5505 = vrot.lane.b32.xlu1 %v5432_v44, %s8278_s15  ;;  %5515 = vrot.lane.b32.xlu0 %v5437_v1, %s8278_s15  ;;  %v10781_v24 = vpop.eup %7917  ;;  %v5352_v40 = vpop.permute.xlu0 %5351  ;;  %7933 = vpow2.f32 %v6839_v33 }
 0x2b6   : > { %v7920_v3 = vpop.eup %7919  ;;  %v5358_v51 = vpop.permute.xlu1 %5357  ;;  %v5435_v4 = vmul.f32 %v10777_v19, %v5352_v40  ;;  %7935 = vrcp.f32 %v4994_v22  ;;  %v6845_v40 = vmul.f32 -1.442695, %v10592_v37 }
 0x2b7   : > { %v5438_v8 = vmul.f32 %v10781_v24, %v5358_v51  ;;  %v7922_v44 = vpop.eup %7921  ;;  %v4992_v16 = vadd.f32 1.0, %v7920_v3  ;;  %7937 = vpow2.f32 %v6844_v52 }
 0x2b8   : > { %v10788_v60 = vpop.eup %7923  ;;  %v4997_v62 = vadd.f32 1.0, %v7922_v44 }
 0x2b9   : > { %5511 = vrot.lane.b32.xlu0 %v5435_v4, %s8278_s15  ;;  %5517 = vrot.lane.b32.xlu1 %v5438_v8, %s8278_s15  ;;  %v7926_v59 = vpop.eup %7925  ;;  %7939 = vrcp.f32 %v4992_v16  ;;  %v6848_v16 = vmul.f32 -1.442695, %v10613_v18 }
 0x2ba   : > { %v5354_v38 = vpop.permute.xlu1 %5353  ;;  %7941 = vpow2.f32 %v6842_v36  ;;  %v4995_v52 = vadd.f32 1.0, %v7926_v59 }
 0x2bb   : > { %v5436_v1 = vmul.f32 %v10788_v60, %v5354_v38  ;;  %v10793_v51 = vpop.eup %7927  ;;  %7943 = vrcp.f32 %v4997_v62 }
 0x2bc   : > { %v7930_v22 = vpop.eup %7929  ;;  %7945 = vpow2.f32 %v6845_v40  ;;  %v6846_v40 = vmul.f32 -1.442695, %v10617_v21 }
 0x2bd   : > { %5513 = vrot.lane.b32.xlu1 %v5436_v1, %s8278_s15  ;;  %v4998_v37 = vadd.f32 1.0, %v7930_v22  ;;  %7947 = vrcp.f32 %v4995_v52  ;;  %v6849_v52 = vmul.f32 -1.442695, %v10621_v9 }
 0x2be   : > { %v10799_v4 = vpop.eup %7931  ;;  %7949 = vpow2.f32 %v6843_v13 }
 0x2bf   : > { %v5364_v33 = vpop.permute.xlu0 %5363  ;;  %v7934_v44 = vpop.eup %7933  ;;  %7951 = vrcp.f32 %v4998_v37 }
 0x2c0   : > { %v5441_v3 = vmul.f32 %v10793_v51, %v5364_v33  ;;  %v10803_v1 = vpop.eup %7935  ;;  %v4996_v6 = vadd.f32 1.0, %v7934_v44  ;;  %7953 = vpow2.f32 %v6848_v16  ;;  %v6847_v16 = vmul.f32 -1.442695, %v10629_v43 }
 0x2c1   : > { %v5366_v36 = vpop.permute.xlu1 %5365  ;;  %v7938_v62 = vpop.eup %7937 }
 0x2c2   : > { %5523 = vrot.lane.b32.xlu0 %v5441_v3, %s8278_s15  ;;  %v5442_v59 = vmul.f32 %v10803_v1, %v5366_v36  ;;  %v5001_v33 = vadd.f32 1.0, %v7938_v62  ;;  %7955 = vrcp.f32 %v4996_v6 }
 0x2c3   : > { %v5360_v8 = vpop.permute.xlu0 %5359  ;;  %v10809_v18 = vpop.eup %7939  ;;  %7957 = vpow2.f32 %v6846_v40 }
 0x2c4   : > { %v5439_v38 = vmul.f32 %v10799_v4, %v5360_v8  ;;  %5525 = vrot.lane.b32.xlu1 %v5442_v59, %s8278_s15  ;;  %v7942_v3 = vpop.eup %7941  ;;  %7959 = vrcp.f32 %v5001_v33 }
 0x2c5   : > { %v10813_v8 = vpop.eup %7943  ;;  %v4999_v21 = vadd.f32 1.0, %v7942_v3  ;;  %7961 = vpow2.f32 %v6849_v52 }
 0x2c6   : > { %5519 = vrot.lane.b32.xlu0 %v5439_v38, %s8278_s15  ;;  %v5362_v22 = vpop.permute.xlu1 %5361  ;;  %v7946_v37 = vpop.eup %7945 }
 0x2c7   : > { %v5440_v13 = vmul.f32 %v10809_v18, %v5362_v22  ;;  %v10819_v9 = vpop.eup %7947  ;;  %v5002_v36 = vadd.f32 1.0, %v7946_v37  ;;  %7963 = vrcp.f32 %v4999_v21 }
 0x2c8   : > { %v7950_v59 = vpop.eup %7949  ;;  %7965 = vpow2.f32 %v6847_v16 }
 0x2c9   : > { %v5372_v38 = vpop.permute.xlu0 %5371  ;;  %5521 = vrot.lane.b32.xlu1 %v5440_v13, %s8278_s15  ;;  %v10822_v22 = vpop.eup %7951  ;;  %7967 = vrcp.f32 %v5002_v36  ;;  %v5000_v43 = vadd.f32 1.0, %v7950_v59 }
 0x2ca   : > { %v5445_v44 = vmul.f32 %v10813_v8, %v5372_v38  ;;  %v7954_v38 = vpop.eup %7953 }
 0x2cb   : > { %v5005_v52 = vadd.f32 1.0, %v7954_v38  ;;  %7969 = vrcp.f32 %v5000_v43 }
 0x2cc   : > { %5531 = vrot.lane.b32.xlu0 %v5445_v44, %s8278_s15  ;;  %v5374_v40 = vpop.permute.xlu1 %5373  ;;  %v10827_v3 = vpop.eup %7955 }
 0x2cd   : > { %v5368_v62 = vpop.permute.xlu0 %5367  ;;  %v5446_v33 = vmul.f32 %v10822_v22, %v5374_v40  ;;  %v7958_v37 = vpop.eup %7957  ;;  %7971 = vrcp.f32 %v5005_v52 }
 0x2ce   : > { %v5443_v6 = vmul.f32 %v10819_v9, %v5368_v62  ;;  %v10830_v62 = vpop.eup %7959  ;;  %v5003_v36 = vadd.f32 1.0, %v7958_v37 }
 0x2cf   : > { %5533 = vrot.lane.b32.xlu1 %v5446_v33, %s8278_s15  ;;  %v7962_v16 = vpop.eup %7961 }
 0x2d0   : > { %5527 = vrot.lane.b32.xlu0 %v5443_v6, %s8278_s15  ;;  %v5370_v13 = vpop.permute.xlu1 %5369  ;;  %v5006_v6 = vadd.f32 1.0, %v7962_v16  ;;  %7973 = vrcp.f32 %v5003_v36 }
 0x2d1   : > { %v5444_v44 = vmul.f32 %v10827_v3, %v5370_v13  ;;  %v5380_v21 = vpop.permute.xlu0 %5379  ;;  %v10835_v59 = vpop.eup %7963 }
 0x2d2   : > { %v5449_v40 = vmul.f32 %v10830_v62, %v5380_v21  ;;  %v7966_v33 = vpop.eup %7965  ;;  %7975 = vrcp.f32 %v5006_v6 }
 0x2d3   : > { %5529 = vrot.lane.b32.xlu1 %v5444_v44, %s8278_s15  ;;  %v10838_v53 = vpop.eup %7967  ;;  %v5004_v52 = vadd.f32 1.0, %v7966_v33 }
 0x2d4   : > { %5539 = vrot.lane.b32.xlu0 %v5449_v40, %s8278_s15  ;;  %v5382_v43 = vpop.permute.xlu1 %5381 }
 0x2d5   : > { %v5376_v38 = vpop.permute.xlu0 %5375  ;;  %v5450_v47 = vmul.f32 %v10838_v53, %v5382_v43  ;;  %v10843_v37 = vpop.eup %7969  ;;  %7977 = vrcp.f32 %v5004_v52 }
 0x2d6   : > { %v5447_v13 = vmul.f32 %v10835_v59, %v5376_v38 }
 0x2d7   : > { %5541 = vrot.lane.b32.xlu1 %v5450_v47, %s8278_s15  ;;  %v10846_v16 = vpop.eup %7971 }
 0x2d8   : > { %5535 = vrot.lane.b32.xlu0 %v5447_v13, %s8278_s15  ;;  %v5378_v44 = vpop.permute.xlu1 %5377 }
 0x2d9   : > { %v5448_v21 = vmul.f32 %v10843_v37, %v5378_v44  ;;  %v5388_v40 = vpop.permute.xlu0 %5387 }
 0x2da   : > { %v5453_v36 = vmul.f32 %v10846_v16, %v5388_v40  ;;  %v10851_v38 = vpop.eup %7973  ;;  %v5265_v40 = vmul.f32 %v10712_v23, %v10525_v55  ;;  %v5264_v55 = vmul.f32 %v10732_v17, %v10543_v35 }
 0x2db   : > { %5537 = vrot.lane.b32.xlu1 %v5448_v21, %s8278_s15  ;;  %11416 = vst [vmem:[#allocation16_spill] sm:$0xff] %v10851_v38 }
 0x2dc   : > { %5547 = vrot.lane.b32.xlu0 %v5453_v36, %s8278_s15  ;;  %v10854_v33 = vpop.eup %7975  ;;  %v5390_v13 = vpop.permute.xlu1 %5389 }
 0x2dd   : > { %v5384_v6 = vpop.permute.xlu0 %5383  ;;  %11417 = vst [vmem:[#allocation17_spill] sm:$0xff] %v10854_v33  ;;  %v5454_v43 = vmul.f32 %v10854_v33, %v5390_v13 }
 0x2de   : > { %v5451_v47 = vmul.f32 %v10851_v38, %v5384_v6  ;;  %v5263_v38 = vmul.f32 %v10720_v25, %v10523_v34 }
 0x2df   : > { %5549 = vrot.lane.b32.xlu1 %v5454_v43, %s8278_s15  ;;  %v10859_v52 = vpop.eup %7977 }
 0x2e0   : > { %5543 = vrot.lane.b32.xlu0 %v5451_v47, %s8278_s15  ;;  %v5386_v44 = vpop.permute.xlu1 %5385  ;;  %v5266_v47 = vmul.f32 %v10722_v11, %v10548_v20  ;;  %v5267_v20 = vmul.f32 %v10737_v56, %v10565_v45  ;;  %v5268_v45 = vmul.f32 %v10748_v54, %v10571_v49 }
 0x2e1   : > { %v5452_v21 = vmul.f32 %v10859_v52, %v5386_v44 }
 0x2e3   : > { %5545 = vrot.lane.b32.xlu1 %v5452_v21, %s8278_s15  ;;  %v5269_v21 = vmul.f32 %v10729_v41, %v10588_v46  ;;  %v5270_v46 = vmul.f32 %v10741_v28, %v10599_v5 }
 0x30e   : > { %v5492_v36 = vpop.permute.xlu0 %5491 }
 0x30f   : > { %v5585_v6 = vadd.f32 %v5492_v36, %v5265_v40 }
 0x310   : > { %v5494_v43 = vpop.permute.xlu1 %5493 }
 0x311   : > { %5843 = vrot.lane.b32.xlu0 %v5585_v6, %s8279_s9  ;;  %v5586_v44 = vadd.f32 %v5494_v43, %v5266_v47  ;;  %7979 = vtanh.f32 %v5585_v6 }
 0x312   : > { %v5488_v13 = vpop.permute.xlu0 %5487 }
 0x313   : > { %v5583_v33 = vadd.f32 %v5488_v13, %v5263_v38  ;;  %5845 = vrot.lane.b32.xlu1 %v5586_v44, %s8279_s9 }
 0x315   : > { %5839 = vrot.lane.b32.xlu0 %v5583_v33, %s8279_s9  ;;  %7981 = vtanh.f32 %v5583_v33 }
 0x316   : > { %v5500_v34 = vpop.permute.xlu0 %5499  ;;  %7983 = vtanh.f32 %v5586_v44  ;;  %v5273_v44 = vmul.f32 %v10750_v63, %v10633_v48 }
 0x317   : > { %v5490_v40 = vpop.permute.xlu1 %5489  ;;  %v5589_v36 = vadd.f32 %v5500_v34, %v5269_v21 }
 0x318   : > { %v5584_v25 = vadd.f32 %v5490_v40, %v5264_v55 }
 0x319   : > { %5851 = vrot.lane.b32.xlu0 %v5589_v36, %s8279_s9 }
 0x31a   : > { %5841 = vrot.lane.b32.xlu1 %v5584_v25, %s8279_s9  ;;  %v5496_v38 = vpop.permute.xlu0 %5495  ;;  %7985 = vtanh.f32 %v5584_v25  ;;  %v5271_v25 = vmul.f32 %v10758_v0, %v10610_v12 }
 0x31b   : > { %v5502_v35 = vpop.permute.xlu1 %5501  ;;  %v5587_v6 = vadd.f32 %v5496_v38, %v5267_v20  ;;  %v7980_v13 = vpop.eup %7979  ;;  %7987 = vtanh.f32 %v5589_v36  ;;  %v5274_v20 = vmul.f32 %v10763_v31, %v10639_v10  ;;  %v5272_v38 = vmul.f32 %v10768_v32, %v10631_v14 }
 0x31c   : > { %v5590_v47 = vadd.f32 %v5502_v35, %v5270_v46 }
 0x31d   : > { %5847 = vrot.lane.b32.xlu0 %v5587_v6, %s8279_s9  ;;  %7989 = vtanh.f32 %v5587_v6 }
 0x31e   : > { %5853 = vrot.lane.b32.xlu1 %v5590_v47, %s8279_s9  ;;  %v5508_v5 = vpop.permute.xlu0 %5507  ;;  %7991 = vtanh.f32 %v5590_v47  ;;  %v5277_v47 = vmul.f32 %v10772_v29, %v10649_v15 }
 0x31f   : > { %v5498_v43 = vpop.permute.xlu1 %5497  ;;  %v7982_v33 = vpop.eup %7981  ;;  %v5593_v34 = vadd.f32 %v5508_v5, %v5273_v44  ;;  %v5278_v44 = vmul.f32 %v10781_v24, %v10655_v27 }
 0x320   : > { %v5588_v21 = vadd.f32 %v5498_v43, %v5268_v45  ;;  %v7984_v55 = vpop.eup %7983 }
 0x321   : > { %5683 = vrot.lane.b32.xlu0 %v7980_v13, %s8278_s15 }
 0x322   : > { %5849 = vrot.lane.b32.xlu1 %v5588_v21, %s8279_s9  ;;  %v5504_v49 = vpop.permute.xlu0 %5503  ;;  %7993 = vtanh.f32 %v5588_v21  ;;  %v5275_v21 = vmul.f32 %v10777_v19, %v10641_v2 }
 0x323   : > { %v5510_v46 = vpop.permute.xlu1 %5509  ;;  %v5591_v48 = vadd.f32 %v5504_v49, %v5271_v25  ;;  %7995 = vtanh.f32 %v5593_v34  ;;  %v5276_v49 = vmul.f32 %v10788_v60, %v10647_v57 }
 0x324   : > { %v7986_v40 = vpop.eup %7985  ;;  %v5594_v36 = vadd.f32 %v5510_v46, %v5274_v20  ;;  %v5281_v20 = vmul.f32 %v10793_v51, %v10665_v42 }
 0x325   : > { %5679 = vrot.lane.b32.xlu0 %v7982_v33, %s8278_s15  ;;  %v7988_v12 = vpop.eup %7987  ;;  %7997 = vtanh.f32 %v5591_v48 }
 0x326   : > { %5685 = vrot.lane.b32.xlu1 %v7984_v55, %s8278_s15  ;;  %7999 = vtanh.f32 %v5594_v36 }
 0x327   : > { %v5506_v35 = vpop.permute.xlu1 %5505  ;;  %v5516_v10 = vpop.permute.xlu0 %5515 }
 0x328   : > { %v5592_v6 = vadd.f32 %v5506_v35, %v5272_v38  ;;  %v7990_v45 = vpop.eup %7989  ;;  %v5597_v14 = vadd.f32 %v5516_v10, %v5277_v47  ;;  %v5279_v38 = vmul.f32 %v10799_v4, %v10657_v7 }
 0x329   : > { %5859 = vrot.lane.b32.xlu0 %v5593_v34, %s8279_s9  ;;  %v7992_v13 = vpop.eup %7991 }
 0x32a   : > { %5681 = vrot.lane.b32.xlu1 %v7986_v40, %s8278_s15  ;;  %8001 = vtanh.f32 %v5592_v6 }
 0x32b   : > { %v5518_v43 = vpop.permute.xlu1 %5517  ;;  %v5512_v5 = vpop.permute.xlu0 %5511  ;;  %8003 = vtanh.f32 %v5597_v14 }
 0x32c   : > { %v7994_v33 = vpop.eup %7993  ;;  %v5595_v15 = vadd.f32 %v5512_v5, %v5275_v21  ;;  %v5598_v55 = vadd.f32 %v5518_v43, %v5278_v44 }
 0x32d   : > { %5855 = vrot.lane.b32.xlu0 %v5591_v48, %s8279_s9  ;;  %v7996_v2 = vpop.eup %7995 }
 0x32e   : > { %5861 = vrot.lane.b32.xlu1 %v5594_v36, %s8279_s9  ;;  %8005 = vtanh.f32 %v5595_v15 }
 0x32f   : > { %v5514_v34 = vpop.permute.xlu1 %5513  ;;  %v7998_v27 = vpop.eup %7997  ;;  %8007 = vtanh.f32 %v5598_v55 }
 0x330   : > { %v5596_v25 = vadd.f32 %v5514_v34, %v5276_v49  ;;  %v8000_v46 = vpop.eup %7999  ;;  %v5284_v49 = vmul.f32 %v10827_v3, %v10679_v26 }
 0x331   : > { %5691 = vrot.lane.b32.xlu0 %v7988_v12, %s8278_s15  ;;  %v5282_v12 = vmul.f32 %v10803_v1, %v10671_v50 }
 0x332   : > { %5857 = vrot.lane.b32.xlu1 %v5592_v6, %s8279_s9  ;;  %8009 = vtanh.f32 %v5596_v25 }
 0x334   : > { %v5524_v40 = vpop.permute.xlu0 %5523  ;;  %v8002_v35 = vpop.eup %8001 }
 0x335   : > { %5687 = vrot.lane.b32.xlu0 %v7990_v45, %s8278_s15  ;;  %v5601_v48 = vadd.f32 %v5524_v40, %v5281_v20  ;;  %v5280_v45 = vmul.f32 %v10809_v18, %v10663_v58  ;;  %v8004_v7 = vpop.eup %8003  ;;  %v11418_v40 = vld [vmem:[#allocation11_spill] sm:$0xff] }
 0x336   : > { %5693 = vrot.lane.b32.xlu1 %v7992_v13, %s8278_s15  ;;  %v5526_v57 = vpop.permute.xlu1 %5525 }
 0x337   : > { %v5602_v6 = vadd.f32 %v5526_v57, %v5282_v12  ;;  %8011 = vtanh.f32 %v5601_v48  ;;  %v11419_v57 = vld [vmem:[#allocation9_spill] sm:$0xff] }
 0x338   : > { %v5520_v36 = vpop.permute.xlu0 %5519  ;;  %v8006_v50 = vpop.eup %8005 }
 0x339   : > { %5867 = vrot.lane.b32.xlu0 %v5597_v14, %s8279_s9  ;;  %v5599_v42 = vadd.f32 %v5520_v36, %v5279_v38  ;;  %v5285_v14 = vmul.f32 %v10813_v8, %v10681_v30  ;;  %v8008_v43 = vpop.eup %8007  ;;  %v5287_v36 = vmul.f32 %v10835_v59, %v11419_v57 }
 0x33a   : > { %5689 = vrot.lane.b32.xlu1 %v7994_v33, %s8278_s15  ;;  %v5283_v33 = vmul.f32 %v10819_v9, %v10673_v39 }
 0x33b   : > { %v5522_v10 = vpop.permute.xlu1 %5521  ;;  %8013 = vtanh.f32 %v5599_v42 }
 0x33c   : > { %v5600_v47 = vadd.f32 %v5522_v10, %v5280_v45  ;;  %v8010_v44 = vpop.eup %8009  ;;  %8015 = vtanh.f32 %v5602_v6  ;;  %v11421_v45 = vld [vmem:[#allocation10_spill] sm:$0xff] }
 0x33d   : > { %5863 = vrot.lane.b32.xlu0 %v5595_v15, %s8279_s9  ;;  %v5286_v15 = vmul.f32 %v10822_v22, %v10688_v61 }
 0x33e   : > { %5869 = vrot.lane.b32.xlu1 %v5598_v55, %s8279_s9  ;;  %v5532_v13 = vpop.permute.xlu0 %5531  ;;  %8017 = vtanh.f32 %v5600_v47 }
 0x33f   : > { %v5605_v5 = vadd.f32 %v5532_v13, %v5285_v14 }
 0x341   : > { %5699 = vrot.lane.b32.xlu0 %v7996_v2, %s8278_s15  ;;  %v5534_v58 = vpop.permute.xlu1 %5533  ;;  %v8012_v39 = vpop.eup %8011  ;;  %8019 = vtanh.f32 %v5605_v5 }
 0x342   : > { %5865 = vrot.lane.b32.xlu1 %v5596_v25, %s8279_s9  ;;  %v5528_v21 = vpop.permute.xlu0 %5527  ;;  %v5606_v55 = vadd.f32 %v5534_v58, %v5286_v15  ;;  %v11423_v15 = vld [vmem:[#allocation14_spill] sm:$0xff] }
 0x343   : > { %v5603_v30 = vadd.f32 %v5528_v21, %v5283_v33 }
 0x345   : > { %5695 = vrot.lane.b32.xlu0 %v7998_v27, %s8278_s15  ;;  %v5530_v34 = vpop.permute.xlu1 %5529  ;;  %v8014_v61 = vpop.eup %8013  ;;  %v5289_v27 = vmul.f32 %v10830_v62, %v11418_v40  ;;  %8021 = vtanh.f32 %v5603_v30 }
 0x346   : > { %5701 = vrot.lane.b32.xlu1 %v8000_v46, %s8278_s15  ;;  %v5604_v2 = vadd.f32 %v5530_v34, %v5284_v49  ;;  %v5540_v25 = vpop.permute.xlu0 %5539  ;;  %v8016_v20 = vpop.eup %8015  ;;  %8023 = vtanh.f32 %v5606_v55  ;;  %v11425_v49 = vld [vmem:[#allocation20_spill] sm:$0xff] }
 0x347   : > { %v5609_v46 = vadd.f32 %v5540_v25, %v5289_v27  ;;  %v11427_v27 = vld [vmem:[#allocation15_spill] sm:$0xff] }
 0x348   : > { %v8018_v38 = vpop.eup %8017  ;;  %8025 = vtanh.f32 %v5604_v2 }
 0x349   : > { %5875 = vrot.lane.b32.xlu0 %v5601_v48, %s8279_s9  ;;  %v5542_v26 = vpop.permute.xlu1 %5541  ;;  %8027 = vtanh.f32 %v5609_v46 }
 0x34a   : > { %5697 = vrot.lane.b32.xlu1 %v8002_v35, %s8278_s15  ;;  %v5536_v48 = vpop.permute.xlu0 %5535  ;;  %v11420_v35 = vld [vmem:[#allocation12_spill] sm:$0xff] }
 0x34b   : > { %v5290_v12 = vmul.f32 %v10838_v53, %v11420_v35 }
 0x34d   : > { %5871 = vrot.lane.b32.xlu0 %v5599_v42, %s8279_s9  ;;  %v5607_v42 = vadd.f32 %v5536_v48, %v5287_v36  ;;  %v5538_v10 = vpop.permute.xlu1 %5537 }
 0x34e   : > { %5877 = vrot.lane.b32.xlu1 %v5602_v6, %s8279_s9  ;;  %v5610_v6 = vadd.f32 %v5542_v26, %v5290_v12 }
 0x34f   : > { %8029 = vtanh.f32 %v5607_v42 }
 0x350   : > { %8031 = vtanh.f32 %v5610_v6 }
 0x351   : > { %5707 = vrot.lane.b32.xlu0 %v8004_v7, %s8278_s15  ;;  %v5288_v7 = vmul.f32 %v10843_v37, %v11421_v45  ;;  %v5550_v33 = vpop.permute.xlu1 %5549 }
 0x352   : > { %5873 = vrot.lane.b32.xlu1 %v5600_v47, %s8279_s9  ;;  %v8020_v47 = vpop.eup %8019 }
 0x353   : > { %v5608_v13 = vadd.f32 %v5538_v10, %v5288_v7  ;;  %v8022_v14 = vpop.eup %8021 }
 0x354   : > { %v8024_v58 = vpop.eup %8023 }
 0x355   : > { %5703 = vrot.lane.b32.xlu0 %v8006_v50, %s8278_s15  ;;  %v5548_v50 = vpop.permute.xlu0 %5547  ;;  %v8026_v34 = vpop.eup %8025 }
 0x356   : > { %5709 = vrot.lane.b32.xlu1 %v8008_v43, %s8278_s15  ;;  %v11422_v43 = vld [vmem:[#allocation13_spill] sm:$0xff]  ;;  %v5546_v40 = vpop.permute.xlu1 %5545 }
 0x359   : > { %5883 = vrot.lane.b32.xlu0 %v5605_v5, %s8279_s9  ;;  %v5293_v5 = vmul.f32 %v10846_v16, %v11422_v43 }
 0x35a   : > { %5705 = vrot.lane.b32.xlu1 %v8010_v44, %s8278_s15  ;;  %v5544_v44 = vpop.permute.xlu0 %5543 }
 0x35b   : > { %v5613_v21 = vadd.f32 %v5548_v50, %v5293_v5 }
 0x35d   : > { %5879 = vrot.lane.b32.xlu0 %v5603_v30, %s8279_s9  ;;  %v11424_v30 = vld [vmem:[#allocation16_spill] sm:$0xff]  ;;  %8033 = vtanh.f32 %v5613_v21 }
 0x35e   : > { %5885 = vrot.lane.b32.xlu1 %v5606_v55, %s8279_s9  ;;  %v5291_v55 = vmul.f32 %v11424_v30, %v11423_v15  ;;  %8035 = vtanh.f32 %v5608_v13 }
 0x360   : > { %v5611_v25 = vadd.f32 %v5544_v44, %v5291_v55 }
 0x361   : > { %5715 = vrot.lane.b32.xlu0 %v8012_v39, %s8278_s15  ;;  %v11426_v39 = vld [vmem:[#allocation17_spill] sm:$0xff] }
 0x362   : > { %5881 = vrot.lane.b32.xlu1 %v5604_v2, %s8279_s9  ;;  %v5294_v2 = vmul.f32 %v11426_v39, %v11425_v49  ;;  %8037 = vtanh.f32 %v5611_v25 }
 0x365   : > { %5711 = vrot.lane.b32.xlu0 %v8014_v61, %s8278_s15  ;;  %v5614_v61 = vadd.f32 %v5550_v33, %v5294_v2 }
 0x366   : > { %5717 = vrot.lane.b32.xlu1 %v8016_v20, %s8278_s15  ;;  %v5292_v20 = vmul.f32 %v10859_v52, %v11427_v27 }
 0x367   : > { %8039 = vtanh.f32 %v5614_v61 }
 0x368   : > { %v5612_v26 = vadd.f32 %v5546_v40, %v5292_v20 }
 0x369   : > { %5891 = vrot.lane.b32.xlu0 %v5609_v46, %s8279_s9  ;;  %v8028_v46 = vpop.eup %8027 }
 0x36a   : > { %5713 = vrot.lane.b32.xlu1 %v8018_v38, %s8278_s15  ;;  %v8030_v57 = vpop.eup %8029  ;;  %8041 = vtanh.f32 %v5612_v26 }
 0x36b   : > { %v8032_v36 = vpop.eup %8031 }
 0x36c   : > { %v8034_v35 = vpop.eup %8033 }
 0x36d   : > { %5887 = vrot.lane.b32.xlu0 %v5607_v42, %s8279_s9  ;;  %v8036_v42 = vpop.eup %8035 }
 0x36e   : > { %5893 = vrot.lane.b32.xlu1 %v5610_v6, %s8279_s9  ;;  %v8038_v10 = vpop.eup %8037 }
 0x371   : > { %5723 = vrot.lane.b32.xlu0 %v8020_v47, %s8278_s15  ;;  %v8040_v7 = vpop.eup %8039 }
 0x372   : > { %5889 = vrot.lane.b32.xlu1 %v5608_v13, %s8279_s9 }
 0x374   : > { %v8042_v50 = vpop.eup %8041 }
 0x375   : > { %5719 = vrot.lane.b32.xlu0 %v8022_v14, %s8278_s15 }
 0x376   : > { %5725 = vrot.lane.b32.xlu1 %v8024_v58, %s8278_s15 }
 0x379   : > { %5899 = vrot.lane.b32.xlu0 %v5613_v21, %s8279_s9  ;;  %v11428_v21 = vld [vmem:[#allocation8_spill] sm:$0xff] }
 0x37a   : > { %5721 = vrot.lane.b32.xlu1 %v8026_v34, %s8278_s15 }
 0x37d   : > { %5895 = vrot.lane.b32.xlu0 %v5611_v25, %s8279_s9 }
 0x37e   : > { %5901 = vrot.lane.b32.xlu1 %v5614_v61, %s8279_s9 }
 0x381   : > { %5731 = vrot.lane.b32.xlu0 %v8028_v46, %s8278_s15 }
 0x382   : > { %5897 = vrot.lane.b32.xlu1 %v5612_v26, %s8279_s9 }
 0x383   : > { %v5844_v48 = vpop.permute.xlu0 %5843 }
 0x384   : > { %5938 = vst.msk [vmem:[%s10990_s13 + $0x10] sm:$0xff] %vm5935_vm8, %v5844_v48 }
 0x385   : > { %5727 = vrot.lane.b32.xlu0 %v8030_v57, %s8278_s15  ;;  %v5846_v12 = vpop.permute.xlu1 %5845 }
 0x386   : > { %5733 = vrot.lane.b32.xlu1 %v8032_v36, %s8278_s15  ;;  %5939 = vst.msk [vmem:[%s10990_s13 + $0x18] sm:$0xff] %vm5935_vm8, %v5846_v12 }
 0x387   : > { %v5840_v38 = vpop.permute.xlu0 %5839 }
 0x388   : > { %5936 = vst.msk [vmem:[%s10990_s13] sm:$0xff] %vm5935_vm8, %v5840_v38 }
 0x389   : > { %5739 = vrot.lane.b32.xlu0 %v8034_v35, %s8278_s15 }
 0x38a   : > { %5729 = vrot.lane.b32.xlu1 %v8036_v42, %s8278_s15 }
 0x38b   : > { %v5852_v6 = vpop.permute.xlu0 %5851 }
 0x38c   : > { %v5842_v45 = vpop.permute.xlu1 %5841  ;;  %5942 = vst.msk [vmem:[%s10990_s13 + $0x30] sm:$0xff] %vm5935_vm8, %v5852_v6 }
 0x38d   : > { %5937 = vst.msk [vmem:[%s10990_s13 + $0x8] sm:$0xff] %vm5935_vm8, %v5842_v45  ;;  %5735 = vrot.lane.b32.xlu0 %v8038_v10, %s8278_s15 }
 0x38e   : > { %5741 = vrot.lane.b32.xlu1 %v8040_v7, %s8278_s15 }
 0x38f   : > { %v5848_v47 = vpop.permute.xlu0 %5847 }
 0x390   : > { %v5854_v13 = vpop.permute.xlu1 %5853  ;;  %5940 = vst.msk [vmem:[%s10990_s13 + $0x20] sm:$0xff] %vm5935_vm8, %v5848_v47 }
 0x391   : > { %5943 = vst.msk [vmem:[%s10990_s13 + $0x38] sm:$0xff] %vm5935_vm8, %v5854_v13 }
 0x392   : > { %5737 = vrot.lane.b32.xlu1 %v8042_v50, %s8278_s15  ;;  %s6859_s15 = sshll.u32 %s8268_s21, 12 }
 0x393   : > { %v5684_v14 = vpop.permute.xlu0 %5683  ;;  %s11127_s24 = scalar_lea.hbm %s11297_s5, %s6859_s15 }
 0x394   : > { %v5777_v43 = vmul.f32 %v10712_v23, %v5684_v14  ;;  %v5850_v5 = vpop.permute.xlu1 %5849 }
 0x395   : > { %5941 = vst.msk [vmem:[%s10990_s13 + $0x28] sm:$0xff] %vm5935_vm8, %v5850_v5 }
 0x396   : > { %6004 = vrot.lane.b32.xlu0 %v5777_v43, %s8280_s14 }
 0x397   : > { %v5680_v58 = vpop.permute.xlu0 %5679 }
 0x398   : > { %v5775_v33 = vmul.f32 %v11428_v21, %v5680_v58  ;;  %v5686_v44 = vpop.permute.xlu1 %5685 }
 0x399   : > { %v5778_v15 = vmul.f32 %v10722_v11, %v5686_v44 }
 0x39a   : > { %6000 = vrot.lane.b32.xlu0 %v5775_v33, %s8280_s14 }
 0x39b   : > { %v5860_v55 = vpop.permute.xlu0 %5859  ;;  %6006 = vrot.lane.b32.xlu1 %v5778_v15, %s8280_s14 }
 0x39c   : > { %5946 = vst.msk [vmem:[%s10990_s13 + $0x50] sm:$0xff] %vm5935_vm8, %v5860_v55  ;;  %v5682_v23 = vpop.permute.xlu1 %5681 }
 0x39d   : > { %v5776_v34 = vmul.f32 %v10732_v17, %v5682_v23 }
 0x39f   : > { %v5856_v49 = vpop.permute.xlu0 %5855  ;;  %6002 = vrot.lane.b32.xlu1 %v5776_v34, %s8280_s14 }
 0x3a0   : > { %5944 = vst.msk [vmem:[%s10990_s13 + $0x40] sm:$0xff] %vm5935_vm8, %v5856_v49  ;;  %v5862_v2 = vpop.permute.xlu1 %5861 }
 0x3a1   : > { %5947 = vst.msk [vmem:[%s10990_s13 + $0x58] sm:$0xff] %vm5935_vm8, %v5862_v2 }
 0x3a3   : > { %v5692_v11 = vpop.permute.xlu0 %5691 }
 0x3a4   : > { %v5781_v25 = vmul.f32 %v10729_v41, %v5692_v11  ;;  %v5858_v61 = vpop.permute.xlu1 %5857 }
 0x3a5   : > { %5945 = vst.msk [vmem:[%s10990_s13 + $0x48] sm:$0xff] %vm5935_vm8, %v5858_v61 }
 0x3a6   : > { %6012 = vrot.lane.b32.xlu0 %v5781_v25, %s8280_s14 }
 0x3a7   : > { %v5688_v17 = vpop.permute.xlu0 %5687 }
 0x3a8   : > { %v5779_v40 = vmul.f32 %v10737_v56, %v5688_v17  ;;  %v5694_v27 = vpop.permute.xlu1 %5693 }
 0x3a9   : > { %v5782_v20 = vmul.f32 %v10741_v28, %v5694_v27 }
 0x3aa   : > { %6008 = vrot.lane.b32.xlu0 %v5779_v40, %s8280_s14 }
 0x3ab   : > { %v5868_v46 = vpop.permute.xlu0 %5867  ;;  %6014 = vrot.lane.b32.xlu1 %v5782_v20, %s8280_s14 }
 0x3ac   : > { %5950 = vst.msk [vmem:[%s10990_s13 + $0x70] sm:$0xff] %vm5935_vm8, %v5868_v46  ;;  %v5690_v41 = vpop.permute.xlu1 %5689 }
 0x3ad   : > { %v5780_v26 = vmul.f32 %v10748_v54, %v5690_v41 }
 0x3af   : > { %v5864_v48 = vpop.permute.xlu0 %5863  ;;  %6010 = vrot.lane.b32.xlu1 %v5780_v26, %s8280_s14 }
 0x3b0   : > { %5948 = vst.msk [vmem:[%s10990_s13 + $0x60] sm:$0xff] %vm5935_vm8, %v5864_v48  ;;  %v5870_v56 = vpop.permute.xlu1 %5869 }
 0x3b1   : > { %5951 = vst.msk [vmem:[%s10990_s13 + $0x78] sm:$0xff] %vm5935_vm8, %v5870_v56 }
 0x3b3   : > { %v5700_v28 = vpop.permute.xlu0 %5699 }
 0x3b4   : > { %v5785_v57 = vmul.f32 %v10750_v63, %v5700_v28  ;;  %v5866_v36 = vpop.permute.xlu1 %5865 }
 0x3b5   : > { %5949 = vst.msk [vmem:[%s10990_s13 + $0x68] sm:$0xff] %vm5935_vm8, %v5866_v36 }
 0x3b6   : > { %6020 = vrot.lane.b32.xlu0 %v5785_v57, %s8280_s14 }
 0x3b7   : > { %v5696_v54 = vpop.permute.xlu0 %5695 }
 0x3b8   : > { %v5783_v38 = vmul.f32 %v10758_v0, %v5696_v54  ;;  %v5702_v35 = vpop.permute.xlu1 %5701 }
 0x3b9   : > { %v5786_v12 = vmul.f32 %v10763_v31, %v5702_v35 }
 0x3ba   : > { %6016 = vrot.lane.b32.xlu0 %v5783_v38, %s8280_s14 }
 0x3bb   : > { %v5876_v42 = vpop.permute.xlu0 %5875  ;;  %6022 = vrot.lane.b32.xlu1 %v5786_v12, %s8280_s14 }
 0x3bc   : > { %5954 = vst.msk [vmem:[%s10990_s13 + $0x90] sm:$0xff] %vm5935_vm8, %v5876_v42  ;;  %v5698_v63 = vpop.permute.xlu1 %5697 }
 0x3bd   : > { %v5784_v6 = vmul.f32 %v10768_v32, %v5698_v63 }
 0x3bf   : > { %v5872_v10 = vpop.permute.xlu0 %5871  ;;  %6018 = vrot.lane.b32.xlu1 %v5784_v6, %s8280_s14 }
 0x3c0   : > { %5952 = vst.msk [vmem:[%s10990_s13 + $0x80] sm:$0xff] %vm5935_vm8, %v5872_v10  ;;  %v5878_v0 = vpop.permute.xlu1 %5877 }
 0x3c1   : > { %5955 = vst.msk [vmem:[%s10990_s13 + $0x98] sm:$0xff] %vm5935_vm8, %v5878_v0 }
 0x3c3   : > { %v5708_v31 = vpop.permute.xlu0 %5707 }
 0x3c4   : > { %v5789_v45 = vmul.f32 %v10772_v29, %v5708_v31  ;;  %v5874_v7 = vpop.permute.xlu1 %5873 }
 0x3c5   : > { %5953 = vst.msk [vmem:[%s10990_s13 + $0x88] sm:$0xff] %vm5935_vm8, %v5874_v7 }
 0x3c6   : > { %6028 = vrot.lane.b32.xlu0 %v5789_v45, %s8280_s14 }
 0x3c7   : > { %v5704_v32 = vpop.permute.xlu0 %5703 }
 0x3c8   : > { %v5787_v47 = vmul.f32 %v10777_v19, %v5704_v32  ;;  %v5710_v13 = vpop.permute.xlu1 %5709 }
 0x3c9   : > { %v5790_v50 = vmul.f32 %v10781_v24, %v5710_v13 }
 0x3ca   : > { %6024 = vrot.lane.b32.xlu0 %v5787_v47, %s8280_s14 }
 0x3cb   : > { %v5884_v14 = vpop.permute.xlu0 %5883  ;;  %6030 = vrot.lane.b32.xlu1 %v5790_v50, %s8280_s14 }
 0x3cc   : > { %5958 = vst.msk [vmem:[%s10990_s13 + $0xb0] sm:$0xff] %vm5935_vm8, %v5884_v14  ;;  %v5706_v29 = vpop.permute.xlu1 %5705 }
 0x3cd   : > { %v5788_v43 = vmul.f32 %v10788_v60, %v5706_v29 }
 0x3cf   : > { %v5880_v5 = vpop.permute.xlu0 %5879  ;;  %6026 = vrot.lane.b32.xlu1 %v5788_v43, %s8280_s14 }
 0x3d0   : > { %5956 = vst.msk [vmem:[%s10990_s13 + $0xa0] sm:$0xff] %vm5935_vm8, %v5880_v5  ;;  %v5886_v19 = vpop.permute.xlu1 %5885 }
 0x3d1   : > { %5959 = vst.msk [vmem:[%s10990_s13 + $0xb8] sm:$0xff] %vm5935_vm8, %v5886_v19 }
 0x3d3   : > { %v5716_v24 = vpop.permute.xlu0 %5715 }
 0x3d4   : > { %v5793_v58 = vmul.f32 %v10793_v51, %v5716_v24  ;;  %v5882_v21 = vpop.permute.xlu1 %5881 }
 0x3d5   : > { %5957 = vst.msk [vmem:[%s10990_s13 + $0xa8] sm:$0xff] %vm5935_vm8, %v5882_v21 }
 0x3d6   : > { %6036 = vrot.lane.b32.xlu0 %v5793_v58, %s8280_s14 }
 0x3d7   : > { %v5712_v60 = vpop.permute.xlu0 %5711 }
 0x3d8   : > { %v5791_v33 = vmul.f32 %v10799_v4, %v5712_v60  ;;  %v5718_v44 = vpop.permute.xlu1 %5717 }
 0x3d9   : > { %v5794_v15 = vmul.f32 %v10803_v1, %v5718_v44 }
 0x3da   : > { %6032 = vrot.lane.b32.xlu0 %v5791_v33, %s8280_s14 }
 0x3db   : > { %v5892_v55 = vpop.permute.xlu0 %5891  ;;  %6038 = vrot.lane.b32.xlu1 %v5794_v15, %s8280_s14 }
 0x3dc   : > { %5962 = vst.msk [vmem:[%s10990_s13 + $0xd0] sm:$0xff] %vm5935_vm8, %v5892_v55  ;;  %v5714_v51 = vpop.permute.xlu1 %5713 }
 0x3dd   : > { %v5792_v23 = vmul.f32 %v10809_v18, %v5714_v51 }
 0x3df   : > { %v5888_v34 = vpop.permute.xlu0 %5887  ;;  %6034 = vrot.lane.b32.xlu1 %v5792_v23, %s8280_s14 }
 0x3e0   : > { %5960 = vst.msk [vmem:[%s10990_s13 + $0xc0] sm:$0xff] %vm5935_vm8, %v5888_v34  ;;  %v5894_v4 = vpop.permute.xlu1 %5893 }
 0x3e1   : > { %5963 = vst.msk [vmem:[%s10990_s13 + $0xd8] sm:$0xff] %vm5935_vm8, %v5894_v4 }
 0x3e3   : > { %v5724_v1 = vpop.permute.xlu0 %5723 }
 0x3e4   : > { %v5797_v49 = vmul.f32 %v10813_v8, %v5724_v1  ;;  %v5890_v2 = vpop.permute.xlu1 %5889 }
 0x3e5   : > { %5961 = vst.msk [vmem:[%s10990_s13 + $0xc8] sm:$0xff] %vm5935_vm8, %v5890_v2 }
 0x3e6   : > { %6044 = vrot.lane.b32.xlu0 %v5797_v49, %s8280_s14 }
 0x3e7   : > { %v5720_v18 = vpop.permute.xlu0 %5719 }
 0x3e8   : > { %v5795_v11 = vmul.f32 %v10819_v9, %v5720_v18  ;;  %v5726_v25 = vpop.permute.xlu1 %5725 }
 0x3e9   : > { %v5798_v61 = vmul.f32 %v10822_v22, %v5726_v25 }
 0x3ea   : > { %6040 = vrot.lane.b32.xlu0 %v5795_v11, %s8280_s14 }
 0x3eb   : > { %v5900_v17 = vpop.permute.xlu0 %5899  ;;  %6046 = vrot.lane.b32.xlu1 %v5798_v61, %s8280_s14 }
 0x3ec   : > { %5966 = vst.msk [vmem:[%s10990_s13 + $0xf0] sm:$0xff] %vm5935_vm8, %v5900_v17  ;;  %v5722_v8 = vpop.permute.xlu1 %5721 }
 0x3ed   : > { %v5796_v40 = vmul.f32 %v10827_v3, %v5722_v8 }
 0x3ef   : > { %v5896_v27 = vpop.permute.xlu0 %5895  ;;  %6042 = vrot.lane.b32.xlu1 %v5796_v40, %s8280_s14 }
 0x3f0   : > { %5964 = vst.msk [vmem:[%s10990_s13 + $0xe0] sm:$0xff] %vm5935_vm8, %v5896_v27  ;;  %v5902_v9 = vpop.permute.xlu1 %5901 }
 0x3f1   : > { %5967 = vst.msk [vmem:[%s10990_s13 + $0xf8] sm:$0xff] %vm5935_vm8, %v5902_v9 }
 0x3f3   : > { %v5732_v20 = vpop.permute.xlu0 %5731 }
 0x3f4   : > { %v5801_v22 = vmul.f32 %v10830_v62, %v5732_v20  ;;  %v5898_v46 = vpop.permute.xlu1 %5897 }
 0x3f5   : > { %5965 = vst.msk [vmem:[%s10990_s13 + $0xe8] sm:$0xff] %vm5935_vm8, %v5898_v46 }
 0x3f6   : > { %6052 = vrot.lane.b32.xlu0 %v5801_v22, %s8280_s14 }
 0x3f7   : > { %v5728_v41 = vpop.permute.xlu0 %5727 }
 0x3f8   : > { %v5799_v3 = vmul.f32 %v10835_v59, %v5728_v41  ;;  %v5734_v26 = vpop.permute.xlu1 %5733 }
 0x3f9   : > { %v5802_v48 = vmul.f32 %v10838_v53, %v5734_v26 }
 0x3fa   : > { %6048 = vrot.lane.b32.xlu0 %v5799_v3, %s8280_s14 }
 0x3fb   : > { %v5740_v56 = vpop.permute.xlu0 %5739  ;;  %6054 = vrot.lane.b32.xlu1 %v5802_v48, %s8280_s14 }
 0x3fc   : > { %v5730_v62 = vpop.permute.xlu1 %5729  ;;  %v5805_v53 = vmul.f32 %v10846_v16, %v5740_v56 }
 0x3fd   : > { %v5800_v28 = vmul.f32 %v10843_v37, %v5730_v62 }
 0x3ff   : > { %v5736_v57 = vpop.permute.xlu0 %5735  ;;  %6050 = vrot.lane.b32.xlu1 %v5800_v28, %s8280_s14 }
 0x400   : > { %v5803_v36 = vmul.f32 %v11424_v30, %v5736_v57  ;;  %v5742_v59 = vpop.permute.xlu1 %5741 }
 0x402   : > { %6056 = vrot.lane.b32.xlu0 %v5803_v36, %s8280_s14 }
 0x404   : > { %v5738_v37 = vpop.permute.xlu1 %5737 }
 0x405   : > { %8179 = shalt.err (!%p8176_p5)
}
 0x406   : > { %s8180_s9 = scalar_lea.hbm %s11127_s24, 4096  ;;  %s8184_s17 = scalar_lea.hbm %s11297_s5, 8192 }
 0x407   : > { %p8181_p6 = scmp.ne.s32.totalorder %s11127_s24, %s8180_s9  ;;  %p8185_p10 = scmp.lt.u32.totalorder %s11127_s24, %s11297_s5 }
 0x408   : > { %p8186_p11 = scmp.lt.u32.totalorder %s8184_s17, %s8180_s9  ;;  %p8188_p13 = scmp.lt.u32.totalorder %s8180_s9, %s11127_s24 }
 0x409   : > { %p8182_p7 = pnand %p8181_p6, %p8355_p4 }
 0x40a   : > { %p8187_p12 = por %p8186_p11, %p8185_p10 }
 0x40b   : > { %p8183_p9 = pneg %p8182_p7 }
 0x40c   : > { %p8189_p0 = por %p8188_p13, %p8187_p12 }
 0x40e   : > { %p8190_p1 = pnand %p8189_p0, %p8183_p9 }
 0x410   : > { %8193 = shalt.err (!%p8190_p1)
}
 0x411   : > { %s8282_s29 = smov 128   ;;  %s8283_s8 = smov 8   ;;  %v5804_v16 = vmul.f32 %v10859_v52, %v5738_v37  ;;  %6060 = vrot.lane.b32.xlu0 %v5805_v53, %s8280_s14  ;;  %v6005_v30 = vpop.permute.xlu0 %6004  ;;  %v5806_v52 = vmul.f32 %v11426_v39, %v5742_v59  ;;  %v6007_v38 = vpop.permute.xlu1 %6006 }
 0x412   : > { %7648 = dma.vmem_to_hbm [thread:$0]  (%p8355_p4), %s11131_s25, 4096, %s11127_s24, %s6134_s27, %s8282_s29, %s8282_s29, %s8283_s8  }
 0x413   : > { %6058 = vrot.lane.b32.xlu1 %v5804_v16, %s8280_s14  ;;  %s11165_s9 = scalar_lea.vmem [#allocation2], %s6313_s12  ;;  %s11237_s25 = scalar_lea.hbm %s11296_s4, %s6859_s15 }
 0x414   : > { %6098 = vst.msk [vmem:[%s11165_s9 + $0x10] sm:$0xff] %vm5935_vm8, %v6005_v30  ;;  %6099 = vst.msk [vmem:[%s11165_s9 + $0x18] sm:$0xff] %vm5935_vm8, %v6007_v38  ;;  %s6150_s12 = sshll.u32 %s11165_s9, 4  ;;  %s6129_s27 = scalar_lea.sflag [#allocation3], %s10979_s11  ;;  %s11239_s12 = int_to_ptr.vmem [resolvable:$true] %s6150_s12 }
 0x415   : > { %v6001_v54 = vpop.permute.xlu0 %6000  ;;  %v6003_v35 = vpop.permute.xlu1 %6002  ;;  %s8194_s13 = scalar_lea.vmem %s11239_s12, 4096  ;;  %s8284_s21 = smov [#allocation2]  }
 0x416   : > { %6096 = vst.msk [vmem:[%s11165_s9] sm:$0xff] %vm5935_vm8, %v6001_v54  ;;  %6097 = vst.msk [vmem:[%s11165_s9 + $0x8] sm:$0xff] %vm5935_vm8, %v6003_v35  ;;  %p8195_p2 = scmp.ne.s32.totalorder %s11239_s12, %s8194_s13  ;;  %s8198_s16 = sshll.u32 %s8284_s21, 4  ;;  %s8199_s16 = int_to_ptr.vmem [resolvable:$false] %s8198_s16 }
 0x417   : > { %6062 = vrot.lane.b32.xlu1 %v5806_v52, %s8280_s14  ;;  %s8200_s17 = scalar_lea.vmem %s8199_s16, 8192  ;;  %p8201_p6 = scmp.lt.s32.totalorder %s11239_s12, %s8199_s16 }
 0x418   : > { %p8196_p3 = pnand %p8195_p2, %p8355_p4  ;;  %p8202_p7 = scmp.lt.s32.totalorder %s8200_s17, %s8194_s13 }
 0x419   : > { %v6013_v12 = vpop.permute.xlu0 %6012 }
 0x41a   : > { %6102 = vst.msk [vmem:[%s11165_s9 + $0x30] sm:$0xff] %vm5935_vm8, %v6013_v12  ;;  %p8197_p5 = pneg %p8196_p3  ;;  %p8203_p9 = por %p8202_p7, %p8201_p6 }
 0x41c   : > { %p8204_p10 = pnand %p8203_p9, %p8197_p5 }
 0x41d   : > { %v6009_v39 = vpop.permute.xlu0 %6008  ;;  %v6015_v42 = vpop.permute.xlu1 %6014 }
 0x41e   : > { %6100 = vst.msk [vmem:[%s11165_s9 + $0x20] sm:$0xff] %vm5935_vm8, %v6009_v39  ;;  %6103 = vst.msk [vmem:[%s11165_s9 + $0x38] sm:$0xff] %vm5935_vm8, %v6015_v42 }
 0x421   : > { %v6011_v63 = vpop.permute.xlu1 %6010 }
 0x422   : > { %6101 = vst.msk [vmem:[%s11165_s9 + $0x28] sm:$0xff] %vm5935_vm8, %v6011_v63 }
 0x428   : > { %v6021_v6 = vpop.permute.xlu0 %6020 }
 0x429   : > { %6106 = vst.msk [vmem:[%s11165_s9 + $0x50] sm:$0xff] %vm5935_vm8, %v6021_v6 }
 0x42c   : > { %v6017_v10 = vpop.permute.xlu0 %6016 }
 0x42d   : > { %6104 = vst.msk [vmem:[%s11165_s9 + $0x40] sm:$0xff] %vm5935_vm8, %v6017_v10  ;;  %v6023_v0 = vpop.permute.xlu1 %6022 }
 0x42e   : > { %6107 = vst.msk [vmem:[%s11165_s9 + $0x58] sm:$0xff] %vm5935_vm8, %v6023_v0 }
 0x431   : > { %v6019_v31 = vpop.permute.xlu1 %6018 }
 0x432   : > { %6105 = vst.msk [vmem:[%s11165_s9 + $0x48] sm:$0xff] %vm5935_vm8, %v6019_v31 }
 0x438   : > { %v6029_v45 = vpop.permute.xlu0 %6028 }
 0x439   : > { %6110 = vst.msk [vmem:[%s11165_s9 + $0x70] sm:$0xff] %vm5935_vm8, %v6029_v45 }
 0x43c   : > { %v6025_v7 = vpop.permute.xlu0 %6024 }
 0x43d   : > { %6108 = vst.msk [vmem:[%s11165_s9 + $0x60] sm:$0xff] %vm5935_vm8, %v6025_v7  ;;  %v6031_v32 = vpop.permute.xlu1 %6030 }
 0x43e   : > { %6111 = vst.msk [vmem:[%s11165_s9 + $0x78] sm:$0xff] %vm5935_vm8, %v6031_v32 }
 0x441   : > { %v6027_v47 = vpop.permute.xlu1 %6026 }
 0x442   : > { %6109 = vst.msk [vmem:[%s11165_s9 + $0x68] sm:$0xff] %vm5935_vm8, %v6027_v47 }
 0x448   : > { %v6037_v13 = vpop.permute.xlu0 %6036 }
 0x449   : > { %6114 = vst.msk [vmem:[%s11165_s9 + $0x90] sm:$0xff] %vm5935_vm8, %v6037_v13 }
 0x44c   : > { %v6033_v50 = vpop.permute.xlu0 %6032 }
 0x44d   : > { %6112 = vst.msk [vmem:[%s11165_s9 + $0x80] sm:$0xff] %vm5935_vm8, %v6033_v50  ;;  %v6039_v14 = vpop.permute.xlu1 %6038 }
 0x44e   : > { %6115 = vst.msk [vmem:[%s11165_s9 + $0x98] sm:$0xff] %vm5935_vm8, %v6039_v14 }
 0x451   : > { %v6035_v29 = vpop.permute.xlu1 %6034 }
 0x452   : > { %6113 = vst.msk [vmem:[%s11165_s9 + $0x88] sm:$0xff] %vm5935_vm8, %v6035_v29 }
 0x458   : > { %v6045_v43 = vpop.permute.xlu0 %6044 }
 0x459   : > { %6118 = vst.msk [vmem:[%s11165_s9 + $0xb0] sm:$0xff] %vm5935_vm8, %v6045_v43 }
 0x45c   : > { %v6041_v5 = vpop.permute.xlu0 %6040 }
 0x45d   : > { %6116 = vst.msk [vmem:[%s11165_s9 + $0xa0] sm:$0xff] %vm5935_vm8, %v6041_v5  ;;  %v6047_v19 = vpop.permute.xlu1 %6046 }
 0x45e   : > { %6119 = vst.msk [vmem:[%s11165_s9 + $0xb8] sm:$0xff] %vm5935_vm8, %v6047_v19 }
 0x461   : > { %v6043_v24 = vpop.permute.xlu1 %6042 }
 0x462   : > { %6117 = vst.msk [vmem:[%s11165_s9 + $0xa8] sm:$0xff] %vm5935_vm8, %v6043_v24 }
 0x468   : > { %v6053_v58 = vpop.permute.xlu0 %6052 }
 0x469   : > { %6122 = vst.msk [vmem:[%s11165_s9 + $0xd0] sm:$0xff] %vm5935_vm8, %v6053_v58 }
 0x46c   : > { %v6049_v21 = vpop.permute.xlu0 %6048 }
 0x46d   : > { %6120 = vst.msk [vmem:[%s11165_s9 + $0xc0] sm:$0xff] %vm5935_vm8, %v6049_v21  ;;  %v6055_v60 = vpop.permute.xlu1 %6054 }
 0x46e   : > { %6123 = vst.msk [vmem:[%s11165_s9 + $0xd8] sm:$0xff] %vm5935_vm8, %v6055_v60 }
 0x471   : > { %v6051_v33 = vpop.permute.xlu1 %6050 }
 0x472   : > { %6121 = vst.msk [vmem:[%s11165_s9 + $0xc8] sm:$0xff] %vm5935_vm8, %v6051_v33 }
 0x474   : > { %v6057_v44 = vpop.permute.xlu0 %6056 }
 0x475   : > { %6124 = vst.msk [vmem:[%s11165_s9 + $0xe0] sm:$0xff] %vm5935_vm8, %v6057_v44 }
 0x483   : > { %v6061_v15 = vpop.permute.xlu0 %6060 }
 0x484   : > { %6126 = vst.msk [vmem:[%s11165_s9 + $0xf0] sm:$0xff] %vm5935_vm8, %v6061_v15 }
 0x485   : > { %v6059_v55 = vpop.permute.xlu1 %6058 }
 0x486   : > { %6125 = vst.msk [vmem:[%s11165_s9 + $0xe8] sm:$0xff] %vm5935_vm8, %v6059_v55 }
 0x489   : > { %v6063_v51 = vpop.permute.xlu1 %6062 }
 0x48a   : > { %6127 = vst.msk [vmem:[%s11165_s9 + $0xf8] sm:$0xff] %vm5935_vm8, %v6063_v51 }
 0x48b   : > { %8207 = shalt.err (!%p8204_p10)
}
 0x48c   : > { %s8208_s15 = scalar_lea.hbm %s11237_s25, 4096  ;;  %s8212_s9 = scalar_lea.hbm %s11296_s4, 8192 }
 0x48d   : > { %p8209_p11 = scmp.ne.s32.totalorder %s11237_s25, %s8208_s15  ;;  %p8213_p0 = scmp.lt.u32.totalorder %s11237_s25, %s11296_s4 }
 0x48e   : > { %p8214_p1 = scmp.lt.u32.totalorder %s8212_s9, %s8208_s15  ;;  %p8216_p3 = scmp.lt.u32.totalorder %s8208_s15, %s11237_s25 }
 0x48f   : > { %p8210_p12 = pnand %p8209_p11, %p8355_p4 }
 0x490   : > { %p8215_p2 = por %p8214_p1, %p8213_p0 }
 0x491   : > { %p8211_p13 = pneg %p8210_p12 }
 0x492   : > { %p8217_p5 = por %p8216_p3, %p8215_p2 }
 0x494   : > { %p8218_p6 = pnand %p8217_p5, %p8211_p13 }
 0x496   : > { %8221 = shalt.err (!%p8218_p6)
}
 0x497   : > { %7647 = dma.vmem_to_hbm [thread:$0]  (%p8355_p4), %s11239_s12, 4096, %s11237_s25, %s6129_s27, %s8282_s29, %s8282_s29, %s8283_s8  }
 0x498 PF: > { %p7658_p7 = scmp.ge.s32.totalorder %s8276_s23, 2  ;;  %s6184_s13 = sand.u32 1, %s8256_s18  }
 0x499   : > { %s6185_s21 = scalar_lea.sflag [#allocation3], %s6184_s13 }
 0x49a   : > { %p7652_p9 = pnand %p7658_p7, %p8362_p8 }
 0x49c   : > { %8247 = dma.done.wait (!%p7652_p9), %s6185_s21, 4096  }
 0x49d   : > { %8249 = vsyncadd (!%p7652_p9), %s6185_s21, 4294963200  ;;  %s6194_s28 = scalar_lea.sflag [#allocation5], %s6184_s13 }
 0x49e   : > { %8251 = dma.done.wait (!%p7652_p9), %s6194_s28, 4096  }
 0x49f   : > { %8253 = vsyncadd (!%p7652_p9), %s6194_s28, 4294963200  ;;  %s22_s23 = sadd.s32 1, %s8276_s23   ;;  %s11429_s18 = smov %s8260_s19 }
 0x4a0   : > { %p19_p10 = scmp.ge.s32.totalorder %s22_s23, 4   ;;  %s11430_s19 = smov %s8264_s20 }
 0x4a1   : > { %s11431_s20 = smov %s8368_s6  ;;  %s11432_s21 = smov %s8272_s22 }
 0x4a2   : > { %s11433_s22 = smov %s11435_s26  ;;  %21 = sbr.rel (!%p19_p10) target bundleno = 6 (0x6), region = 102 }
 0x4a9   :  { %6199 = vsyncpa [#allocation3], 1 }
 0x4aa   :  { %6201 = vsyncpa [#allocation3 + $0x1], 1 }
 0x4ab   :  { %6202 = vsyncpa [#allocation5], 1 }
 0x4ac   :  { %6204 = vsyncpa [#allocation5 + $0x1], 1 }

</bundles_post_ra>
